<compile_context>
chip_gen: v5e
topology: v5e:2x2
jax: 0.10.0
libtpu: 0.0.40
codegen_flags: <defaults>
</compile_context>

<pallas_src>
import jax
import jax.numpy as jnp
import numpy as np
from jax.experimental import pallas as pl
from jax.experimental.pallas import tpu as pltpu


def _round_up(x, m):
    return ((x + m - 1) // m) * m


# ----------------------------------------------------------------------------
# Fused kernel: all dense layers for one batch element, feature buffer in VMEM.
# ----------------------------------------------------------------------------
def _make_block_kernel(c_in, gr, c_feat, H, W, num_layers):
    """Builds the fused kernel.  Ref order per grid step (one batch element):

      refs[0]                 x_ref    (H, W, c_in)        f32
      refs[1+6l : 7+6l]       layer l: s1 (1, c_pad_l) f32, b1 (1, c_pad_l) f32,
                                       w1 (c_pad_l, c4) bf16,
                                       s2 (1, c4) f32, b2 (1, c4) f32,
                                       w2 (3, c4, 3*gr) bf16  [ky, ci, kx*gr+o]
      refs[1+6L]              out_ref  (H, W, c_total)     f32
      refs[2+6L]              feat_ref (H, W, c_feat)      bf16  VMEM scratch
    """
    L = num_layers
    HW = H * W

    def kernel(*refs):
        x_ref = refs[0]
        out_ref = refs[1 + 6 * L]
        feat_ref = refs[2 + 6 * L]

        x = x_ref[...]                                   # (H, W, c_in) f32
        xb = x.astype(jnp.bfloat16)

        # Initialize the resident feature buffer: valid input channels followed
        # by zeros (padded channels MUST be zero/finite for the padded-weight
        # trick below).  One full-width lane-dense store.
        if c_feat > c_in:
            feat_ref[...] = jnp.concatenate(
                [xb, jnp.zeros((H, W, c_feat - c_in), jnp.bfloat16)], axis=-1)
        else:
            feat_ref[...] = xb

        outs = [x]                                       # dense concat pieces (f32)
        c = c_in
        for l in range(L):
            s1_ref, b1_ref, w1_ref, s2_ref, b2_ref, w2_ref = refs[1 + 6 * l: 7 + 6 * l]
            c_pad = w1_ref.shape[0]                      # round_up(c, 128)
            c4 = w1_ref.shape[1]

            # ---- BN1 + ReLU (f32, VPU) on the lane-aligned channel prefix ----
            z = feat_ref[:, :, :c_pad].astype(jnp.float32).reshape(HW, c_pad)
            h1 = jnp.maximum(z * s1_ref[...] + b1_ref[...], 0.0)

            # ---- 1x1 conv: one MXU matmul (bf16 in, f32 accumulate) ----
            t = jnp.dot(h1.astype(jnp.bfloat16), w1_ref[...],
                        preferred_element_type=jnp.float32)          # (HW, c4)

            # ---- BN2 + ReLU (f32), one cast to bf16 for the MXU ----
            t = jnp.maximum(t * s2_ref[...] + b2_ref[...], 0.0)
            tb = t.astype(jnp.bfloat16)                               # (HW, c4)

            # ---- 3x3 conv (stride 1, pad 1), no materialized "u" buffer:
            #   dy taps -> 3 accumulated matmuls over row-range views of tb,
            #   dx taps -> column groups of the result + 2 shifted adds.
            #   B[h, w, kx*gr+o] = sum_{ky,ci} t[h+ky-1, w, ci] * w2[ky,kx,ci,o]
            #   out[h, w, o]     = sum_{kx} B[h, w+kx-1, kx*gr+o]
            b_mid = jnp.dot(tb, w2_ref[1],
                            preferred_element_type=jnp.float32)       # ky=1
            b_up = jnp.dot(tb[:HW - W, :], w2_ref[0],
                           preferred_element_type=jnp.float32)        # ky=0
            b_dn = jnp.dot(tb[W:, :], w2_ref[2],
                           preferred_element_type=jnp.float32)        # ky=2
            zrow = jnp.zeros((W, 3 * gr), jnp.float32)
            B = (b_mid
                 + jnp.concatenate([zrow, b_up], axis=0)              # t[h-1]
                 + jnp.concatenate([b_dn, zrow], axis=0)              # t[h+1]
                 ).reshape(H, W, 3 * gr)

            b_l = B[:, :, 0:gr]            # kx=0 tap (uses column w-1)
            b_c = B[:, :, gr:2 * gr]       # kx=1 tap
            b_r = B[:, :, 2 * gr:]         # kx=2 tap (uses column w+1)
            zc = jnp.zeros((H, 1, gr), jnp.float32)
            y = (b_c
                 + jnp.concatenate([zc, b_l[:, :W - 1, :]], axis=1)
                 + jnp.concatenate([b_r[:, 1:, :], zc], axis=1))      # (H, W, gr)

            outs.append(y)
            if l < L - 1:
                # Append the new features to the resident buffer (bf16) for the
                # next layer; only the gr new channels are written.
                feat_ref[:, :, c:c + gr] = y.astype(jnp.bfloat16)
            c += gr

        # Single lane-dense store of the full dense-concat output (f32).
        out_ref[...] = jnp.concatenate(outs, axis=-1)

    return kernel


# ----------------------------------------------------------------------------
# Parameter construction (deterministic, synthetic), BN folded for inference.
# ----------------------------------------------------------------------------
def init_params(key, in_channels, growth_rate, num_layers, width_factor=1,
                eps=1e-5):
    gr = growth_rate * width_factor
    params = []
    c = in_channels
    for i in range(num_layers):
        c4 = gr * 4
        ks = jax.random.split(jax.random.fold_in(key, i), 10)
        # BN1 (over c channels)
        g1 = 1.0 + 0.1 * jax.random.normal(ks[0], (c,), jnp.float32)
        be1 = 0.1 * jax.random.normal(ks[1], (c,), jnp.float32)
        rm1 = 0.1 * jax.random.normal(ks[2], (c,), jnp.float32)
        rv1 = 0.5 + jax.random.uniform(ks[3], (c,), jnp.float32)
        # Conv1x1: PyTorch OIHW (c4, c, 1, 1) -> kernel uses (c, c4)
        w1 = 0.2 * jax.random.normal(ks[4], (c, c4), jnp.float32)
        # BN2 (over c4 channels)
        g2 = 1.0 + 0.1 * jax.random.normal(ks[5], (c4,), jnp.float32)
        be2 = 0.1 * jax.random.normal(ks[6], (c4,), jnp.float32)
        rm2 = 0.1 * jax.random.normal(ks[7], (c4,), jnp.float32)
        rv2 = 0.5 + jax.random.uniform(ks[8], (c4,), jnp.float32)
        # Conv3x3: PyTorch OIHW (gr, c4, 3, 3) -> HWIO (3, 3, c4, gr)
        w2_hwio = 0.2 * jax.random.normal(ks[9], (3, 3, c4, gr), jnp.float32)

        # Fold BN (inference mode) into scale/bias.
        s1 = g1 / jnp.sqrt(rv1 + eps)
        b1 = be1 - rm1 * s1
        s2 = g2 / jnp.sqrt(rv2 + eps)
        b2 = be2 - rm2 * s2

        # Zero-pad BN1 / conv1 params to a lane-aligned channel count so the
        # kernel reads an aligned prefix of the feature scratch.
        c_pad = _round_up(c, 128)
        s1_p = jnp.zeros((1, c_pad), jnp.float32).at[0, :c].set(s1)
        b1_p = jnp.zeros((1, c_pad), jnp.float32).at[0, :c].set(b1)
        w1_p = jnp.zeros((c_pad, c4), jnp.float32).at[:c].set(w1).astype(jnp.bfloat16)

        # w2pack[ky, ci, kx*gr + o] = w2_hwio[ky, kx, ci, o]
        w2pack = jnp.transpose(w2_hwio, (0, 2, 1, 3)).reshape(3, c4, 3 * gr)

        params.append(dict(
            # padded / packed tensors consumed by the Pallas kernel
            s1_p=s1_p, b1_p=b1_p, w1_p=w1_p,
            s2=s2.reshape(1, c4), b2=b2.reshape(1, c4),
            w2pack=w2pack.astype(jnp.bfloat16),
            # unpadded f32 copies for the pure-JAX reference
            s1=s1.reshape(1, c), b1=b1.reshape(1, c),
            w1=w1, w2_hwio=w2_hwio,
        ))
        c += gr
    return params


# ----------------------------------------------------------------------------
# Full DenseNet block: one fused pallas_call, grid over batch.
# ----------------------------------------------------------------------------
def densenet_block_pallas(x_nchw, params):
    x = jnp.transpose(x_nchw, (0, 2, 3, 1)).astype(jnp.float32)   # NCHW -> NHWC
    N, H, W, c_in = x.shape
    L = len(params)
    gr = params[0]["w2pack"].shape[2] // 3
    c_total = c_in + L * gr
    c_feat = params[-1]["w1_p"].shape[0]       # = round_up(c_in + (L-1)*gr, 128)

    kernel = _make_block_kernel(c_in, gr, c_feat, H, W, L)

    in_specs = [pl.BlockSpec((None, H, W, c_in), lambda n: (n, 0, 0, 0))]
    args = [x]
    flops = 0
    weight_bytes = 0
    for p in params:
        c_pad, c4 = p["w1_p"].shape
        in_specs += [
            pl.BlockSpec((1, c_pad), lambda n: (0, 0)),
            pl.BlockSpec((1, c_pad), lambda n: (0, 0)),
            pl.BlockSpec((c_pad, c4), lambda n: (0, 0)),
            pl.BlockSpec((1, c4), lambda n: (0, 0)),
            pl.BlockSpec((1, c4), lambda n: (0, 0)),
            pl.BlockSpec((3, c4, 3 * gr), lambda n: (0, 0, 0)),
        ]
        args += [p["s1_p"], p["b1_p"], p["w1_p"], p["s2"], p["b2"], p["w2pack"]]
        flops += 2 * H * W * (c_pad * c4 + 9 * c4 * gr)
        weight_bytes += (p["w1_p"].size + p["w2pack"].size) * 2 \
            + (p["s1_p"].size + p["b1_p"].size + p["s2"].size + p["b2"].size) * 4
    flops *= N
    bytes_accessed = x.size * 4 + N * H * W * c_total * 4 + weight_bytes

    # TODO(synk): for very large H*W*C, add an H row-tiling grid axis with
    # per-layer halos so the resident feature scratch fits v7x's 64 MiB VMEM.
    out = pl.pallas_call(
        kernel,
        out_shape=jax.ShapeDtypeStruct((N, H, W, c_total), jnp.float32),
        grid=(N,),
        in_specs=in_specs,
        out_specs=pl.BlockSpec((None, H, W, c_total), lambda n: (n, 0, 0, 0)),
        scratch_shapes=[pltpu.VMEM((H, W, c_feat), jnp.bfloat16)],
        compiler_params=pltpu.CompilerParams(
            dimension_semantics=("parallel",),
            vmem_limit_bytes=64 * 1024 * 1024),
        cost_estimate=pl.CostEstimate(
            flops=flops, transcendentals=0, bytes_accessed=bytes_accessed),
    )(*args)

    return jnp.transpose(out, (0, 3, 1, 2))                        # NHWC -> NCHW


# Pure-JAX f32 reference (exact semantics of the PyTorch module in eval mode).
def densenet_block_ref(x_nchw, params):
    x = jnp.transpose(x_nchw, (0, 2, 3, 1))
    feats = [x]
    for p in params:
        inp = jnp.concatenate(feats, axis=-1)
        h = jnp.maximum(inp * p["s1"][None, None] + p["b1"][None, None], 0.0)
        w1 = p["w1"].reshape(1, 1, *p["w1"].shape)
        t = jax.lax.conv_general_dilated(
            h, w1, (1, 1), "VALID",
            dimension_numbers=("NHWC", "HWIO", "NHWC"))
        t = jnp.maximum(t * p["s2"][None, None] + p["b2"][None, None], 0.0)
        o = jax.lax.conv_general_dilated(
            t, p["w2_hwio"], (1, 1), ((1, 1), (1, 1)),
            dimension_numbers=("NHWC", "HWIO", "NHWC"))
        feats.append(o)
    out = jnp.concatenate(feats, axis=-1)
    return jnp.transpose(out, (0, 3, 1, 2))


if __name__ == "__main__":
    key = jax.random.PRNGKey(0)
    kx, kp = jax.random.split(key)

    N, C, H, W = 2, 4, 16, 16
    growth_rate, num_layers, width_factor = 4, 2, 1

    x = jax.random.normal(kx, (N, C, H, W), dtype=jnp.float32)
    params = init_params(kp, C, growth_rate, num_layers, width_factor)

    fwd = jax.jit(densenet_block_pallas)
    out = jax.block_until_ready(fwd(x, params))

    expected_channels = C + num_layers * growth_rate * width_factor
    assert out.shape == (N, expected_channels, H, W), out.shape

    # Kernel uses bf16 MXU operands and bf16 feature storage (f32 accumulation
    # and f32 BN/ReLU math); reference is pure f32, so tolerances reflect bf16
    # input rounding (~0.4% relative per matmul).
    ref = densenet_block_ref(x, params)
    np.testing.assert_allclose(np.asarray(out), np.asarray(ref),
                               rtol=2e-2, atol=2e-2)
    print("KERNEL_OK")
</pallas_src>

<mosaic_0001>
module attributes {stable_mosaic.version = 11 : i64} {
  func.func @kernel(%arg0: i32, %arg1: memref<1x16x16x4xf32, #tpu.memory_space<vmem>>, %arg2: memref<1x128xf32, #tpu.memory_space<vmem>>, %arg3: memref<1x128xf32, #tpu.memory_space<vmem>>, %arg4: memref<128x16xbf16, #tpu.memory_space<vmem>>, %arg5: memref<1x16xf32, #tpu.memory_space<vmem>>, %arg6: memref<1x16xf32, #tpu.memory_space<vmem>>, %arg7: memref<3x16x12xbf16, #tpu.memory_space<vmem>>, %arg8: memref<1x128xf32, #tpu.memory_space<vmem>>, %arg9: memref<1x128xf32, #tpu.memory_space<vmem>>, %arg10: memref<128x16xbf16, #tpu.memory_space<vmem>>, %arg11: memref<1x16xf32, #tpu.memory_space<vmem>>, %arg12: memref<1x16xf32, #tpu.memory_space<vmem>>, %arg13: memref<3x16x12xbf16, #tpu.memory_space<vmem>>, %arg14: memref<1x16x16x12xf32, #tpu.memory_space<vmem>>, %arg15: memref<16x16x128xbf16, #tpu.memory_space<vmem>>) attributes {dimension_semantics = [#tpu.dimension_semantics<parallel>], iteration_bounds = array<i64: 2>, scalar_prefetch = 0 : i64, scratch_operands = 1 : i64, tpu.core_type = #tpu.core_type<tc>, window_params = [{transform_indices = @transform_0, window_bounds = array<i64: 1, 16, 16, 4>}, {pipeline_mode = #tpu.pipeline_mode<synchronous>, transform_indices = @transform_1, window_bounds = array<i64: 1, 128>}, {pipeline_mode = #tpu.pipeline_mode<synchronous>, transform_indices = @transform_2, window_bounds = array<i64: 1, 128>}, {pipeline_mode = #tpu.pipeline_mode<synchronous>, transform_indices = @transform_3, window_bounds = array<i64: 128, 16>}, {pipeline_mode = #tpu.pipeline_mode<synchronous>, transform_indices = @transform_4, window_bounds = array<i64: 1, 16>}, {pipeline_mode = #tpu.pipeline_mode<synchronous>, transform_indices = @transform_5, window_bounds = array<i64: 1, 16>}, {pipeline_mode = #tpu.pipeline_mode<synchronous>, transform_indices = @transform_6, window_bounds = array<i64: 3, 16, 12>}, {pipeline_mode = #tpu.pipeline_mode<synchronous>, transform_indices = @transform_7, window_bounds = array<i64: 1, 128>}, {pipeline_mode = #tpu.pipeline_mode<synchronous>, transform_indices = @transform_8, window_bounds = array<i64: 1, 128>}, {pipeline_mode = #tpu.pipeline_mode<synchronous>, transform_indices = @transform_9, window_bounds = array<i64: 128, 16>}, {pipeline_mode = #tpu.pipeline_mode<synchronous>, transform_indices = @transform_10, window_bounds = array<i64: 1, 16>}, {pipeline_mode = #tpu.pipeline_mode<synchronous>, transform_indices = @transform_11, window_bounds = array<i64: 1, 16>}, {pipeline_mode = #tpu.pipeline_mode<synchronous>, transform_indices = @transform_12, window_bounds = array<i64: 3, 16, 12>}, {transform_indices = @transform_13, window_bounds = array<i64: 1, 16, 16, 12>}]} {
    %c0 = arith.constant 0 : index
    %c0_0 = arith.constant 0 : index
    %c0_1 = arith.constant 0 : index
    %c0_2 = arith.constant 0 : index
    %0 = vector.load %arg1[%c0, %c0_0, %c0_1, %c0_2] : memref<1x16x16x4xf32, #tpu.memory_space<vmem>>, vector<1x16x16x4xf32>
    %1 = vector.shape_cast %0 : vector<1x16x16x4xf32> to vector<16x16x4xf32>
    %2 = arith.truncf %1 : vector<16x16x4xf32> to vector<16x16x4xbf16>
    %cst = arith.constant 0.000000e+00 : bf16
    %3 = vector.broadcast %cst : bf16 to vector<16x16x124xbf16>
    %4 = tpu.concatenate %2, %3 in 2 : vector<16x16x4xbf16>, vector<16x16x124xbf16> -> vector<16x16x128xbf16>
    %c0_3 = arith.constant 0 : index
    %c0_4 = arith.constant 0 : index
    %c0_5 = arith.constant 0 : index
    %5 = vector.load %arg15[%c0_3, %c0_4, %c0_5] : memref<16x16x128xbf16, #tpu.memory_space<vmem>>, vector<16x16x128xbf16>
    tpu.vector_store %arg15[%c0_3, %c0_4, %c0_5], %4 {strides = array<i32>} : memref<16x16x128xbf16, #tpu.memory_space<vmem>>, vector<16x16x128xbf16>,
    %c0_6 = arith.constant 0 : index
    %c0_7 = arith.constant 0 : index
    %c0_8 = arith.constant 0 : index
    %6 = vector.load %arg15[%c0_6, %c0_7, %c0_8] : memref<16x16x128xbf16, #tpu.memory_space<vmem>>, vector<16x16x128xbf16>
    %7 = arith.extf %6 : vector<16x16x128xbf16> to vector<16x16x128xf32>
    %8 = vector.shape_cast %7 : vector<16x16x128xf32> to vector<256x128xf32>
    %c0_9 = arith.constant 0 : index
    %c0_10 = arith.constant 0 : index
    %9 = vector.load %arg2[%c0_9, %c0_10] : memref<1x128xf32, #tpu.memory_space<vmem>>, vector<1x128xf32>
    %10 = vector.broadcast %9 : vector<1x128xf32> to vector<256x128xf32>
    %11 = arith.mulf %8, %10 : vector<256x128xf32>
    %c0_11 = arith.constant 0 : index
    %c0_12 = arith.constant 0 : index
    %12 = vector.load %arg3[%c0_11, %c0_12] : memref<1x128xf32, #tpu.memory_space<vmem>>, vector<1x128xf32>
    %13 = vector.broadcast %12 : vector<1x128xf32> to vector<256x128xf32>
    %14 = arith.addf %11, %13 : vector<256x128xf32>
    %cst_13 = arith.constant 0.000000e+00 : f32
    %15 = vector.broadcast %cst_13 : f32 to vector<256x128xf32>
    %16 = arith.maximumf %14, %15 : vector<256x128xf32>
    %17 = arith.truncf %16 : vector<256x128xf32> to vector<256x128xbf16>
    %c0_14 = arith.constant 0 : index
    %c0_15 = arith.constant 0 : index
    %18 = vector.load %arg4[%c0_14, %c0_15] : memref<128x16xbf16, #tpu.memory_space<vmem>>, vector<128x16xbf16>
    %cst_16 = arith.constant dense<0.000000e+00> : vector<256x16xf32>
    %19 = tpu.matmul %17, %18, %cst_16 {dimension_numbers = #tpu.dot_dimension_numbers<[1], [0], [0], [1], [0, 0, 1, 1], [], []>} : vector<256x128xbf16>, vector<128x16xbf16>, vector<256x16xf32> -> vector<256x16xf32>
    %c0_17 = arith.constant 0 : index
    %c0_18 = arith.constant 0 : index
    %20 = vector.load %arg5[%c0_17, %c0_18] : memref<1x16xf32, #tpu.memory_space<vmem>>, vector<1x16xf32>
    %21 = vector.broadcast %20 : vector<1x16xf32> to vector<256x16xf32>
    %22 = arith.mulf %19, %21 : vector<256x16xf32>
    %c0_19 = arith.constant 0 : index
    %c0_20 = arith.constant 0 : index
    %23 = vector.load %arg6[%c0_19, %c0_20] : memref<1x16xf32, #tpu.memory_space<vmem>>, vector<1x16xf32>
    %24 = vector.broadcast %23 : vector<1x16xf32> to vector<256x16xf32>
    %25 = arith.addf %22, %24 : vector<256x16xf32>
    %cst_21 = arith.constant 0.000000e+00 : f32
    %26 = vector.broadcast %cst_21 : f32 to vector<256x16xf32>
    %27 = arith.maximumf %25, %26 : vector<256x16xf32>
    %28 = arith.truncf %27 : vector<256x16xf32> to vector<256x16xbf16>
    %c1 = arith.constant 1 : index
    %c0_22 = arith.constant 0 : index
    %c0_23 = arith.constant 0 : index
    %29 = vector.load %arg7[%c1, %c0_22, %c0_23] : memref<3x16x12xbf16, #tpu.memory_space<vmem>>, vector<1x16x12xbf16>
    %30 = vector.shape_cast %29 : vector<1x16x12xbf16> to vector<16x12xbf16>
    %cst_24 = arith.constant dense<0.000000e+00> : vector<256x12xf32>
    %31 = tpu.matmul %28, %30, %cst_24 {dimension_numbers = #tpu.dot_dimension_numbers<[1], [0], [0], [1], [0, 0, 1, 1], [], []>} : vector<256x16xbf16>, vector<16x12xbf16>, vector<256x12xf32> -> vector<256x12xf32>
    %32 = vector.extract_strided_slice %28 {offsets = [0, 0], sizes = [240, 16], strides = [1, 1]} : vector<256x16xbf16> to vector<240x16xbf16>
    %c0_25 = arith.constant 0 : index
    %c0_26 = arith.constant 0 : index
    %c0_27 = arith.constant 0 : index
    %33 = vector.load %arg7[%c0_25, %c0_26, %c0_27] : memref<3x16x12xbf16, #tpu.memory_space<vmem>>, vector<1x16x12xbf16>
    %34 = vector.shape_cast %33 : vector<1x16x12xbf16> to vector<16x12xbf16>
    %cst_28 = arith.constant dense<0.000000e+00> : vector<240x12xf32>
    %35 = tpu.matmul %32, %34, %cst_28 {dimension_numbers = #tpu.dot_dimension_numbers<[1], [0], [0], [1], [0, 0, 1, 1], [], []>} : vector<240x16xbf16>, vector<16x12xbf16>, vector<240x12xf32> -> vector<240x12xf32>
    %36 = vector.extract_strided_slice %28 {offsets = [16, 0], sizes = [240, 16], strides = [1, 1]} : vector<256x16xbf16> to vector<240x16xbf16>
    %c2 = arith.constant 2 : index
    %c0_29 = arith.constant 0 : index
    %c0_30 = arith.constant 0 : index
    %37 = vector.load %arg7[%c2, %c0_29, %c0_30] : memref<3x16x12xbf16, #tpu.memory_space<vmem>>, vector<1x16x12xbf16>
    %38 = vector.shape_cast %37 : vector<1x16x12xbf16> to vector<16x12xbf16>
    %cst_31 = arith.constant dense<0.000000e+00> : vector<240x12xf32>
    %39 = tpu.matmul %36, %38, %cst_31 {dimension_numbers = #tpu.dot_dimension_numbers<[1], [0], [0], [1], [0, 0, 1, 1], [], []>} : vector<240x16xbf16>, vector<16x12xbf16>, vector<240x12xf32> -> vector<240x12xf32>
    %cst_32 = arith.constant 0.000000e+00 : f32
    %40 = vector.broadcast %cst_32 : f32 to vector<16x12xf32>
    %41 = tpu.concatenate %40, %35 in 0 : vector<16x12xf32>, vector<240x12xf32> -> vector<256x12xf32>
    %42 = arith.addf %31, %41 : vector<256x12xf32>
    %43 = tpu.concatenate %39, %40 in 0 : vector<240x12xf32>, vector<16x12xf32> -> vector<256x12xf32>
    %44 = arith.addf %42, %43 : vector<256x12xf32>
    %45 = vector.shape_cast %44 : vector<256x12xf32> to vector<16x16x12xf32>
    %46 = vector.extract_strided_slice %45 {offsets = [0, 0, 0], sizes = [16, 16, 4], strides = [1, 1, 1]} : vector<16x16x12xf32> to vector<16x16x4xf32>
    %47 = vector.extract_strided_slice %45 {offsets = [0, 0, 4], sizes = [16, 16, 4], strides = [1, 1, 1]} : vector<16x16x12xf32> to vector<16x16x4xf32>
    %48 = vector.extract_strided_slice %45 {offsets = [0, 0, 8], sizes = [16, 16, 4], strides = [1, 1, 1]} : vector<16x16x12xf32> to vector<16x16x4xf32>
    %cst_33 = arith.constant 0.000000e+00 : f32
    %49 = vector.broadcast %cst_33 : f32 to vector<16x1x4xf32>
    %50 = vector.extract_strided_slice %46 {offsets = [0, 0, 0], sizes = [16, 15, 4], strides = [1, 1, 1]} : vector<16x16x4xf32> to vector<16x15x4xf32>
    %51 = tpu.concatenate %49, %50 in 1 : vector<16x1x4xf32>, vector<16x15x4xf32> -> vector<16x16x4xf32>
    %52 = arith.addf %47, %51 : vector<16x16x4xf32>
    %53 = vector.extract_strided_slice %48 {offsets = [0, 1, 0], sizes = [16, 15, 4], strides = [1, 1, 1]} : vector<16x16x4xf32> to vector<16x15x4xf32>
    %54 = tpu.concatenate %53, %49 in 1 : vector<16x15x4xf32>, vector<16x1x4xf32> -> vector<16x16x4xf32>
    %55 = arith.addf %52, %54 : vector<16x16x4xf32>
    %56 = arith.truncf %55 : vector<16x16x4xf32> to vector<16x16x4xbf16>
    %c0_34 = arith.constant 0 : index
    %c0_35 = arith.constant 0 : index
    %c4 = arith.constant 4 : index
    %57 = vector.load %arg15[%c0_34, %c0_35, %c4] : memref<16x16x128xbf16, #tpu.memory_space<vmem>>, vector<16x16x4xbf16>
    tpu.vector_store %arg15[%c0_34, %c0_35, %c4], %56 {strides = array<i32>} : memref<16x16x128xbf16, #tpu.memory_space<vmem>>, vector<16x16x4xbf16>,
    %c0_36 = arith.constant 0 : index
    %c0_37 = arith.constant 0 : index
    %c0_38 = arith.constant 0 : index
    %58 = vector.load %arg15[%c0_36, %c0_37, %c0_38] : memref<16x16x128xbf16, #tpu.memory_space<vmem>>, vector<16x16x128xbf16>
    %59 = arith.extf %58 : vector<16x16x128xbf16> to vector<16x16x128xf32>
    %60 = vector.shape_cast %59 : vector<16x16x128xf32> to vector<256x128xf32>
    %c0_39 = arith.constant 0 : index
    %c0_40 = arith.constant 0 : index
    %61 = vector.load %arg8[%c0_39, %c0_40] : memref<1x128xf32, #tpu.memory_space<vmem>>, vector<1x128xf32>
    %62 = vector.broadcast %61 : vector<1x128xf32> to vector<256x128xf32>
    %63 = arith.mulf %60, %62 : vector<256x128xf32>
    %c0_41 = arith.constant 0 : index
    %c0_42 = arith.constant 0 : index
    %64 = vector.load %arg9[%c0_41, %c0_42] : memref<1x128xf32, #tpu.memory_space<vmem>>, vector<1x128xf32>
    %65 = vector.broadcast %64 : vector<1x128xf32> to vector<256x128xf32>
    %66 = arith.addf %63, %65 : vector<256x128xf32>
    %cst_43 = arith.constant 0.000000e+00 : f32
    %67 = vector.broadcast %cst_43 : f32 to vector<256x128xf32>
    %68 = arith.maximumf %66, %67 : vector<256x128xf32>
    %69 = arith.truncf %68 : vector<256x128xf32> to vector<256x128xbf16>
    %c0_44 = arith.constant 0 : index
    %c0_45 = arith.constant 0 : index
    %70 = vector.load %arg10[%c0_44, %c0_45] : memref<128x16xbf16, #tpu.memory_space<vmem>>, vector<128x16xbf16>
    %cst_46 = arith.constant dense<0.000000e+00> : vector<256x16xf32>
    %71 = tpu.matmul %69, %70, %cst_46 {dimension_numbers = #tpu.dot_dimension_numbers<[1], [0], [0], [1], [0, 0, 1, 1], [], []>} : vector<256x128xbf16>, vector<128x16xbf16>, vector<256x16xf32> -> vector<256x16xf32>
    %c0_47 = arith.constant 0 : index
    %c0_48 = arith.constant 0 : index
    %72 = vector.load %arg11[%c0_47, %c0_48] : memref<1x16xf32, #tpu.memory_space<vmem>>, vector<1x16xf32>
    %73 = vector.broadcast %72 : vector<1x16xf32> to vector<256x16xf32>
    %74 = arith.mulf %71, %73 : vector<256x16xf32>
    %c0_49 = arith.constant 0 : index
    %c0_50 = arith.constant 0 : index
    %75 = vector.load %arg12[%c0_49, %c0_50] : memref<1x16xf32, #tpu.memory_space<vmem>>, vector<1x16xf32>
    %76 = vector.broadcast %75 : vector<1x16xf32> to vector<256x16xf32>
    %77 = arith.addf %74, %76 : vector<256x16xf32>
    %cst_51 = arith.constant 0.000000e+00 : f32
    %78 = vector.broadcast %cst_51 : f32 to vector<256x16xf32>
    %79 = arith.maximumf %77, %78 : vector<256x16xf32>
    %80 = arith.truncf %79 : vector<256x16xf32> to vector<256x16xbf16>
    %c1_52 = arith.constant 1 : index
    %c0_53 = arith.constant 0 : index
    %c0_54 = arith.constant 0 : index
    %81 = vector.load %arg13[%c1_52, %c0_53, %c0_54] : memref<3x16x12xbf16, #tpu.memory_space<vmem>>, vector<1x16x12xbf16>
    %82 = vector.shape_cast %81 : vector<1x16x12xbf16> to vector<16x12xbf16>
    %cst_55 = arith.constant dense<0.000000e+00> : vector<256x12xf32>
    %83 = tpu.matmul %80, %82, %cst_55 {dimension_numbers = #tpu.dot_dimension_numbers<[1], [0], [0], [1], [0, 0, 1, 1], [], []>} : vector<256x16xbf16>, vector<16x12xbf16>, vector<256x12xf32> -> vector<256x12xf32>
    %84 = vector.extract_strided_slice %80 {offsets = [0, 0], sizes = [240, 16], strides = [1, 1]} : vector<256x16xbf16> to vector<240x16xbf16>
    %c0_56 = arith.constant 0 : index
    %c0_57 = arith.constant 0 : index
    %c0_58 = arith.constant 0 : index
    %85 = vector.load %arg13[%c0_56, %c0_57, %c0_58] : memref<3x16x12xbf16, #tpu.memory_space<vmem>>, vector<1x16x12xbf16>
    %86 = vector.shape_cast %85 : vector<1x16x12xbf16> to vector<16x12xbf16>
    %cst_59 = arith.constant dense<0.000000e+00> : vector<240x12xf32>
    %87 = tpu.matmul %84, %86, %cst_59 {dimension_numbers = #tpu.dot_dimension_numbers<[1], [0], [0], [1], [0, 0, 1, 1], [], []>} : vector<240x16xbf16>, vector<16x12xbf16>, vector<240x12xf32> -> vector<240x12xf32>
    %88 = vector.extract_strided_slice %80 {offsets = [16, 0], sizes = [240, 16], strides = [1, 1]} : vector<256x16xbf16> to vector<240x16xbf16>
    %c2_60 = arith.constant 2 : index
    %c0_61 = arith.constant 0 : index
    %c0_62 = arith.constant 0 : index
    %89 = vector.load %arg13[%c2_60, %c0_61, %c0_62] : memref<3x16x12xbf16, #tpu.memory_space<vmem>>, vector<1x16x12xbf16>
    %90 = vector.shape_cast %89 : vector<1x16x12xbf16> to vector<16x12xbf16>
    %cst_63 = arith.constant dense<0.000000e+00> : vector<240x12xf32>
    %91 = tpu.matmul %88, %90, %cst_63 {dimension_numbers = #tpu.dot_dimension_numbers<[1], [0], [0], [1], [0, 0, 1, 1], [], []>} : vector<240x16xbf16>, vector<16x12xbf16>, vector<240x12xf32> -> vector<240x12xf32>
    %cst_64 = arith.constant 0.000000e+00 : f32
    %92 = vector.broadcast %cst_64 : f32 to vector<16x12xf32>
    %93 = tpu.concatenate %92, %87 in 0 : vector<16x12xf32>, vector<240x12xf32> -> vector<256x12xf32>
    %94 = arith.addf %83, %93 : vector<256x12xf32>
    %95 = tpu.concatenate %91, %92 in 0 : vector<240x12xf32>, vector<16x12xf32> -> vector<256x12xf32>
    %96 = arith.addf %94, %95 : vector<256x12xf32>
    %97 = vector.shape_cast %96 : vector<256x12xf32> to vector<16x16x12xf32>
    %98 = vector.extract_strided_slice %97 {offsets = [0, 0, 0], sizes = [16, 16, 4], strides = [1, 1, 1]} : vector<16x16x12xf32> to vector<16x16x4xf32>
    %99 = vector.extract_strided_slice %97 {offsets = [0, 0, 4], sizes = [16, 16, 4], strides = [1, 1, 1]} : vector<16x16x12xf32> to vector<16x16x4xf32>
    %100 = vector.extract_strided_slice %97 {offsets = [0, 0, 8], sizes = [16, 16, 4], strides = [1, 1, 1]} : vector<16x16x12xf32> to vector<16x16x4xf32>
    %cst_65 = arith.constant 0.000000e+00 : f32
    %101 = vector.broadcast %cst_65 : f32 to vector<16x1x4xf32>
    %102 = vector.extract_strided_slice %98 {offsets = [0, 0, 0], sizes = [16, 15, 4], strides = [1, 1, 1]} : vector<16x16x4xf32> to vector<16x15x4xf32>
    %103 = tpu.concatenate %101, %102 in 1 : vector<16x1x4xf32>, vector<16x15x4xf32> -> vector<16x16x4xf32>
    %104 = arith.addf %99, %103 : vector<16x16x4xf32>
    %105 = vector.extract_strided_slice %100 {offsets = [0, 1, 0], sizes = [16, 15, 4], strides = [1, 1, 1]} : vector<16x16x4xf32> to vector<16x15x4xf32>
    %106 = tpu.concatenate %105, %101 in 1 : vector<16x15x4xf32>, vector<16x1x4xf32> -> vector<16x16x4xf32>
    %107 = arith.addf %104, %106 : vector<16x16x4xf32>
    %108 = tpu.concatenate %1, %55, %107 in 2 : vector<16x16x4xf32>, vector<16x16x4xf32>, vector<16x16x4xf32> -> vector<16x16x12xf32>
    %c0_66 = arith.constant 0 : index
    %c0_67 = arith.constant 0 : index
    %c0_68 = arith.constant 0 : index
    %c0_69 = arith.constant 0 : index
    %109 = vector.load %arg14[%c0_66, %c0_67, %c0_68, %c0_69] : memref<1x16x16x12xf32, #tpu.memory_space<vmem>>, vector<1x16x16x12xf32>
    %110 = vector.shape_cast %109 : vector<1x16x16x12xf32> to vector<16x16x12xf32>
    %111 = vector.shape_cast %108 : vector<16x16x12xf32> to vector<1x16x16x12xf32>
    tpu.vector_store %arg14[%c0_66, %c0_67, %c0_68, %c0_69], %111 {strides = array<i32>} : memref<1x16x16x12xf32, #tpu.memory_space<vmem>>, vector<1x16x16x12xf32>,
    return
  }
  func.func @transform_0(%arg0: i32) -> (i32, i32, i32, i32) {
    %c0_i32 = arith.constant 0 : i32
    %c0_i32_0 = arith.constant 0 : i32
    %c0_i32_1 = arith.constant 0 : i32
    %c0_i32_2 = arith.constant 0 : i32
    return %arg0, %c0_i32, %c0_i32_0, %c0_i32_1 : i32, i32, i32, i32
  }
  func.func @transform_1(%arg0: i32) -> (i32, i32) {
    %c0_i32 = arith.constant 0 : i32
    %c0_i32_0 = arith.constant 0 : i32
    %c0_i32_1 = arith.constant 0 : i32
    return %c0_i32, %c0_i32_0 : i32, i32
  }
  func.func @transform_2(%arg0: i32) -> (i32, i32) {
    %c0_i32 = arith.constant 0 : i32
    %c0_i32_0 = arith.constant 0 : i32
    %c0_i32_1 = arith.constant 0 : i32
    return %c0_i32, %c0_i32_0 : i32, i32
  }
  func.func @transform_3(%arg0: i32) -> (i32, i32) {
    %c0_i32 = arith.constant 0 : i32
    %c0_i32_0 = arith.constant 0 : i32
    %c0_i32_1 = arith.constant 0 : i32
    return %c0_i32, %c0_i32_0 : i32, i32
  }
  func.func @transform_4(%arg0: i32) -> (i32, i32) {
    %c0_i32 = arith.constant 0 : i32
    %c0_i32_0 = arith.constant 0 : i32
    %c0_i32_1 = arith.constant 0 : i32
    return %c0_i32, %c0_i32_0 : i32, i32
  }
  func.func @transform_5(%arg0: i32) -> (i32, i32) {
    %c0_i32 = arith.constant 0 : i32
    %c0_i32_0 = arith.constant 0 : i32
    %c0_i32_1 = arith.constant 0 : i32
    return %c0_i32, %c0_i32_0 : i32, i32
  }
  func.func @transform_6(%arg0: i32) -> (i32, i32, i32) {
    %c0_i32 = arith.constant 0 : i32
    %c0_i32_0 = arith.constant 0 : i32
    %c0_i32_1 = arith.constant 0 : i32
    %c0_i32_2 = arith.constant 0 : i32
    return %c0_i32, %c0_i32_0, %c0_i32_1 : i32, i32, i32
  }
  func.func @transform_7(%arg0: i32) -> (i32, i32) {
    %c0_i32 = arith.constant 0 : i32
    %c0_i32_0 = arith.constant 0 : i32
    %c0_i32_1 = arith.constant 0 : i32
    return %c0_i32, %c0_i32_0 : i32, i32
  }
  func.func @transform_8(%arg0: i32) -> (i32, i32) {
    %c0_i32 = arith.constant 0 : i32
    %c0_i32_0 = arith.constant 0 : i32
    %c0_i32_1 = arith.constant 0 : i32
    return %c0_i32, %c0_i32_0 : i32, i32
  }
  func.func @transform_9(%arg0: i32) -> (i32, i32) {
    %c0_i32 = arith.constant 0 : i32
    %c0_i32_0 = arith.constant 0 : i32
    %c0_i32_1 = arith.constant 0 : i32
    return %c0_i32, %c0_i32_0 : i32, i32
  }
  func.func @transform_10(%arg0: i32) -> (i32, i32) {
    %c0_i32 = arith.constant 0 : i32
    %c0_i32_0 = arith.constant 0 : i32
    %c0_i32_1 = arith.constant 0 : i32
    return %c0_i32, %c0_i32_0 : i32, i32
  }
  func.func @transform_11(%arg0: i32) -> (i32, i32) {
    %c0_i32 = arith.constant 0 : i32
    %c0_i32_0 = arith.constant 0 : i32
    %c0_i32_1 = arith.constant 0 : i32
    return %c0_i32, %c0_i32_0 : i32, i32
  }
  func.func @transform_12(%arg0: i32) -> (i32, i32, i32) {
    %c0_i32 = arith.constant 0 : i32
    %c0_i32_0 = arith.constant 0 : i32
    %c0_i32_1 = arith.constant 0 : i32
    %c0_i32_2 = arith.constant 0 : i32
    return %c0_i32, %c0_i32_0, %c0_i32_1 : i32, i32, i32
  }
  func.func @transform_13(%arg0: i32) -> (i32, i32, i32, i32) {
    %c0_i32 = arith.constant 0 : i32
    %c0_i32_0 = arith.constant 0 : i32
    %c0_i32_1 = arith.constant 0 : i32
    %c0_i32_2 = arith.constant 0 : i32
    return %arg0, %c0_i32, %c0_i32_0, %c0_i32_1 : i32, i32, i32, i32
  }
}

</mosaic_0001>

<bundles_post_ra>
// kernel: densenet_block_pallas.1
= control target key start
LH: loop header
LB: loop body
LE: loop exit
PB: predicated region body
PF: predicated region fallthrough
CT: control target
= control target key end

     0   :  { %s4422_s25 = smov 0   ;;  %s6042_s0 = inlined_call_operand.vmem [shape: f32[2,16,16,4], index: 0, kind: input, shape index: {}]   ;;  %s6043_s1 = inlined_call_operand.vmem [shape: f32[1,128], index: 1, kind: input, shape index: {}]   ;;  %s6044_s2 = inlined_call_operand.vmem [shape: f32[1,128], index: 2, kind: input, shape index: {}]   ;;  %s6045_s3 = inlined_call_operand.vmem [shape: bf16[128,16], index: 3, kind: input, shape index: {}]   ;;  %s6046_s4 = inlined_call_operand.vmem [shape: f32[1,16], index: 4, kind: input, shape index: {}]   ;;  %s6047_s5 = inlined_call_operand.vmem [shape: f32[1,16], index: 5, kind: input, shape index: {}]   ;;  %s6048_s6 = inlined_call_operand.vmem [shape: bf16[3,16,12], index: 6, kind: input, shape index: {}]   ;;  %s6049_s7 = inlined_call_operand.vmem [shape: f32[1,128], index: 7, kind: input, shape index: {}]   ;;  %s6050_s8 = inlined_call_operand.vmem [shape: f32[1,128], index: 8, kind: input, shape index: {}]   ;;  %s6051_s9 = inlined_call_operand.vmem [shape: bf16[128,16], index: 9, kind: input, shape index: {}]   ;;  %s6052_s10 = inlined_call_operand.vmem [shape: f32[1,16], index: 10, kind: input, shape index: {}]   ;;  %s6053_s11 = inlined_call_operand.vmem [shape: f32[1,16], index: 11, kind: input, shape index: {}]   ;;  %s6054_s12 = inlined_call_operand.vmem [shape: bf16[3,16,12], index: 12, kind: input, shape index: {}]   ;;  %s6055_s13 = inlined_call_operand.vmem [shape: f32[2,16,16,12], index: 13, kind: output, shape index: {}]  }
   0x1 LB: > { %s3905_s26 = sadd.s32 4294967295, %s4348_s25   ;;  %p3909_p0 = scmp.ge.s32.totalorder %s4348_s25, 1  ;;  %s4348_s25 = sphi %s4422_s25, %s23_s25  }
   0x2   : > { %p387_p1 = scmp.lt.s32.totalorder %s4348_s25, 3 }
   0x4   : > { %p388_p2 = pnand %p3909_p0, %p387_p1 }
   0x6   : > { %391 = sbr.rel (%p388_p2) target bundleno = 1282 (0x502), region = 72 }
   0xb   : > { %v4113_v0 = vld [vmem:[%s6045_s3 + $0x38] sm:$0xff]  ;;  %p431_p3 = scmp.lt.s32.totalorder %s3905_s26, 1  ;;  %v4112_v1 = vld [vmem:[%s6045_s3 + $0x30] sm:$0xff]  ;;  %v4111_v2 = vld [vmem:[%s6045_s3 + $0x28] sm:$0xff]  ;;  %vm586_vm0 = vcmask 31744   ;;  %vm1323_vm1 = vcmask 130048  }
   0xc   : > { %1012 = vmatpush.bf16.msra.mxu0 %v4113_v0  ;;  %v4110_v18 = vld [vmem:[%s6045_s3 + $0x20] sm:$0xff]  ;;  %v4109_v26 = vld [vmem:[%s6045_s3 + $0x18] sm:$0xff]  ;;  %v4108_v39 = vld [vmem:[%s6045_s3 + $0x10] sm:$0xff]  ;;  %vm1713_vm2 = vcmask 1040384   ;;  %s4350_s28 = smov 4   ;;  %vm1938_vm3 = vcmask 1046528  }
   0xd   : > { %s6084_s26 = smov (!%p431_p3, %s3905_s26), 1  ;;  %v4107_v42 = vld [vmem:[%s6045_s3 + $0x8] sm:$0xff]  ;;  %v4475_v47 = vld [vmem:[%s6043_s1] ss:$0 sm:$0xff]  ;;  %s4351_s14 = smov 124   ;;  %vm2195_vm4 = vcmask 60448  }
   0xe   : > { %s4104_s16 = sshll.u32 %s6084_s26, 8  ;;  %v4106_v48 = vld [vmem:[%s6045_s3] sm:$0xff]  ;;  %vm3784_vm5 = vcmask 64512   ;;  %vm3817_vm6 = vcmask 97280  }
   0xf   : > { %s4447_s19 = scalar_lea.vmem %s6042_s0, %s4104_s16  ;;  %v4483_v54 = vld [vmem:[%s6044_s2] ss:$0 sm:$0xff]  ;;  %s5763_s30 = scalar_lea.vmem %s6055_s13, %s4104_s16 }
  0x10   : > { %1013 = vmatpush.bf16.msra.mxu0 %v4112_v1  ;;  %v442_v3 = vld [vmem:[%s4447_s19] sm:$0xff]  ;;  %v443_v4 = vld [vmem:[%s4447_s19 + $0x8] sm:$0xff]  ;;  %v444_v5 = vld [vmem:[%s4447_s19 + $0x10] sm:$0xff] }
  0x11   : > { %v474_v6 = vpack.c.bf16 %v442_v3, %v442_v3  ;;  %v475_v7 = vpack.c.bf16 %v443_v4, %v443_v4  ;;  %v445_v8 = vld [vmem:[%s4447_s19 + $0x18] sm:$0xff]  ;;  %v476_v9 = vpack.c.bf16 %v444_v5, %v444_v5  ;;  %v446_v10 = vld [vmem:[%s4447_s19 + $0x20] sm:$0xff]  ;;  %v447_v11 = vld [vmem:[%s4447_s19 + $0x28] sm:$0xff] }
  0x12   : > { %v477_v12 = vpack.c.bf16 %v445_v8, %v445_v8  ;;  %v478_v13 = vpack.c.bf16 %v446_v10, %v446_v10  ;;  %v479_v14 = vpack.c.bf16 %v447_v11, %v447_v11  ;;  %v448_v43 = vld [vmem:[%s4447_s19 + $0x30] sm:$0xff]  ;;  %v449_v44 = vld [vmem:[%s4447_s19 + $0x38] sm:$0xff]  ;;  %v451_v10 = vld [vmem:[%s4447_s19 + $0x48] sm:$0xff] }
  0x13   : > { %v538_v15 = vunpack.c.l.b16 %v474_v6  ;;  %v539_v16 = vunpack.c.l.b16 %v475_v7  ;;  %v540_v17 = vunpack.c.l.b16 %v476_v9  ;;  %v480_v45 = vpack.c.bf16 %v448_v43, %v448_v43  ;;  %v450_v9 = vld [vmem:[%s4447_s19 + $0x40] sm:$0xff] }
  0x14   : > { %1014 = vmatpush.bf16.msra.mxu0 %v4111_v2  ;;  %v541_v19 = vunpack.c.l.b16 %v477_v12  ;;  %v542_v20 = vunpack.c.l.b16 %v478_v13  ;;  %v543_v21 = vunpack.c.l.b16 %v479_v14  ;;  %v481_v46 = vpack.c.bf16 %v449_v44, %v449_v44 }
  0x15   : > { %v570_v22 = vpack.c.b16 %v539_v16, %v538_v15  ;;  %v544_v50 = vunpack.c.l.b16 %v480_v45  ;;  %v482_v11 = vpack.c.bf16 %v450_v9, %v450_v9  ;;  %v483_v12 = vpack.c.bf16 %v451_v10, %v451_v10 }
  0x16   : > { %v571_v23 = vpack.c.b16 %v541_v19, %v540_v17  ;;  %v572_v24 = vpack.c.b16 %v543_v21, %v542_v20  ;;  %v545_v51 = vunpack.c.l.b16 %v481_v46 }
  0x17   : > { %v589_v25 = vsel %vm586_vm0, %v570_v22, 0  ;;  %v546_v15 = vunpack.c.l.b16 %v482_v11  ;;  %v547_v16 = vunpack.c.l.b16 %v483_v12 }
  0x18   : > { %1015 = vmatpush.bf16.msra.mxu0 %v4110_v18  ;;  %v636_v27 = vunpack.c.l.b16 %v589_v25  ;;  %v637_v28 = vunpack.c.h.b16 %v589_v25  ;;  %v591_v29 = vsel %vm586_vm0, %v571_v23, 0  ;;  %v593_v30 = vsel %vm586_vm0, %v572_v24, 0 }
  0x19   : > { %v638_v31 = vunpack.c.l.b16 %v591_v29  ;;  %v639_v32 = vunpack.c.h.b16 %v591_v29  ;;  %v640_v33 = vunpack.c.l.b16 %v593_v30  ;;  %v641_v34 = vunpack.c.h.b16 %v593_v30 }
  0x1a   : > { %v668_v35 = vpack.c.b16 %v636_v27, %v636_v27  ;;  %v669_v36 = vpack.c.b16 %v637_v28, %v637_v28  ;;  %v573_v55 = vpack.c.b16 %v545_v51, %v544_v50  ;;  %v574_v17 = vpack.c.b16 %v547_v16, %v546_v15 }
  0x1b   : > { %v670_v37 = vpack.c.b16 %v638_v31, %v638_v31  ;;  %v671_v38 = vpack.c.b16 %v639_v32, %v639_v32  ;;  %v672_v40 = vpack.c.b16 %v640_v33, %v640_v33  ;;  %v673_v41 = vpack.c.b16 %v641_v34, %v641_v34  ;;  %v452_v31 = vld [vmem:[%s4447_s19 + $0x50] sm:$0xff]  ;;  %v453_v32 = vld [vmem:[%s4447_s19 + $0x58] sm:$0xff] }
  0x1c   : > { %1016 = vmatpush.bf16.msra.mxu0 %v4109_v26  ;;  %732 = vst [vmem:[#allocation2] sm:$0xf] %v668_v35  ;;  %v595_v59 = vsel %vm586_vm0, %v573_v55, 0  ;;  %v597_v21 = vsel %vm586_vm0, %v574_v17, 0  ;;  %v484_v33 = vpack.c.bf16 %v452_v31, %v452_v31  ;;  %v485_v34 = vpack.c.bf16 %v453_v32, %v453_v32  ;;  %v454_v55 = vld [vmem:[%s4447_s19 + $0x60] sm:$0xff] }
  0x1d   : > { %733 = vst [vmem:[#allocation2 + $0x4] sm:$0xf] %v669_v36  ;;  %v642_v62 = vunpack.c.l.b16 %v595_v59  ;;  %v643_v63 = vunpack.c.h.b16 %v595_v59  ;;  %v644_v22 = vunpack.c.l.b16 %v597_v21  ;;  %v645_v23 = vunpack.c.h.b16 %v597_v21 }
  0x1e   : > { %734 = vst [vmem:[#allocation2 + $0x8] sm:$0xf] %v670_v37  ;;  %v548_v37 = vunpack.c.l.b16 %v484_v33  ;;  %v486_v59 = vpack.c.bf16 %v454_v55, %v454_v55 }
  0x1f   : > { %735 = vst [vmem:[#allocation2 + $0xc] sm:$0xf] %v671_v38  ;;  %v674_v4 = vpack.c.b16 %v642_v62, %v642_v62  ;;  %v675_v5 = vpack.c.b16 %v643_v63, %v643_v63  ;;  %v676_v27 = vpack.c.b16 %v644_v22, %v644_v22  ;;  %v677_v28 = vpack.c.b16 %v645_v23, %v645_v23 }
  0x20   : > { %1017 = vmatpush.bf16.msra.mxu0 %v4108_v39  ;;  %736 = vst [vmem:[#allocation2 + $0x10] sm:$0xf] %v672_v40  ;;  %v549_v38 = vunpack.c.l.b16 %v485_v34 }
  0x21   : > { %737 = vst [vmem:[#allocation2 + $0x14] sm:$0xf] %v673_v41 }
  0x22   : > { %738 = vst [vmem:[#allocation2 + $0x18] sm:$0xf] %v674_v4  ;;  %v575_v39 = vpack.c.b16 %v549_v38, %v548_v37 }
  0x23   : > { %739 = vst [vmem:[#allocation2 + $0x1c] sm:$0xf] %v675_v5 }
  0x24   : > { %1018 = vmatpush.bf16.msra.mxu0 %v4107_v42  ;;  %v4129_v49 = vld [vmem:[#allocation2] sm:$0xff]   ;;  %740 = vst [vmem:[#allocation2 + $0x20] sm:$0xf] %v676_v27  ;;  %v599_v43 = vsel %vm586_vm0, %v575_v39, 0 }
  0x25   : > { %v4130_v52 = vunpack.c.l.bf16 %v4129_v49  ;;  %v4131_v53 = vunpack.c.h.bf16 %v4129_v49  ;;  %741 = vst [vmem:[#allocation2 + $0x24] sm:$0xf] %v677_v28  ;;  %v646_v44 = vunpack.c.l.b16 %v599_v43  ;;  %v647_v45 = vunpack.c.h.b16 %v599_v43 }
  0x26   : > { %v4256_v58 = vld [vmem:[#allocation2 + $0x8] sm:$0xff]  }
  0x27   : > { %v832_v56 = vmul.f32 %v4475_v47, %v4130_v52  ;;  %v833_v57 = vmul.f32 %v4475_v47, %v4131_v53  ;;  %v4134_v2 = vunpack.c.l.bf16 %v4256_v58  ;;  %v4135_v3 = vunpack.c.h.bf16 %v4256_v58 }
  0x28   : > { %1019 = vmatpush.bf16.msra.mxu0 %v4106_v48  ;;  %v4257_v20 = vld [vmem:[#allocation2 + $0x10] sm:$0xff]   ;;  %v678_v50 = vpack.c.b16 %v646_v44, %v646_v44  ;;  %v679_v51 = vpack.c.b16 %v647_v45, %v647_v45 }
  0x29   : > { %v868_v60 = vadd.f32 %v4483_v54, %v832_v56  ;;  %v869_v61 = vadd.f32 %v4483_v54, %v833_v57  ;;  %v834_v7 = vmul.f32 %v4475_v47, %v4134_v2  ;;  %v835_v8 = vmul.f32 %v4475_v47, %v4135_v3  ;;  %v455_v56 = vld [vmem:[%s4447_s19 + $0x68] sm:$0xff] }
  0x2a   : > { %v4138_v24 = vunpack.c.l.bf16 %v4257_v20  ;;  %v4139_v26 = vunpack.c.h.bf16 %v4257_v20  ;;  %v4258_v42 = vld [vmem:[#allocation2 + $0x18] sm:$0xff]   ;;  %742 = vst [vmem:[#allocation2 + $0x28] sm:$0xf] %v678_v50 }
  0x2b   : > { %v900_v0 = vmax.f32 %v868_v60, 0.0  ;;  %v901_v1 = vmax.f32 %v869_v61, 0.0  ;;  %v870_v13 = vadd.f32 %v4483_v54, %v834_v7  ;;  %v871_v14 = vadd.f32 %v4483_v54, %v835_v8  ;;  %743 = vst [vmem:[#allocation2 + $0x2c] sm:$0xf] %v679_v51 }
  0x2c   : > { %v836_v29 = vmul.f32 %v4475_v47, %v4138_v24  ;;  %v837_v30 = vmul.f32 %v4475_v47, %v4139_v26  ;;  %v4142_v46 = vunpack.c.l.bf16 %v4258_v42  ;;  %v4143_v48 = vunpack.c.h.bf16 %v4258_v42  ;;  %v4259_v2 = vld [vmem:[#allocation2 + $0x20] sm:$0xff]  }
  0x2d   : > { %v932_v6 = vpack.c.bf16 %v901_v1, %v900_v0  ;;  %v902_v18 = vmax.f32 %v870_v13, 0.0  ;;  %v903_v19 = vmax.f32 %v871_v14, 0.0  ;;  %v487_v60 = vpack.c.bf16 %v455_v56, %v455_v56  ;;  %v456_v13 = vld [vmem:[%s4447_s19 + $0x70] sm:$0xff]  ;;  %v457_v14 = vld [vmem:[%s4447_s19 + $0x78] sm:$0xff] }
  0x2e   : > { %v872_v35 = vadd.f32 %v4483_v54, %v836_v29  ;;  %v873_v36 = vadd.f32 %v4483_v54, %v837_v30  ;;  %v838_v52 = vmul.f32 %v4475_v47, %v4142_v46  ;;  %v839_v53 = vmul.f32 %v4475_v47, %v4143_v48 }
  0x2f   : > { %1020 = vmatmul.bf16.vlgmr.msra.gmra.mxu0 %v932_v6  ;;  %v933_v25 = vpack.c.bf16 %v903_v19, %v902_v18  ;;  %v550_v61 = vunpack.c.l.b16 %v486_v59  ;;  %v551_v62 = vunpack.c.l.b16 %v487_v60  ;;  %v4146_v7 = vunpack.c.l.bf16 %v4259_v2  ;;  %v460_v59 = vld [vmem:[%s4447_s19 + $0x90] sm:$0xff]  ;;  %v461_v60 = vld [vmem:[%s4447_s19 + $0x98] sm:$0xff] }
  0x30   : > { %v904_v40 = vmax.f32 %v872_v35, 0.0  ;;  %v905_v41 = vmax.f32 %v873_v36, 0.0  ;;  %v874_v57 = vadd.f32 %v4483_v54, %v838_v52  ;;  %v875_v58 = vadd.f32 %v4483_v54, %v839_v53  ;;  %v458_v35 = vld [vmem:[%s4447_s19 + $0x80] sm:$0xff]  ;;  %v459_v36 = vld [vmem:[%s4447_s19 + $0x88] sm:$0xff] }
  0x31   : > { %v576_v1 = vpack.c.b16 %v551_v62, %v550_v61  ;;  %v4147_v8 = vunpack.c.h.bf16 %v4259_v2  ;;  %v840_v11 = vmul.f32 %v4475_v47, %v4146_v7  ;;  %v488_v15 = vpack.c.bf16 %v456_v13, %v456_v13 }
  0x32   : > { %v934_v49 = vpack.c.bf16 %v905_v41, %v904_v40  ;;  %v906_v63 = vmax.f32 %v874_v57, 0.0  ;;  %v907_v0 = vmax.f32 %v875_v58, 0.0  ;;  %v489_v16 = vpack.c.bf16 %v457_v14, %v457_v14  ;;  %v4260_v24 = vld [vmem:[#allocation2 + $0x28] sm:$0xff]  }
  0x33   : > { %v601_v3 = vsel %vm586_vm0, %v576_v1, 0  ;;  %v841_v12 = vmul.f32 %v4475_v47, %v4147_v8  ;;  %v876_v17 = vadd.f32 %v4483_v54, %v840_v11  ;;  %v552_v19 = vunpack.c.l.b16 %v488_v15 }
  0x34   : > { %v648_v4 = vunpack.c.l.b16 %v601_v3  ;;  %v649_v5 = vunpack.c.h.b16 %v601_v3  ;;  %v935_v6 = vpack.c.bf16 %v907_v0, %v906_v63  ;;  %v553_v20 = vunpack.c.l.b16 %v489_v16 }
  0x35   : > { %v877_v18 = vadd.f32 %v4483_v54, %v841_v12  ;;  %v908_v22 = vmax.f32 %v876_v17, 0.0  ;;  %v4150_v28 = vunpack.c.l.bf16 %v4260_v24  ;;  %v4151_v29 = vunpack.c.h.bf16 %v4260_v24  ;;  %v462_v17 = vld [vmem:[%s4447_s19 + $0xa0] sm:$0xff] }
  0x36   : > { %v680_v9 = vpack.c.b16 %v648_v4, %v648_v4  ;;  %v681_v10 = vpack.c.b16 %v649_v5, %v649_v5  ;;  %v577_v21 = vpack.c.b16 %v553_v20, %v552_v19  ;;  %v490_v39 = vpack.c.bf16 %v458_v35, %v458_v35 }
  0x37   : > { %v909_v23 = vmax.f32 %v877_v18, 0.0  ;;  %v842_v33 = vmul.f32 %v4475_v47, %v4150_v28  ;;  %v843_v34 = vmul.f32 %v4475_v47, %v4151_v29  ;;  %v491_v40 = vpack.c.bf16 %v459_v36, %v459_v36  ;;  %v463_v18 = vld [vmem:[%s4447_s19 + $0xa8] sm:$0xff] }
  0x38   : > { %744 = vst [vmem:[#allocation2 + $0x30] sm:$0xf] %v680_v9  ;;  %v554_v41 = vunpack.c.l.b16 %v490_v39  ;;  %v492_v61 = vpack.c.bf16 %v460_v59, %v460_v59  ;;  %v493_v62 = vpack.c.bf16 %v461_v60, %v461_v60 }
  0x39   : > { %745 = vst [vmem:[#allocation2 + $0x34] sm:$0xf] %v681_v10  ;;  %v936_v30 = vpack.c.bf16 %v909_v23, %v908_v22  ;;  %v878_v37 = vadd.f32 %v4483_v54, %v842_v33  ;;  %v879_v38 = vadd.f32 %v4483_v54, %v843_v34  ;;  %v555_v42 = vunpack.c.l.b16 %v491_v40 }
  0x3a   : > { %v556_v1 = vunpack.c.l.b16 %v492_v61  ;;  %v557_v2 = vunpack.c.l.b16 %v493_v62  ;;  %v495_v22 = vpack.c.bf16 %v463_v18, %v463_v18 }
  0x3b   : > { %v910_v43 = vmax.f32 %v878_v37, 0.0  ;;  %v911_v44 = vmax.f32 %v879_v38, 0.0  ;;  %v578_v45 = vpack.c.b16 %v555_v42, %v554_v41  ;;  %v4115_v37 = vld [vmem:[%s6048_s6] sm:$0xff]  ;;  %v4114_v38 = vld [vmem:[%s6048_s6 + $0x8] sm:$0xff]  ;;  %v464_v41 = vld [vmem:[%s4447_s19 + $0xb0] sm:$0xff] }
  0x3c   : > { %v579_v3 = vpack.c.b16 %v557_v2, %v556_v1  ;;  %v559_v24 = vunpack.c.l.b16 %v495_v22  ;;  %1376 = vmatpush.bf16.msra.mxu1 %v4115_v37  ;;  %1567 = vmatpush.bf16.msra.mxu3 %v4114_v38  ;;  %v465_v42 = vld [vmem:[%s4447_s19 + $0xb8] sm:$0xff] }
  0x3d   : > { %v605_v48 = vsel %vm586_vm0, %v578_v45, 0  ;;  %v937_v51 = vpack.c.bf16 %v911_v44, %v910_v43  ;;  %v496_v45 = vpack.c.bf16 %v464_v41, %v464_v41 }
  0x3e   : > { %v653_v50 = vunpack.c.h.b16 %v605_v48  ;;  %v607_v7 = vsel %vm586_vm0, %v579_v3, 0  ;;  %v4564_v3 = vld [vmem:[%s6047_s5] ss:$0 sm:$0xff] }
  0x3f   : > { %1025 = vmatmul.bf16.gmra.mxu0 %v933_v25  ;;  %v603_v25 = vsel %vm586_vm0, %v577_v21, 0  ;;  %v654_v8 = vunpack.c.l.b16 %v607_v7  ;;  %v655_v9 = vunpack.c.h.b16 %v607_v7  ;;  %v494_v21 = vpack.c.bf16 %v462_v17, %v462_v17  ;;  %v466_v7 = vld [vmem:[%s4447_s19 + $0xc0] sm:$0xff] }
  0x40   : > { %v650_v26 = vunpack.c.l.b16 %v603_v25  ;;  %v651_v27 = vunpack.c.h.b16 %v603_v25  ;;  %v4261_v46 = vld [vmem:[#allocation2 + $0x30] sm:$0xff]   ;;  %v685_v56 = vpack.c.b16 %v653_v50, %v653_v50 }
  0x41   : > { %v4154_v52 = vunpack.c.l.bf16 %v4261_v46  ;;  %v4155_v53 = vunpack.c.h.bf16 %v4261_v46  ;;  %v686_v13 = vpack.c.b16 %v654_v8, %v654_v8  ;;  %v687_v14 = vpack.c.b16 %v655_v9, %v655_v9  ;;  %v467_v8 = vld [vmem:[%s4447_s19 + $0xc8] sm:$0xff] }
  0x42   : > { %v682_v31 = vpack.c.b16 %v650_v26, %v650_v26  ;;  %v683_v32 = vpack.c.b16 %v651_v27, %v651_v27  ;;  %749 = vst [vmem:[#allocation2 + $0x44] sm:$0xf] %v685_v56  ;;  %v558_v23 = vunpack.c.l.b16 %v494_v21  ;;  %v497_v46 = vpack.c.bf16 %v465_v42, %v465_v42  ;;  %v468_v42 = vld [vmem:[%s4447_s19 + $0xd0] sm:$0xff] }
  0x43   : > { %v844_v57 = vmul.f32 %v4475_v47, %v4154_v52  ;;  %v845_v58 = vmul.f32 %v4475_v47, %v4155_v53  ;;  %750 = vst [vmem:[#allocation2 + $0x48] sm:$0xf] %v686_v13 }
  0x44   : > { %746 = vst [vmem:[#allocation2 + $0x38] sm:$0xf] %v682_v31  ;;  %v580_v27 = vpack.c.b16 %v559_v24, %v558_v23 }
  0x45   : > { %747 = vst [vmem:[#allocation2 + $0x3c] sm:$0xf] %v683_v32  ;;  %v880_v63 = vadd.f32 %v4483_v54, %v844_v57  ;;  %v881_v0 = vadd.f32 %v4483_v54, %v845_v58 }
  0x46   : > { %751 = vst [vmem:[#allocation2 + $0x4c] sm:$0xf] %v687_v14  ;;  %v609_v29 = vsel %vm586_vm0, %v580_v27, 0 }
  0x47   : > { %v912_v4 = vmax.f32 %v880_v63, 0.0  ;;  %v913_v5 = vmax.f32 %v881_v0, 0.0  ;;  %v657_v31 = vunpack.c.h.b16 %v609_v29  ;;  %v4116_v63 = vld [vmem:[%s6048_s6 + $0x10] sm:$0xff] }
  0x48   : > { %1477 = vmatpush.bf16.msra.mxu2 %v4116_v63 }
  0x49   : > { %v938_v12 = vpack.c.bf16 %v913_v5, %v912_v4  ;;  %v689_v36 = vpack.c.b16 %v657_v31, %v657_v31 }
  0x4b   : > { %753 = vst [vmem:[#allocation2 + $0x54] sm:$0xf] %v689_v36 }
  0x4d   : > { %v4264_v53 = vld [vmem:[#allocation2 + $0x48] sm:$0xff]  }
  0x4e   : > { %v4166_v60 = vunpack.c.l.bf16 %v4264_v53  ;;  %v4167_v61 = vunpack.c.h.bf16 %v4264_v53 }
  0x4f   : > { %1030 = vmatmul.bf16.gmra.mxu0 %v934_v49  ;;  %v652_v49 = vunpack.c.l.b16 %v605_v48  ;;  %v560_v48 = vunpack.c.l.b16 %v496_v45 }
  0x50   : > { %v850_v4 = vmul.f32 %v4475_v47, %v4166_v60  ;;  %v851_v5 = vmul.f32 %v4475_v47, %v4167_v61 }
  0x51   : > { %v684_v55 = vpack.c.b16 %v652_v49, %v652_v49  ;;  %v561_v49 = vunpack.c.l.b16 %v497_v46  ;;  %v500_v46 = vpack.c.bf16 %v468_v42, %v468_v42 }
  0x52   : > { %v886_v9 = vadd.f32 %v4483_v54, %v850_v4 }
  0x53   : > { %748 = vst [vmem:[#allocation2 + $0x40] sm:$0xf] %v684_v55  ;;  %v581_v52 = vpack.c.b16 %v561_v49, %v560_v48  ;;  %v4554_v55 = vld [vmem:[%s6046_s4] ss:$0 sm:$0xff] }
  0x55   : > { %v611_v56 = vsel %vm586_vm0, %v581_v52, 0  ;;  %v564_v52 = vunpack.c.l.b16 %v500_v46 }
  0x56   : > { %v658_v57 = vunpack.c.l.b16 %v611_v56  ;;  %v659_v58 = vunpack.c.h.b16 %v611_v56 }
  0x58   : > { %v690_v0 = vpack.c.b16 %v658_v57, %v658_v57  ;;  %v691_v1 = vpack.c.b16 %v659_v58, %v659_v58 }
  0x5a   : > { %v4263_v28 = vld [vmem:[#allocation2 + $0x40] sm:$0xff]   ;;  %754 = vst [vmem:[#allocation2 + $0x58] sm:$0xf] %v690_v0 }
  0x5b   : > { %v4162_v33 = vunpack.c.l.bf16 %v4263_v28  ;;  %v4163_v34 = vunpack.c.h.bf16 %v4263_v28  ;;  %755 = vst [vmem:[#allocation2 + $0x5c] sm:$0xf] %v691_v1 }
  0x5d   : > { %v848_v39 = vmul.f32 %v4475_v47, %v4162_v33  ;;  %v849_v40 = vmul.f32 %v4475_v47, %v4163_v34 }
  0x5f   : > { %1035 = vmatmul.bf16.gmra.mxu0 %v935_v6  ;;  %v4262_v6 = vld [vmem:[#allocation2 + $0x38] sm:$0xff]   ;;  %v884_v43 = vadd.f32 %v4483_v54, %v848_v39  ;;  %v885_v44 = vadd.f32 %v4483_v54, %v849_v40 }
  0x60   : > { %v4158_v10 = vunpack.c.l.bf16 %v4262_v6  ;;  %v4159_v11 = vunpack.c.h.bf16 %v4262_v6 }
  0x61   : > { %v916_v50 = vmax.f32 %v884_v43, 0.0  ;;  %v469_v43 = vld [vmem:[%s4447_s19 + $0xd8] sm:$0xff] }
  0x62   : > { %v846_v15 = vmul.f32 %v4475_v47, %v4158_v10  ;;  %v847_v16 = vmul.f32 %v4475_v47, %v4159_v11  ;;  %v887_v10 = vadd.f32 %v4483_v54, %v851_v5  ;;  %v498_v11 = vpack.c.bf16 %v466_v7, %v466_v7  ;;  %v4266_v60 = vld [vmem:[#allocation2 + $0x58] sm:$0xff]  }
  0x63   : > { %v501_v48 = vpack.c.bf16 %v469_v43, %v469_v43  ;;  %v4174_v5 = vunpack.c.l.bf16 %v4266_v60 }
  0x64   : > { %v882_v19 = vadd.f32 %v4483_v54, %v846_v15  ;;  %v883_v20 = vadd.f32 %v4483_v54, %v847_v16  ;;  %v562_v16 = vunpack.c.l.b16 %v498_v11 }
  0x65   : > { %v565_v53 = vunpack.c.l.b16 %v501_v48 }
  0x66   : > { %v914_v25 = vmax.f32 %v882_v19, 0.0  ;;  %v915_v26 = vmax.f32 %v883_v20, 0.0  ;;  %v918_v19 = vmax.f32 %v886_v9, 0.0  ;;  %v919_v20 = vmax.f32 %v887_v10, 0.0 }
  0x68   : > { %v939_v32 = vpack.c.bf16 %v915_v26, %v914_v25 }
  0x6f   : > { %1040 = vmatmul.bf16.gmra.mxu0 %v936_v30  ;;  %v656_v30 = vunpack.c.l.b16 %v609_v29  ;;  %v941_v29 = vpack.c.bf16 %v919_v20, %v918_v19 }
  0x71   : > { %v688_v35 = vpack.c.b16 %v656_v30, %v656_v30 }
  0x73   : > { %752 = vst [vmem:[#allocation2 + $0x50] sm:$0xf] %v688_v35 }
  0x7a   : > { %v4265_v22 = vld [vmem:[#allocation2 + $0x50] sm:$0xff]  }
  0x7b   : > { %v4170_v30 = vunpack.c.l.bf16 %v4265_v22  ;;  %v4171_v31 = vunpack.c.h.bf16 %v4265_v22 }
  0x7d   : > { %v852_v39 = vmul.f32 %v4475_v47, %v4170_v30  ;;  %v853_v40 = vmul.f32 %v4475_v47, %v4171_v31 }
  0x7f   : > { %1045 = vmatmul.bf16.gmra.mxu0 %v937_v51  ;;  %v917_v51 = vmax.f32 %v885_v44, 0.0  ;;  %v888_v44 = vadd.f32 %v4483_v54, %v852_v39  ;;  %v889_v45 = vadd.f32 %v4483_v54, %v853_v40 }
  0x81   : > { %v940_v59 = vpack.c.bf16 %v917_v51, %v916_v50  ;;  %v920_v57 = vmax.f32 %v888_v44, 0.0  ;;  %v921_v58 = vmax.f32 %v889_v45, 0.0 }
  0x83   : > { %v942_v4 = vpack.c.bf16 %v921_v58, %v920_v57 }
  0x8f   : > { %1050 = vmatmul.bf16.gmra.mxu0 %v938_v12  ;;  %v499_v12 = vpack.c.bf16 %v467_v8, %v467_v8 }
  0x91   : > { %v563_v17 = vunpack.c.l.b16 %v499_v12 }
  0x93   : > { %v582_v21 = vpack.c.b16 %v563_v17, %v562_v16  ;;  %v470_v17 = vld [vmem:[%s4447_s19 + $0xe0] sm:$0xff] }
  0x95   : > { %v613_v25 = vsel %vm586_vm0, %v582_v21, 0  ;;  %v502_v21 = vpack.c.bf16 %v470_v17, %v470_v17 }
  0x96   : > { %v660_v26 = vunpack.c.l.b16 %v613_v25  ;;  %v661_v27 = vunpack.c.h.b16 %v613_v25 }
  0x98   : > { %v692_v33 = vpack.c.b16 %v660_v26, %v660_v26  ;;  %v693_v34 = vpack.c.b16 %v661_v27, %v661_v27  ;;  %v566_v26 = vunpack.c.l.b16 %v502_v21 }
  0x9a   : > { %756 = vst [vmem:[#allocation2 + $0x60] sm:$0xf] %v692_v33 }
  0x9b   : > { %757 = vst [vmem:[#allocation2 + $0x64] sm:$0xf] %v693_v34 }
  0x9f   : > { %1055 = vmatmul.bf16.gmra.mxu0 %v939_v32 }
  0xac   : > { %v1021_v62 = vpop.f32.mrf.mxu0 }
  0xad   : > { %v1105_v2 = vmul.f32 %v4554_v55, %v1021_v62 }
  0xaf   : > { %1060 = vmatmul.bf16.gmra.mxu0 %v940_v59  ;;  %v1141_v6 = vadd.f32 %v4564_v3, %v1105_v2  ;;  %v583_v59 = vpack.c.b16 %v565_v53, %v564_v52  ;;  %v472_v53 = vld [vmem:[%s4447_s19 + $0xf0] sm:$0xff] }
  0xb1   : > { %v1173_v14 = vmax.f32 %v1141_v6, 0.0  ;;  %v615_v63 = vsel %vm586_vm0, %v583_v59, 0  ;;  %v4175_v6 = vunpack.c.h.bf16 %v4266_v60  ;;  %v504_v59 = vpack.c.bf16 %v472_v53, %v472_v53 }
  0xb2   : > { %v662_v0 = vunpack.c.l.b16 %v615_v63  ;;  %v663_v1 = vunpack.c.h.b16 %v615_v63 }
  0xb3   : > { %v1205_v23 = vpack.c.bf16 %v1173_v14, %v1173_v14  ;;  %v854_v14 = vmul.f32 %v4475_v47, %v4174_v5 }
  0xb4   : > { %v1023_v13 = vpop.f32.mrf.mxu0  ;;  %v694_v8 = vpack.c.b16 %v662_v0, %v662_v0  ;;  %v695_v9 = vpack.c.b16 %v663_v1, %v663_v1  ;;  %v4124_v0 = vld [vmem:[%s6051_s9 + $0x38] sm:$0xff]  ;;  %v568_v1 = vunpack.c.l.b16 %v504_v59  ;;  %v4123_v59 = vld [vmem:[%s6051_s9 + $0x30] sm:$0xff] }
  0xb5   : > { %v1106_v15 = vmul.f32 %v4554_v55, %v1023_v13  ;;  %v1272_v35 = vunpack.c.l.b16 %v1205_v23  ;;  %v890_v19 = vadd.f32 %v4483_v54, %v854_v14  ;;  %2476 = vmatpush.bf16.msrb.mxu1 %v4124_v0 }
  0xb6   : > { %758 = vst [vmem:[#allocation2 + $0x68] sm:$0xf] %v694_v8 }
  0xb7   : > { %v1142_v18 = vadd.f32 %v4564_v3, %v1106_v15  ;;  %v855_v15 = vmul.f32 %v4475_v47, %v4175_v6  ;;  %759 = vst [vmem:[#allocation2 + $0x6c] sm:$0xf] %v695_v9 }
  0xb9   : > { %v1174_v24 = vmax.f32 %v1142_v18, 0.0  ;;  %v471_v18 = vld [vmem:[%s4447_s19 + $0xe8] sm:$0xff]  ;;  %v891_v20 = vadd.f32 %v4483_v54, %v855_v15  ;;  %2477 = vmatpush.bf16.msrb.mxu1 %v4123_v59 }
  0xba   : > { %v503_v22 = vpack.c.bf16 %v471_v18, %v471_v18 }
  0xbb   : > { %v1206_v28 = vpack.c.bf16 %v1174_v24, %v1174_v24  ;;  %v923_v30 = vmax.f32 %v891_v20, 0.0 }
  0xbc   : > { %v1026_v32 = vpop.f32.mrf.mxu0  ;;  %v567_v27 = vunpack.c.l.b16 %v503_v22 }
  0xbd   : > { %v1273_v36 = vunpack.c.l.b16 %v1206_v28  ;;  %v1107_v37 = vmul.f32 %v4554_v55, %v1026_v32  ;;  %v4267_v32 = vld [vmem:[#allocation2 + $0x60] sm:$0xff]  }
  0xbe   : > { %v584_v31 = vpack.c.b16 %v567_v27, %v566_v26  ;;  %v4178_v40 = vunpack.c.l.bf16 %v4267_v32  ;;  %v4268_v8 = vld [vmem:[#allocation2 + $0x68] sm:$0xff]  }
  0xbf   : > { %1065 = vmatmul.bf16.gmra.mxu0 %v941_v29  ;;  %v1302_v38 = vpack.c.b16 %v1273_v36, %v1272_v35  ;;  %v1143_v41 = vadd.f32 %v4564_v3, %v1107_v37  ;;  %v922_v29 = vmax.f32 %v890_v19, 0.0  ;;  %v4183_v17 = vunpack.c.h.bf16 %v4268_v8 }
  0xc0   : > { %v617_v35 = vsel %vm586_vm0, %v584_v31, 0 }
  0xc1   : > { %3952 = vmatmul.msk.bf16.vlgmr.msra.gmra.mxu1 %vm1323_vm1, %v1302_v38  ;;  %3992 = vmatmul.msk.bf16.vlgmr.msra.gmra.mxu3 %vm1323_vm1, %v1302_v38  ;;  %v1175_v50 = vmax.f32 %v1143_v41, 0.0  ;;  %v664_v36 = vunpack.c.l.b16 %v617_v35  ;;  %v665_v37 = vunpack.c.h.b16 %v617_v35  ;;  %v943_v39 = vpack.c.bf16 %v923_v30, %v922_v29 }
  0xc2   : > { %v4179_v41 = vunpack.c.h.bf16 %v4267_v32  ;;  %v859_v26 = vmul.f32 %v4475_v47, %v4183_v17 }
  0xc3   : > { %v1207_v61 = vpack.c.bf16 %v1175_v50, %v1175_v50  ;;  %v696_v43 = vpack.c.b16 %v664_v36, %v664_v36  ;;  %v697_v44 = vpack.c.b16 %v665_v37, %v665_v37  ;;  %v856_v50 = vmul.f32 %v4475_v47, %v4178_v40 }
  0xc4   : > { %v1028_v49 = vpop.f32.mrf.mxu0  ;;  %v895_v29 = vadd.f32 %v4483_v54, %v859_v26 }
  0xc5   : > { %v1108_v51 = vmul.f32 %v4554_v55, %v1028_v49  ;;  %v1274_v10 = vunpack.c.l.b16 %v1207_v61  ;;  %760 = vst [vmem:[#allocation2 + $0x70] sm:$0xf] %v696_v43  ;;  %v892_v57 = vadd.f32 %v4483_v54, %v856_v50 }
  0xc6   : > { %761 = vst [vmem:[#allocation2 + $0x74] sm:$0xf] %v697_v44  ;;  %v927_v35 = vmax.f32 %v895_v29, 0.0 }
  0xc7   : > { %v1144_v56 = vadd.f32 %v4564_v3, %v1108_v51  ;;  %v857_v51 = vmul.f32 %v4475_v47, %v4179_v41  ;;  %v924_v5 = vmax.f32 %v892_v57, 0.0 }
  0xc9   : > { %v1176_v62 = vmax.f32 %v1144_v56, 0.0  ;;  %v473_v56 = vld [vmem:[%s4447_s19 + $0xf8] sm:$0xff]  ;;  %v893_v58 = vadd.f32 %v4483_v54, %v857_v51 }
  0xca   : > { %v505_v60 = vpack.c.bf16 %v473_v56, %v473_v56 }
  0xcb   : > { %v1208_v2 = vpack.c.bf16 %v1176_v62, %v1176_v62  ;;  %v925_v6 = vmax.f32 %v893_v58, 0.0 }
  0xcc   : > { %v1031_v7 = vpop.f32.mrf.mxu0 }
  0xcd   : > { %v1275_v11 = vunpack.c.l.b16 %v1208_v2  ;;  %v1109_v12 = vmul.f32 %v4554_v55, %v1031_v7  ;;  %v569_v2 = vunpack.c.l.b16 %v505_v60  ;;  %v944_v15 = vpack.c.bf16 %v925_v6, %v924_v5  ;;  %v4269_v36 = vld [vmem:[#allocation2 + $0x70] sm:$0xff]  }
  0xce   : > { %v4186_v41 = vunpack.c.l.bf16 %v4269_v36 }
  0xcf   : > { %1070 = vmatmul.bf16.gmra.mxu0 %v942_v4  ;;  %v1303_v13 = vpack.c.b16 %v1275_v11, %v1274_v10  ;;  %v1145_v16 = vadd.f32 %v4564_v3, %v1109_v12  ;;  %v585_v7 = vpack.c.b16 %v569_v2, %v568_v1 }
  0xd1   : > { %3953 = vmatmul.msk.bf16.gmra.mxu1 %vm1323_vm1, %v1303_v13  ;;  %3973 = vmatmul.msk.bf16.vlgmr.msra.gmra.mxu2 %vm1323_vm1, %v1303_v13  ;;  %v1177_v24 = vmax.f32 %v1145_v16, 0.0  ;;  %v619_v11 = vsel %vm586_vm0, %v585_v7, 0  ;;  %v4182_v16 = vunpack.c.l.bf16 %v4268_v8 }
  0xd2   : > { %3993 = vmatmul.msk.bf16.gmra.mxu3 %vm1323_vm1, %v1303_v13  ;;  %v666_v12 = vunpack.c.l.b16 %v619_v11  ;;  %v667_v13 = vunpack.c.h.b16 %v619_v11 }
  0xd3   : > { %v1209_v33 = vpack.c.bf16 %v1177_v24, %v1177_v24 }
  0xd4   : > { %v1033_v23 = vpop.f32.mrf.mxu0  ;;  %v698_v19 = vpack.c.b16 %v666_v12, %v666_v12  ;;  %v699_v20 = vpack.c.b16 %v667_v13, %v667_v13 }
  0xd5   : > { %v1110_v25 = vmul.f32 %v4554_v55, %v1033_v23  ;;  %v1276_v45 = vunpack.c.l.b16 %v1209_v33 }
  0xd6   : > { %762 = vst [vmem:[#allocation2 + $0x78] sm:$0xf] %v698_v19 }
  0xd7   : > { %v1146_v28 = vadd.f32 %v4564_v3, %v1110_v25  ;;  %v858_v25 = vmul.f32 %v4475_v47, %v4182_v16  ;;  %763 = vst [vmem:[#allocation2 + $0x7c] sm:$0xf] %v699_v20 }
  0xd9   : > { %v1178_v34 = vmax.f32 %v1146_v28, 0.0  ;;  %v894_v28 = vadd.f32 %v4483_v54, %v858_v25 }
  0xdb   : > { %v1210_v38 = vpack.c.bf16 %v1178_v34, %v1178_v34  ;;  %v926_v34 = vmax.f32 %v894_v28, 0.0 }
  0xdc   : > { %v1036_v42 = vpop.f32.mrf.mxu0 }
  0xdd   : > { %v1277_v46 = vunpack.c.l.b16 %v1210_v38  ;;  %v1111_v48 = vmul.f32 %v4554_v55, %v1036_v42  ;;  %v945_v40 = vpack.c.bf16 %v927_v35, %v926_v34  ;;  %v4187_v42 = vunpack.c.h.bf16 %v4269_v36  ;;  %v4122_v34 = vld [vmem:[%s6051_s9 + $0x28] sm:$0xff] }
  0xde   : > { %2478 = vmatpush.bf16.msrb.mxu1 %v4122_v34 }
  0xdf   : > { %1075 = vmatmul.bf16.gmra.mxu0 %v943_v39  ;;  %v1304_v49 = vpack.c.b16 %v1277_v46, %v1276_v45  ;;  %v1147_v52 = vadd.f32 %v4564_v3, %v1111_v48  ;;  %v861_v50 = vmul.f32 %v4475_v47, %v4187_v42 }
  0xe1   : > { %3954 = vmatmul.msk.bf16.gmra.mxu1 %vm1323_vm1, %v1304_v49  ;;  %3974 = vmatmul.msk.bf16.gmra.mxu2 %vm1323_vm1, %v1304_v49  ;;  %v1179_v62 = vmax.f32 %v1147_v52, 0.0  ;;  %v897_v53 = vadd.f32 %v4483_v54, %v861_v50 }
  0xe2   : > { %3994 = vmatmul.msk.bf16.gmra.mxu3 %vm1323_vm1, %v1304_v49  ;;  %v860_v49 = vmul.f32 %v4475_v47, %v4186_v41 }
  0xe3   : > { %v1211_v9 = vpack.c.bf16 %v1179_v62, %v1179_v62  ;;  %v929_v62 = vmax.f32 %v897_v53, 0.0 }
  0xe4   : > { %v1038_v61 = vpop.f32.mrf.mxu0  ;;  %v896_v52 = vadd.f32 %v4483_v54, %v860_v49 }
  0xe5   : > { %v1112_v63 = vmul.f32 %v4554_v55, %v1038_v61  ;;  %v1278_v21 = vunpack.c.l.b16 %v1211_v9 }
  0xe6   : > { %v928_v61 = vmax.f32 %v896_v52, 0.0 }
  0xe7   : > { %v1148_v4 = vadd.f32 %v4564_v3, %v1112_v63  ;;  %v4270_v63 = vld [vmem:[#allocation2 + $0x78] sm:$0xff]  }
  0xe8   : > { %v4190_v5 = vunpack.c.l.bf16 %v4270_v63  ;;  %v4191_v6 = vunpack.c.h.bf16 %v4270_v63 }
  0xe9   : > { %v1180_v10 = vmax.f32 %v1148_v4, 0.0  ;;  %v946_v4 = vpack.c.bf16 %v929_v62, %v928_v61 }
  0xea   : > { %v862_v12 = vmul.f32 %v4475_v47, %v4190_v5  ;;  %v863_v13 = vmul.f32 %v4475_v47, %v4191_v6 }
  0xeb   : > { %v1212_v14 = vpack.c.bf16 %v1180_v10, %v1180_v10 }
  0xec   : > { %v1041_v18 = vpop.f32.mrf.mxu0  ;;  %v899_v16 = vadd.f32 %v4483_v54, %v863_v13 }
  0xed   : > { %v1279_v22 = vunpack.c.l.b16 %v1212_v14  ;;  %v1113_v23 = vmul.f32 %v4554_v55, %v1041_v18 }
  0xee   : > { %v931_v47 = vmax.f32 %v899_v16, 0.0 }
  0xef   : > { %1080 = vmatmul.bf16.gmra.mxu0 %v944_v15  ;;  %v1305_v24 = vpack.c.b16 %v1279_v22, %v1278_v21  ;;  %v1149_v27 = vadd.f32 %v4564_v3, %v1113_v23  ;;  %v898_v15 = vadd.f32 %v4483_v54, %v862_v12 }
  0xf1   : > { %3955 = vmatmul.msk.bf16.gmra.mxu1 %vm1323_vm1, %v1305_v24  ;;  %3975 = vmatmul.msk.bf16.gmra.mxu2 %vm1323_vm1, %v1305_v24  ;;  %v1181_v31 = vmax.f32 %v1149_v27, 0.0  ;;  %v930_v21 = vmax.f32 %v898_v15, 0.0 }
  0xf2   : > { %3995 = vmatmul.msk.bf16.gmra.mxu3 %vm1323_vm1, %v1305_v24 }
  0xf3   : > { %v1213_v37 = vpack.c.bf16 %v1181_v31, %v1181_v31  ;;  %v947_v25 = vpack.c.bf16 %v931_v47, %v930_v21 }
  0xf4   : > { %v1043_v30 = vpop.f32.mrf.mxu0 }
  0xf5   : > { %v1114_v32 = vmul.f32 %v4554_v55, %v1043_v30  ;;  %v1280_v44 = vunpack.c.l.b16 %v1213_v37 }
  0xf7   : > { %v1150_v33 = vadd.f32 %v4564_v3, %v1114_v32 }
  0xf9   : > { %v1182_v38 = vmax.f32 %v1150_v33, 0.0 }
  0xfb   : > { %v1214_v39 = vpack.c.bf16 %v1182_v38, %v1182_v38 }
  0xfc   : > { %v1046_v43 = vpop.f32.mrf.mxu0 }
  0xfd   : > { %v1281_v45 = vunpack.c.l.b16 %v1214_v39  ;;  %v1115_v46 = vmul.f32 %v4554_v55, %v1046_v43 }
  0xff   : > { %1085 = vmatmul.bf16.gmra.mxu0 %v945_v40  ;;  %v1306_v48 = vpack.c.b16 %v1281_v45, %v1280_v44  ;;  %v1151_v51 = vadd.f32 %v4564_v3, %v1115_v46 }
 0x101   : > { %3956 = vmatmul.msk.bf16.gmra.mxu1 %vm1323_vm1, %v1306_v48  ;;  %3976 = vmatmul.msk.bf16.gmra.mxu2 %vm1323_vm1, %v1306_v48  ;;  %v1183_v57 = vmax.f32 %v1151_v51, 0.0 }
 0x102   : > { %3996 = vmatmul.msk.bf16.gmra.mxu3 %vm1323_vm1, %v1306_v48 }
 0x103   : > { %v1215_v0 = vpack.c.bf16 %v1183_v57, %v1183_v57 }
 0x104   : > { %v1048_v56 = vpop.f32.mrf.mxu0 }
 0x105   : > { %v1116_v58 = vmul.f32 %v4554_v55, %v1048_v56  ;;  %v1282_v8 = vunpack.c.l.b16 %v1215_v0 }
 0x107   : > { %v1152_v60 = vadd.f32 %v4564_v3, %v1116_v58 }
 0x109   : > { %v1184_v1 = vmax.f32 %v1152_v60, 0.0 }
 0x10b   : > { %v1216_v2 = vpack.c.bf16 %v1184_v1, %v1184_v1 }
 0x10c   : > { %v1051_v7 = vpop.f32.mrf.mxu0 }
 0x10d   : > { %v1283_v9 = vunpack.c.l.b16 %v1216_v2  ;;  %v1117_v10 = vmul.f32 %v4554_v55, %v1051_v7  ;;  %v4121_v2 = vld [vmem:[%s6051_s9 + $0x20] sm:$0xff] }
 0x10e   : > { %2479 = vmatpush.bf16.msrb.mxu1 %v4121_v2 }
 0x10f   : > { %1090 = vmatmul.bf16.gmra.mxu0 %v946_v4  ;;  %v1307_v11 = vpack.c.b16 %v1283_v9, %v1282_v8  ;;  %v1153_v14 = vadd.f32 %v4564_v3, %v1117_v10 }
 0x111   : > { %3957 = vmatmul.msk.bf16.gmra.mxu1 %vm1323_vm1, %v1307_v11  ;;  %3977 = vmatmul.msk.bf16.gmra.mxu2 %vm1323_vm1, %v1307_v11  ;;  %v1185_v18 = vmax.f32 %v1153_v14, 0.0 }
 0x112   : > { %3997 = vmatmul.msk.bf16.gmra.mxu3 %vm1323_vm1, %v1307_v11 }
 0x113   : > { %v1217_v22 = vpack.c.bf16 %v1185_v18, %v1185_v18 }
 0x114   : > { %v1053_v17 = vpop.f32.mrf.mxu0 }
 0x115   : > { %v1118_v19 = vmul.f32 %v4554_v55, %v1053_v17  ;;  %v1284_v27 = vunpack.c.l.b16 %v1217_v22 }
 0x117   : > { %v1154_v20 = vadd.f32 %v4564_v3, %v1118_v19 }
 0x119   : > { %v1186_v23 = vmax.f32 %v1154_v20, 0.0 }
 0x11b   : > { %v1218_v24 = vpack.c.bf16 %v1186_v23, %v1186_v23 }
 0x11c   : > { %v1056_v26 = vpop.f32.mrf.mxu0 }
 0x11d   : > { %v1285_v28 = vunpack.c.l.b16 %v1218_v24  ;;  %v1119_v29 = vmul.f32 %v4554_v55, %v1056_v26 }
 0x11f   : > { %1095 = vmatmul.bf16.gmra.mxu0 %v947_v25  ;;  %v1308_v30 = vpack.c.b16 %v1285_v28, %v1284_v27  ;;  %v1155_v54 = vadd.f32 %v4564_v3, %v1119_v29 }
 0x121   : > { %3958 = vmatmul.msk.bf16.gmra.mxu1 %vm1323_vm1, %v1308_v30  ;;  %3978 = vmatmul.msk.bf16.gmra.mxu2 %vm1323_vm1, %v1308_v30  ;;  %v1187_v32 = vmax.f32 %v1155_v54, 0.0 }
 0x122   : > { %3998 = vmatmul.msk.bf16.gmra.mxu3 %vm1323_vm1, %v1308_v30 }
 0x123   : > { %v1219_v36 = vpack.c.bf16 %v1187_v32, %v1187_v32 }
 0x124   : > { %v1058_v31 = vpop.f32.mrf.mxu0 }
 0x125   : > { %v1120_v33 = vmul.f32 %v4554_v55, %v1058_v31  ;;  %v1286_v40 = vunpack.c.l.b16 %v1219_v36 }
 0x127   : > { %v1156_v35 = vadd.f32 %v4564_v3, %v1120_v33 }
 0x129   : > { %v1188_v37 = vmax.f32 %v1156_v35, 0.0 }
 0x12b   : > { %v1220_v38 = vpack.c.bf16 %v1188_v37, %v1188_v37 }
 0x12c   : > { %v1061_v39 = vpop.f32.mrf.mxu0 }
 0x12d   : > { %v1287_v41 = vunpack.c.l.b16 %v1220_v38  ;;  %v1121_v42 = vmul.f32 %v4554_v55, %v1061_v39 }
 0x12f   : > { %v1309_v43 = vpack.c.b16 %v1287_v41, %v1286_v40  ;;  %v1157_v44 = vadd.f32 %v4564_v3, %v1121_v42  ;;  %v4120_v40 = vld [vmem:[%s6051_s9 + $0x18] sm:$0xff] }
 0x130   : > { %2480 = vmatpush.bf16.msrb.mxu1 %v4120_v40 }
 0x131   : > { %3959 = vmatmul.msk.bf16.gmra.mxu1 %vm1323_vm1, %v1309_v43  ;;  %3979 = vmatmul.msk.bf16.gmra.mxu2 %vm1323_vm1, %v1309_v43  ;;  %v1189_v46 = vmax.f32 %v1157_v44, 0.0 }
 0x132   : > { %3999 = vmatmul.msk.bf16.gmra.mxu3 %vm1323_vm1, %v1309_v43 }
 0x133   : > { %v1221_v50 = vpack.c.bf16 %v1189_v46, %v1189_v46 }
 0x134   : > { %v1063_v45 = vpop.f32.mrf.mxu0 }
 0x135   : > { %v1122_v48 = vmul.f32 %v4554_v55, %v1063_v45  ;;  %v1288_v56 = vunpack.c.l.b16 %v1221_v50 }
 0x137   : > { %v1158_v49 = vadd.f32 %v4564_v3, %v1122_v48 }
 0x139   : > { %v1190_v51 = vmax.f32 %v1158_v49, 0.0 }
 0x13b   : > { %v1222_v52 = vpack.c.bf16 %v1190_v51, %v1190_v51 }
 0x13c   : > { %v1066_v53 = vpop.f32.mrf.mxu0 }
 0x13d   : > { %v1289_v57 = vunpack.c.l.b16 %v1222_v52  ;;  %v1123_v58 = vmul.f32 %v4554_v55, %v1066_v53 }
 0x13e   : > { %v4674_v59 = vpop.f32.mrf.mxu1 }
 0x13f   : > { %v1310_v60 = vpack.c.b16 %v1289_v57, %v1288_v56  ;;  %v1159_v61 = vadd.f32 %v4564_v3, %v1123_v58 }
 0x141   : > { %3960 = vmatmul.msk.bf16.gmra.mxu1 %vm1323_vm1, %v1310_v60  ;;  %3980 = vmatmul.msk.bf16.gmra.mxu2 %vm1323_vm1, %v1310_v60  ;;  %v1191_v0 = vmax.f32 %v1159_v61, 0.0 }
 0x142   : > { %4000 = vmatmul.msk.bf16.gmra.mxu3 %vm1323_vm1, %v1310_v60 }
 0x143   : > { %v1223_v6 = vpack.c.bf16 %v1191_v0, %v1191_v0 }
 0x144   : > { %v1068_v62 = vpop.f32.mrf.mxu0  ;;  %v1569_v63 = vpop.f32.mrf.mxu3 }
 0x145   : > { %v1124_v1 = vmul.f32 %v4554_v55, %v1068_v62  ;;  %v1290_v11 = vunpack.c.l.b16 %v1223_v6 }
 0x146   : > { %v4684_v4 = vpop.f32.mrf.mxu1 }
 0x147   : > { %v1160_v5 = vadd.f32 %v4564_v3, %v1124_v1 }
 0x149   : > { %v1192_v7 = vmax.f32 %v1160_v5, 0.0 }
 0x14b   : > { %v1224_v8 = vpack.c.bf16 %v1192_v7, %v1192_v7 }
 0x14c   : > { %v1071_v9 = vpop.f32.mrf.mxu0  ;;  %v1571_v10 = vpop.f32.mrf.mxu3 }
 0x14d   : > { %v1291_v12 = vunpack.c.l.b16 %v1224_v8  ;;  %v1125_v13 = vmul.f32 %v4554_v55, %v1071_v9 }
 0x14e   : > { %v4688_v14 = vpop.f32.mrf.mxu1 }
 0x14f   : > { %v1311_v15 = vpack.c.b16 %v1291_v12, %v1290_v11  ;;  %v1161_v16 = vadd.f32 %v4564_v3, %v1125_v13 }
 0x151   : > { %3961 = vmatmul.msk.bf16.gmra.mxu1 %vm1323_vm1, %v1311_v15  ;;  %3981 = vmatmul.msk.bf16.gmra.mxu2 %vm1323_vm1, %v1311_v15  ;;  %v1193_v19 = vmax.f32 %v1161_v16, 0.0 }
 0x152   : > { %4001 = vmatmul.msk.bf16.gmra.mxu3 %vm1323_vm1, %v1311_v15 }
 0x153   : > { %v1225_v25 = vpack.c.bf16 %v1193_v19, %v1193_v19 }
 0x154   : > { %v1073_v17 = vpop.f32.mrf.mxu0  ;;  %v1479_v18 = vpop.f32.mrf.mxu2 }
 0x155   : > { %v1126_v20 = vmul.f32 %v4554_v55, %v1073_v17  ;;  %v4695_v21 = vadd.f32 %v1569_v63, %v1479_v18  ;;  %v1574_v47 = vpop.f32.mrf.mxu3  ;;  %v1292_v54 = vunpack.c.l.b16 %v1225_v25 }
 0x156   : > { %v4697_v22 = vpop.f32.mrf.mxu1  ;;  %v1575_v44 = vadd.f32 %v1574_v47, %v4674_v59 }
 0x157   : > { %v1162_v23 = vadd.f32 %v4564_v3, %v1126_v20  ;;  %v1714_v24 = vrot.slane %v4695_v21, 7  ;;  %v1939_v37 = vrot.slane %v4695_v21, 1 }
 0x159   : > { %v1194_v26 = vmax.f32 %v1162_v23, 0.0  ;;  %v1778_v27 = vsel %vm1713_vm2, 0.0, %v1714_v24 }
 0x15a   : > { %1810 = vrot.lane.b32.xlu0 %v1778_v27, %s4350_s28 }
 0x15b   : > { %v1226_v28 = vpack.c.bf16 %v1194_v26, %v1194_v26 }
 0x15c   : > { %v1076_v29 = vpop.f32.mrf.mxu0  ;;  %v1481_v30 = vpop.f32.mrf.mxu2 }
 0x15d   : > { %v1293_v31 = vunpack.c.l.b16 %v1226_v28  ;;  %v1127_v32 = vmul.f32 %v4554_v55, %v1076_v29  ;;  %v4704_v33 = vadd.f32 %v1571_v10, %v1481_v30  ;;  %v1576_v34 = vpop.f32.mrf.mxu3 }
 0x15e   : > { %v4706_v35 = vpop.f32.mrf.mxu1  ;;  %v1577_v61 = vadd.f32 %v1576_v34, %v4684_v4 }
 0x15f   : > { %v1312_v36 = vpack.c.b16 %v1293_v31, %v1292_v54  ;;  %v1940_v38 = vrot.slane %v4704_v33, 1  ;;  %v1715_v39 = vrot.slane %v4704_v33, 7  ;;  %v1163_v41 = vadd.f32 %v4564_v3, %v1127_v32 }
 0x161   : > { %3962 = vmatmul.msk.bf16.gmra.mxu1 %vm1323_vm1, %v1312_v36  ;;  %3982 = vmatmul.msk.bf16.gmra.mxu2 %vm1323_vm1, %v1312_v36  ;;  %v1941_v42 = vsel %vm1938_vm3, %v1939_v37, %v1940_v38  ;;  %v1716_v43 = vsel %vm1713_vm2, %v1714_v24, %v1715_v39  ;;  %v1195_v48 = vmax.f32 %v1163_v41, 0.0  ;;  %v2003_v59 = vsel %vm1938_vm3, %v1940_v38, 0.0 }
 0x162   : > { %4002 = vmatmul.msk.bf16.gmra.mxu3 %vm1323_vm1, %v1312_v36  ;;  %2035 = vrot.lane.b32.xlu1 %v1941_v42, %s4351_s14 }
 0x163   : > { %1812 = vrot.lane.b32.xlu0 %v1716_v43, %s4350_s28  ;;  %v1227_v57 = vpack.c.bf16 %v1195_v48, %v1195_v48 }
 0x164   : > { %v1078_v45 = vpop.f32.mrf.mxu0  ;;  %v1484_v46 = vpop.f32.mrf.mxu2 }
 0x165   : > { %v1128_v49 = vmul.f32 %v4554_v55, %v1078_v45  ;;  %v4724_v50 = vadd.f32 %v1575_v44, %v1484_v46  ;;  %v1579_v51 = vpop.f32.mrf.mxu3  ;;  %v1294_v1 = vunpack.c.l.b16 %v1227_v57  ;;  %v4126_v44 = vld [vmem:[%s6054_s12] sm:$0xff]  ;;  %v4127_v45 = vld [vmem:[%s6054_s12 + $0x10] sm:$0xff] }
 0x166   : > { %v4726_v52 = vpop.f32.mrf.mxu1  ;;  %v1580_v17 = vadd.f32 %v1579_v51, %v4688_v14  ;;  %2839 = vmatpush.bf16.msrb.mxu2 %v4126_v44  ;;  %2940 = vmatpush.bf16.msrb.mxu3 %v4127_v45 }
 0x167   : > { %v1164_v53 = vadd.f32 %v4564_v3, %v1128_v49  ;;  %v1717_v56 = vrot.slane %v4724_v50, 7  ;;  %v1942_v9 = vrot.slane %v4724_v50, 1 }
 0x169   : > { %v1196_v58 = vmax.f32 %v1164_v53, 0.0  ;;  %v1779_v60 = vsel %vm1713_vm2, 0.0, %v1717_v56  ;;  %v4119_v53 = vld [vmem:[%s6051_s9 + $0x10] sm:$0xff] }
 0x16a   : > { %2037 = vrot.lane.b32.xlu1 %v2003_v59, %s4351_s14  ;;  %1814 = vrot.lane.b32.xlu2 %v1779_v60, %s4350_s28 }
 0x16b   : > { %v1228_v62 = vpack.c.bf16 %v1196_v58, %v1196_v58  ;;  %2481 = vmatpush.bf16.msrb.mxu1 %v4119_v53 }
 0x16c   : > { %v1081_v63 = vpop.f32.mrf.mxu0  ;;  %v1486_v0 = vpop.f32.mrf.mxu2 }
 0x16d   : > { %v1295_v2 = vunpack.c.l.b16 %v1228_v62  ;;  %v1129_v5 = vmul.f32 %v4554_v55, %v1081_v63  ;;  %v4736_v6 = vadd.f32 %v1577_v61, %v1486_v0  ;;  %v1581_v7 = vpop.f32.mrf.mxu3 }
 0x16e   : > { %v4738_v8 = vpop.f32.mrf.mxu1  ;;  %v1582_v30 = vadd.f32 %v1581_v7, %v4697_v22 }
 0x16f   : > { %v1313_v10 = vpack.c.b16 %v1295_v2, %v1294_v1  ;;  %v1943_v11 = vrot.slane %v4736_v6, 1  ;;  %v1718_v12 = vrot.slane %v4736_v6, 7  ;;  %v1165_v4 = vadd.f32 %v4564_v3, %v1129_v5 }
 0x171   : > { %3963 = vmatmul.msk.bf16.gmra.mxu1 %vm1323_vm1, %v1313_v10  ;;  %3983 = vmatmul.msk.bf16.gmra.mxu2 %vm1323_vm1, %v1313_v10  ;;  %v2004_v13 = vsel %vm1938_vm3, %v1943_v11, 0.0  ;;  %v1944_v15 = vsel %vm1938_vm3, %v1942_v9, %v1943_v11  ;;  %v1719_v16 = vsel %vm1713_vm2, %v1717_v56, %v1718_v12  ;;  %v1197_v20 = vmax.f32 %v1165_v4, 0.0  ;;  %v4125_v56 = vld [vmem:[%s6054_s12 + $0x8] sm:$0xff] }
 0x172   : > { %4003 = vmatmul.msk.bf16.gmra.mxu3 %vm1323_vm1, %v1313_v10  ;;  %2041 = vrot.lane.b32.xlu1 %v2004_v13, %s4351_s14 }
 0x173   : > { %2039 = vrot.lane.b32.xlu0 %v1944_v15, %s4351_s14  ;;  %1816 = vrot.lane.b32.xlu2 %v1719_v16, %s4350_s28  ;;  %v1229_v28 = vpack.c.bf16 %v1197_v20, %v1197_v20 }
 0x174   : > { %v1083_v18 = vpop.f32.mrf.mxu0  ;;  %v1489_v19 = vpop.f32.mrf.mxu2  ;;  %3030 = vmatpush.bf16.msrb.mxu0 %v4125_v56  ;;  %4286 = vmatpush.bf16.msra.mxu2 %v4125_v56 }
 0x175   : > { %v1130_v47 = vmul.f32 %v4554_v55, %v1083_v18  ;;  %v4755_v23 = vadd.f32 %v1580_v17, %v1489_v19  ;;  %v1584_v24 = vpop.f32.mrf.mxu3  ;;  %v1296_v34 = vunpack.c.l.b16 %v1229_v28 }
 0x176   : > { %v4757_v25 = vpop.f32.mrf.mxu1  ;;  %v1585_v57 = vadd.f32 %v1584_v24, %v4706_v35 }
 0x177   : > { %v1166_v26 = vadd.f32 %v4564_v3, %v1130_v47  ;;  %v1720_v27 = vrot.slane %v4755_v23, 7  ;;  %v1945_v42 = vrot.slane %v4755_v23, 1 }
 0x179   : > { %v1198_v14 = vmax.f32 %v1166_v26, 0.0  ;;  %v1780_v29 = vsel %vm1713_vm2, 0.0, %v1720_v27 }
 0x17b   : > { %v1230_v54 = vpack.c.bf16 %v1198_v14, %v1198_v14  ;;  %1818 = vrot.lane.b32.xlu2 %v1780_v29, %s4350_s28 }
 0x17c   : > { %v1086_v31 = vpop.f32.mrf.mxu0  ;;  %v1491_v32 = vpop.f32.mrf.mxu2 }
 0x17d   : > { %v1297_v36 = vunpack.c.l.b16 %v1230_v54  ;;  %v1131_v37 = vmul.f32 %v4554_v55, %v1086_v31  ;;  %v4765_v38 = vadd.f32 %v1582_v30, %v1491_v32  ;;  %v1586_v39 = vpop.f32.mrf.mxu3 }
 0x17e   : > { %v4767_v40 = vpop.f32.mrf.mxu1  ;;  %v1587_v9 = vadd.f32 %v1586_v39, %v4726_v52 }
 0x17f   : > { %v1314_v41 = vpack.c.b16 %v1297_v36, %v1296_v34  ;;  %v1946_v43 = vrot.slane %v4765_v38, 1  ;;  %v1721_v22 = vrot.slane %v4765_v38, 7  ;;  %v1167_v46 = vadd.f32 %v4564_v3, %v1131_v37 }
 0x181   : > { %3964 = vmatmul.msk.bf16.gmra.mxu1 %vm1323_vm1, %v1314_v41  ;;  %3984 = vmatmul.msk.bf16.gmra.mxu2 %vm1323_vm1, %v1314_v41  ;;  %v2005_v48 = vsel %vm1938_vm3, %v1946_v43, 0.0  ;;  %v1947_v49 = vsel %vm1938_vm3, %v1945_v42, %v1946_v43  ;;  %v1722_v51 = vsel %vm1713_vm2, %v1720_v27, %v1721_v22  ;;  %v1199_v60 = vmax.f32 %v1167_v46, 0.0 }
 0x182   : > { %4004 = vmatmul.msk.bf16.gmra.mxu3 %vm1323_vm1, %v1314_v41  ;;  %2043 = vrot.lane.b32.xlu1 %v1947_v49, %s4351_s14 }
 0x183   : > { %2045 = vrot.lane.b32.xlu2 %v2005_v48, %s4351_s14  ;;  %1820 = vrot.lane.b32.xlu0 %v1722_v51, %s4350_s28  ;;  %v1231_v2 = vpack.c.bf16 %v1199_v60, %v1199_v60 }
 0x184   : > { %v1088_v58 = vpop.f32.mrf.mxu0  ;;  %v1494_v59 = vpop.f32.mrf.mxu2 }
 0x185   : > { %v1132_v61 = vmul.f32 %v4554_v55, %v1088_v58  ;;  %v4796_v62 = vadd.f32 %v1585_v57, %v1494_v59  ;;  %v1589_v63 = vpop.f32.mrf.mxu3  ;;  %v1298_v4 = vunpack.c.l.b16 %v1231_v2 }
 0x186   : > { %v4798_v0 = vpop.f32.mrf.mxu1  ;;  %v1590_v14 = vadd.f32 %v1589_v63, %v4738_v8  ;;  %v4118_v8 = vld [vmem:[%s6051_s9 + $0x8] sm:$0xff] }
 0x187   : > { %v1168_v35 = vadd.f32 %v4564_v3, %v1132_v61  ;;  %v1723_v1 = vrot.slane %v4796_v62, 7  ;;  %v1948_v20 = vrot.slane %v4796_v62, 1  ;;  %2482 = vmatpush.bf16.msrb.mxu1 %v4118_v8 }
 0x189   : > { %v1200_v5 = vmax.f32 %v1168_v35, 0.0  ;;  %v1781_v7 = vsel %vm1713_vm2, 0.0, %v1723_v1 }
 0x18b   : > { %v1232_v10 = vpack.c.bf16 %v1200_v5, %v1200_v5  ;;  %1822 = vrot.lane.b32.xlu0 %v1781_v7, %s4350_s28  ;;  %v4305_v7 = vld [vmem:[%s6046_s4] ss:$0 sm:$0xff] }
 0x18c   : > { %v1091_v11 = vpop.f32.mrf.mxu0  ;;  %v1496_v12 = vpop.f32.mrf.mxu2 }
 0x18d   : > { %v1299_v13 = vunpack.c.l.b16 %v1232_v10  ;;  %v1133_v15 = vmul.f32 %v4554_v55, %v1091_v11  ;;  %v4806_v16 = vadd.f32 %v1587_v9, %v1496_v12  ;;  %v1591_v17 = vpop.f32.mrf.mxu3 }
 0x18e   : > { %v4808_v18 = vpop.f32.mrf.mxu1  ;;  %v1592_v22 = vadd.f32 %v1591_v17, %v4757_v25 }
 0x18f   : > { %v1315_v19 = vpack.c.b16 %v1299_v13, %v1298_v4  ;;  %v1949_v47 = vrot.slane %v4806_v16, 1  ;;  %v1724_v52 = vrot.slane %v4806_v16, 7  ;;  %v1169_v24 = vadd.f32 %v4564_v3, %v1133_v15 }
 0x191   : > { %3965 = vmatmul.msk.bf16.gmra.mxu1 %vm1323_vm1, %v1315_v19  ;;  %3985 = vmatmul.msk.bf16.gmra.mxu2 %vm1323_vm1, %v1315_v19  ;;  %v2006_v26 = vsel %vm1938_vm3, %v1949_v47, 0.0  ;;  %v1950_v27 = vsel %vm1938_vm3, %v1948_v20, %v1949_v47  ;;  %v1725_v28 = vsel %vm1713_vm2, %v1723_v1, %v1724_v52  ;;  %v1201_v54 = vmax.f32 %v1169_v24, 0.0 }
 0x192   : > { %4005 = vmatmul.msk.bf16.gmra.mxu3 %vm1323_vm1, %v1315_v19  ;;  %2047 = vrot.lane.b32.xlu2 %v1950_v27, %s4351_s14 }
 0x193   : > { %2049 = vrot.lane.b32.xlu0 %v2006_v26, %s4351_s14  ;;  %1824 = vrot.lane.b32.xlu1 %v1725_v28, %s4350_s28  ;;  %v1233_v41 = vpack.c.bf16 %v1201_v54, %v1201_v54 }
 0x194   : > { %v1093_v29 = vpop.f32.mrf.mxu0  ;;  %v1499_v30 = vpop.f32.mrf.mxu2 }
 0x195   : > { %v1134_v31 = vmul.f32 %v4554_v55, %v1093_v29  ;;  %v4825_v32 = vadd.f32 %v1590_v14, %v1499_v30  ;;  %v1594_v34 = vpop.f32.mrf.mxu3  ;;  %v1300_v48 = vunpack.c.l.b16 %v1233_v41 }
 0x196   : > { %v4827_v36 = vpop.f32.mrf.mxu1  ;;  %v1595_v1 = vadd.f32 %v1594_v34, %v4767_v40  ;;  %v4306_v40 = vld [vmem:[%s6047_s5] ss:$0 sm:$0xff] }
 0x197   : > { %v1170_v37 = vadd.f32 %v4564_v3, %v1134_v31  ;;  %v1726_v39 = vrot.slane %v4825_v32, 7  ;;  %v1951_v59 = vrot.slane %v4825_v32, 1 }
 0x199   : > { %v1202_v42 = vmax.f32 %v1170_v37, 0.0  ;;  %v1782_v43 = vsel %vm1713_vm2, 0.0, %v1726_v39 }
 0x19b   : > { %v1234_v44 = vpack.c.bf16 %v1202_v42, %v1202_v42  ;;  %1826 = vrot.lane.b32.xlu1 %v1782_v43, %s4350_s28 }
 0x19c   : > { %v1096_v45 = vpop.f32.mrf.mxu0  ;;  %v1501_v46 = vpop.f32.mrf.mxu2 }
 0x19d   : > { %v1301_v49 = vunpack.c.l.b16 %v1234_v44  ;;  %v1135_v51 = vmul.f32 %v4554_v55, %v1096_v45  ;;  %v4838_v53 = vadd.f32 %v1592_v22, %v1501_v46  ;;  %v1596_v56 = vpop.f32.mrf.mxu3  ;;  %v4117_v45 = vld [vmem:[%s6051_s9] sm:$0xff] }
 0x19e   : > { %v4840_v57 = vpop.f32.mrf.mxu1  ;;  %v1597_v20 = vadd.f32 %v1596_v56, %v4798_v0  ;;  %2483 = vmatpush.bf16.msrb.mxu1 %v4117_v45 }
 0x19f   : > { %v1316_v58 = vpack.c.b16 %v1301_v49, %v1300_v48  ;;  %v1952_v60 = vrot.slane %v4838_v53, 1  ;;  %v1727_v25 = vrot.slane %v4838_v53, 7  ;;  %v1171_v61 = vadd.f32 %v4564_v3, %v1135_v51 }
 0x1a1   : > { %3966 = vmatmul.msk.bf16.gmra.mxu1 %vm1323_vm1, %v1316_v58  ;;  %3986 = vmatmul.msk.bf16.gmra.mxu2 %vm1323_vm1, %v1316_v58  ;;  %v2007_v55 = vsel %vm1938_vm3, %v1952_v60, 0.0  ;;  %v1953_v63 = vsel %vm1938_vm3, %v1951_v59, %v1952_v60  ;;  %v1728_v35 = vsel %vm1713_vm2, %v1726_v39, %v1727_v25  ;;  %v1203_v5 = vmax.f32 %v1171_v61, 0.0 }
 0x1a2   : > { %4006 = vmatmul.msk.bf16.gmra.mxu3 %vm1323_vm1, %v1316_v58  ;;  %2051 = vrot.lane.b32.xlu0 %v1953_v63, %s4351_s14 }
 0x1a3   : > { %2053 = vrot.lane.b32.xlu1 %v2007_v55, %s4351_s14  ;;  %1828 = vrot.lane.b32.xlu2 %v1728_v35, %s4350_s28  ;;  %v1235_v15 = vpack.c.bf16 %v1203_v5, %v1203_v5 }
 0x1a4   : > { %v1098_v3 = vpop.f32.mrf.mxu0  ;;  %v1504_v2 = vpop.f32.mrf.mxu2 }
 0x1a5   : > { %v1136_v9 = vmul.f32 %v4305_v7, %v1098_v3  ;;  %v4859_v10 = vadd.f32 %v1595_v1, %v1504_v2  ;;  %v1599_v11 = vpop.f32.mrf.mxu3  ;;  %v1458_v24 = vunpack.c.l.b16 %v1235_v15 }
 0x1a6   : > { %v1410_v12 = vpop.f32.mrf.mxu1  ;;  %v1600_v39 = vadd.f32 %v1599_v11, %v4808_v18 }
 0x1a7   : > { %v1172_v4 = vadd.f32 %v4306_v40, %v1136_v9  ;;  %v1729_v13 = vrot.slane %v4859_v10, 7  ;;  %v1954_v30 = vrot.slane %v4859_v10, 1 }
 0x1a9   : > { %v1204_v17 = vmax.f32 %v1172_v4, 0.0  ;;  %v1783_v19 = vsel %vm1713_vm2, 0.0, %v1729_v13 }
 0x1ab   : > { %v1236_v47 = vpack.c.bf16 %v1204_v17, %v1204_v17  ;;  %1830 = vrot.lane.b32.xlu2 %v1783_v19, %s4350_s28 }
 0x1ac   : > { %v1506_v52 = vpop.f32.mrf.mxu2 }
 0x1ad   : > { %v1459_v26 = vunpack.c.l.b16 %v1236_v47  ;;  %v4868_v27 = vadd.f32 %v1597_v20, %v1506_v52  ;;  %v1601_v28 = vpop.f32.mrf.mxu3 }
 0x1ae   : > { %v1413_v14 = vpop.f32.mrf.mxu1  ;;  %v1602_v46 = vadd.f32 %v1601_v28, %v4827_v36 }
 0x1af   : > { %v1460_v29 = vpack.c.b16 %v1459_v26, %v1458_v24  ;;  %v1955_v54 = vrot.slane %v4868_v27, 1  ;;  %v1730_v31 = vrot.slane %v4868_v27, 7 }
 0x1b1   : > { %3987 = vmatmul.msk.bf16.gmra.mxu2 %vm1323_vm1, %v1460_v29  ;;  %v2008_v0 = vsel %vm1938_vm3, %v1955_v54, 0.0  ;;  %v1956_v34 = vsel %vm1938_vm3, %v1954_v30, %v1955_v54  ;;  %v1731_v37 = vsel %vm1713_vm2, %v1729_v13, %v1730_v31 }
 0x1b2   : > { %4007 = vmatmul.msk.bf16.gmra.mxu3 %vm1323_vm1, %v1460_v29  ;;  %2055 = vrot.lane.b32.xlu1 %v1956_v34, %s4351_s14 }
 0x1b3   : > { %2057 = vrot.lane.b32.xlu2 %v2008_v0, %s4351_s14  ;;  %1832 = vrot.lane.b32.xlu0 %v1731_v37, %s4350_s28 }
 0x1b4   : > { %v1509_v8 = vpop.f32.mrf.mxu2 }
 0x1b5   : > { %v4882_v41 = vadd.f32 %v1600_v39, %v1509_v8  ;;  %v1604_v42 = vpop.f32.mrf.mxu3 }
 0x1b6   : > { %v1415_v43 = vpop.f32.mrf.mxu1  ;;  %v1605_v61 = vadd.f32 %v1604_v42, %v4840_v57 }
 0x1b7   : > { %v1732_v22 = vrot.slane %v4882_v41, 7  ;;  %v1957_v56 = vrot.slane %v4882_v41, 1 }
 0x1b9   : > { %v1784_v44 = vsel %vm1713_vm2, 0.0, %v1732_v22 }
 0x1bb   : > { %1834 = vrot.lane.b32.xlu0 %v1784_v44, %s4350_s28 }
 0x1bc   : > { %v1511_v18 = vpop.f32.mrf.mxu2 }
 0x1bd   : > { %v4891_v48 = vadd.f32 %v1602_v46, %v1511_v18  ;;  %v1606_v49 = vpop.f32.mrf.mxu3 }
 0x1be   : > { %v4893_v51 = vpop.f32.mrf.mxu1  ;;  %v1607_v5 = vadd.f32 %v1606_v49, %v1410_v12 }
 0x1bf   : > { %v1958_v58 = vrot.slane %v4891_v48, 1  ;;  %v1733_v59 = vrot.slane %v4891_v48, 7 }
 0x1c1   : > { %v2009_v60 = vsel %vm1938_vm3, %v1958_v58, 0.0  ;;  %v1959_v25 = vsel %vm1938_vm3, %v1957_v56, %v1958_v58  ;;  %v1734_v36 = vsel %vm1713_vm2, %v1732_v22, %v1733_v59 }
 0x1c2   : > { %2059 = vrot.lane.b32.xlu2 %v1959_v25, %s4351_s14  ;;  %1836 = vrot.lane.b32.xlu1 %v1734_v36, %s4350_s28 }
 0x1c3   : > { %2061 = vrot.lane.b32.xlu0 %v2009_v60, %s4351_s14 }
 0x1c4   : > { %v1514_v55 = vpop.f32.mrf.mxu2  ;;  %v1815_v29 = vpop.permute.xlu2 %1814 }
 0x1c5   : > { %v4905_v63 = vadd.f32 %v1605_v61, %v1514_v55  ;;  %v1609_v35 = vpop.f32.mrf.mxu3  ;;  %v1908_v25 = vadd.f32 %v1815_v29, %v4724_v50  ;;  %v4972_v50 = vld [vmem:[%s6049_s7] ss:$0 sm:$0xff] }
 0x1c6   : > { %v4907_v1 = vpop.f32.mrf.mxu1  ;;  %v1610_v12 = vadd.f32 %v1609_v35, %v1413_v14 }
 0x1c7   : > { %v1735_v3 = vrot.slane %v4905_v63, 7  ;;  %v1960_v40 = vrot.slane %v4905_v63, 1 }
 0x1c9   : > { %v1785_v2 = vsel %vm1713_vm2, 0.0, %v1735_v3 }
 0x1ca   : > { %1838 = vrot.lane.b32.xlu1 %v1785_v2, %s4350_s28 }
 0x1cc   : > { %v1516_v7 = vpop.f32.mrf.mxu2  ;;  %v1811_v57 = vpop.permute.xlu0 %1810 }
 0x1cd   : > { %v4912_v9 = vadd.f32 %v1607_v5, %v1516_v7  ;;  %v1611_v11 = vpop.f32.mrf.mxu3  ;;  %v1906_v47 = vadd.f32 %v1811_v57, %v4695_v21  ;;  %v1817_v18 = vpop.permute.xlu2 %1816 }
 0x1ce   : > { %v4917_v15 = vpop.f32.mrf.mxu1  ;;  %v1612_v14 = vadd.f32 %v1611_v11, %v1415_v43  ;;  %v1909_v59 = vadd.f32 %v1817_v18, %v4736_v6 }
 0x1cf   : > { %v1961_v4 = vrot.slane %v4912_v9, 1  ;;  %v1736_v13 = vrot.slane %v4912_v9, 7 }
 0x1d1   : > { %v2010_v17 = vsel %vm1938_vm3, %v1961_v4, 0.0  ;;  %v1962_v19 = vsel %vm1938_vm3, %v1960_v40, %v1961_v4  ;;  %v1737_v20 = vsel %vm1713_vm2, %v1735_v3, %v1736_v13 }
 0x1d2   : > { %2065 = vrot.lane.b32.xlu1 %v2010_v17, %s4351_s14  ;;  %2063 = vrot.lane.b32.xlu0 %v1962_v19, %s4351_s14  ;;  %v4981_v17 = vld [vmem:[%s6050_s8] ss:$0 sm:$0xff] }
 0x1d3   : > { %1840 = vrot.lane.b32.xlu2 %v1737_v20, %s4350_s28 }
 0x1d4   : > { %v2036_v52 = vpop.permute.xlu1 %2035  ;;  %v1519_v24 = vpop.f32.mrf.mxu2 }
 0x1d5   : > { %v4926_v26 = vadd.f32 %v2036_v52, %v1906_v47  ;;  %v4928_v28 = vadd.f32 %v1610_v12, %v1519_v24  ;;  %v1614_v30 = vpop.f32.mrf.mxu3  ;;  %v1813_v0 = vpop.permute.xlu0 %1812 }
 0x1d6   : > { %v1907_v34 = vadd.f32 %v1813_v0, %v4704_v33  ;;  %v4936_v37 = vpop.f32.mrf.mxu1  ;;  %v1615_v60 = vadd.f32 %v1614_v30, %v4893_v51  ;;  %v1819_v52 = vpop.permute.xlu2 %1818 }
 0x1d7   : > { %v2163_v54 = vpack.c.bf16 %v4926_v26, %v4926_v26  ;;  %v1738_v31 = vrot.slane %v4928_v28, 7  ;;  %v1963_v45 = vrot.slane %v4928_v28, 1  ;;  %v1910_v18 = vadd.f32 %v1819_v52, %v4755_v23 }
 0x1d9   : > { %2196 = vst.msk [vmem:[#allocation2] sm:$0xf] %vm2195_vm4, %v2163_v54  ;;  %v1786_v21 = vsel %vm1713_vm2, 0.0, %v1738_v31 }
 0x1db   : > { %1842 = vrot.lane.b32.xlu2 %v1786_v21, %s4350_s28 }
 0x1dc   : > { %v2038_v39 = vpop.permute.xlu1 %2037  ;;  %v1521_v8 = vpop.f32.mrf.mxu2 }
 0x1dd   : > { %v4939_v42 = vadd.f32 %v2038_v39, %v1907_v34  ;;  %v4941_v22 = vadd.f32 %v1612_v14, %v1521_v8  ;;  %v1616_v44 = vpop.f32.mrf.mxu3 }
 0x1de   : > { %v4958_v55 = vpop.f32.mrf.mxu1  ;;  %v1617_v19 = vadd.f32 %v1616_v44, %v4907_v1  ;;  %v2046_v23 = vpop.permute.xlu2 %2045 }
 0x1df   : > { %v2164_v46 = vpack.c.bf16 %v4939_v42, %v4939_v42  ;;  %v1964_v43 = vrot.slane %v4941_v22, 1  ;;  %v1739_v33 = vrot.slane %v4941_v22, 7 }
 0x1e1   : > { %2197 = vst.msk [vmem:[#allocation2 + $0x4] sm:$0xf] %vm2195_vm4, %v2164_v46  ;;  %v2011_v49 = vsel %vm1938_vm3, %v1964_v43, 0.0  ;;  %v1965_v56 = vsel %vm1938_vm3, %v1963_v45, %v1964_v43  ;;  %v1740_v58 = vsel %vm1713_vm2, %v1738_v31, %v1739_v33 }
 0x1e2   : > { %2067 = vrot.lane.b32.xlu1 %v1965_v56, %s4351_s14  ;;  %1844 = vrot.lane.b32.xlu0 %v1740_v58, %s4350_s28 }
 0x1e3   : > { %2069 = vrot.lane.b32.xlu2 %v2011_v49, %s4351_s14 }
 0x1e4   : > { %v2042_v36 = vpop.permute.xlu1 %2041  ;;  %v1524_v61 = vpop.f32.mrf.mxu2 }
 0x1e5   : > { %v4960_v35 = vadd.f32 %v2042_v36, %v1909_v59  ;;  %v2040_v3 = vpop.permute.xlu0 %2039  ;;  %v4962_v2 = vadd.f32 %v1615_v60, %v1524_v61  ;;  %v1619_v7 = vpop.f32.mrf.mxu3 }
 0x1e6   : > { %v4964_v5 = vadd.f32 %v2040_v3, %v1908_v25  ;;  %v4993_v0 = vpop.f32.mrf.mxu1  ;;  %v1620_v49 = vadd.f32 %v1619_v7, %v4917_v15 }
 0x1e7   : > { %v2166_v6 = vpack.c.bf16 %v4960_v35, %v4960_v35  ;;  %v1741_v51 = vrot.slane %v4962_v2, 7  ;;  %v1966_v31 = vrot.slane %v4962_v2, 1 }
 0x1e8   : > { %v2165_v11 = vpack.c.bf16 %v4964_v5, %v4964_v5  ;;  %v4193_v57 = vld [vmem:[#allocation2] sm:$0xff]  }
 0x1e9   : > { %2199 = vst.msk [vmem:[#allocation2 + $0xc] sm:$0xf] %vm2195_vm4, %v2166_v6  ;;  %v1787_v40 = vsel %vm1713_vm2, 0.0, %v1741_v51  ;;  %v4194_v4 = vunpack.c.l.bf16 %v4193_v57  ;;  %v4195_v13 = vunpack.c.h.bf16 %v4193_v57 }
 0x1ea   : > { %2198 = vst.msk [vmem:[#allocation2 + $0x8] sm:$0xf] %vm2195_vm4, %v2165_v11  ;;  %1846 = vrot.lane.b32.xlu0 %v1787_v40, %s4350_s28 }
 0x1eb   : > { %v2296_v20 = vmul.f32 %v4972_v50, %v4194_v4  ;;  %v2297_v12 = vmul.f32 %v4972_v50, %v4195_v13 }
 0x1ec   : > { %v1526_v47 = vpop.f32.mrf.mxu2 }
 0x1ed   : > { %v4988_v24 = vadd.f32 %v1617_v19, %v1526_v47  ;;  %v2332_v29 = vadd.f32 %v4981_v17, %v2296_v20  ;;  %v2333_v30 = vadd.f32 %v4981_v17, %v2297_v12  ;;  %v1621_v54 = vpop.f32.mrf.mxu3 }
 0x1ee   : > { %v5017_v11 = vpop.f32.mrf.mxu1  ;;  %v1622_v13 = vadd.f32 %v1621_v54, %v4936_v37 }
 0x1ef   : > { %v1967_v21 = vrot.slane %v4988_v24, 1  ;;  %v1742_v1 = vrot.slane %v4988_v24, 7  ;;  %v2364_v14 = vmax.f32 %v2332_v29, 0.0  ;;  %v2365_v34 = vmax.f32 %v2333_v30, 0.0 }
 0x1f1   : > { %v2012_v39 = vsel %vm1938_vm3, %v1967_v21, 0.0  ;;  %v1968_v8 = vsel %vm1938_vm3, %v1966_v31, %v1967_v21  ;;  %v1743_v44 = vsel %vm1713_vm2, %v1741_v51, %v1742_v1  ;;  %v4271_v45 = vld [vmem:[#allocation2 + $0x8] sm:$0xff]   ;;  %v2396_v46 = vpack.c.bf16 %v2365_v34, %v2364_v14  ;;  %v2048_v31 = vpop.permute.xlu2 %2047 }
 0x1f2   : > { %2073 = vrot.lane.b32.xlu0 %v2012_v39, %s4351_s14  ;;  %2071 = vrot.lane.b32.xlu2 %v1968_v8, %s4351_s14  ;;  %v4198_v43 = vunpack.c.l.bf16 %v4271_v45  ;;  %v4199_v33 = vunpack.c.h.bf16 %v4271_v45 }
 0x1f3   : > { %1848 = vrot.lane.b32.xlu1 %v1743_v44, %s4350_s28  ;;  %2484 = vmatmul.bf16.vlgmr.msrb.gmra.mxu1 %v2396_v46 }
 0x1f4   : > { %v2044_v56 = vpop.permute.xlu1 %2043  ;;  %v1529_v58 = vpop.f32.mrf.mxu2  ;;  %v2298_v3 = vmul.f32 %v4972_v50, %v4198_v43  ;;  %v2299_v6 = vmul.f32 %v4972_v50, %v4199_v33 }
 0x1f5   : > { %v5005_v59 = vadd.f32 %v2044_v56, %v1910_v18  ;;  %v1821_v60 = vpop.permute.xlu0 %1820  ;;  %v5007_v25 = vadd.f32 %v1620_v49, %v1529_v58  ;;  %v1624_v61 = vpop.f32.mrf.mxu3 }
 0x1f6   : > { %v1911_v36 = vadd.f32 %v1821_v60, %v4765_v38  ;;  %v2334_v40 = vadd.f32 %v4981_v17, %v2298_v3  ;;  %v2335_v4 = vadd.f32 %v4981_v17, %v2299_v6  ;;  %v1625_v44 = vadd.f32 %v1624_v61, %v4958_v55  ;;  %v5044_v45 = vpop.f32.mrf.mxu1 }
 0x1f7   : > { %v2167_v15 = vpack.c.bf16 %v5005_v59, %v5005_v59  ;;  %v1744_v7 = vrot.slane %v5007_v25, 7  ;;  %v1969_v21 = vrot.slane %v5007_v25, 1 }
 0x1f8   : > { %v5015_v51 = vadd.f32 %v2046_v23, %v1911_v36  ;;  %v2366_v29 = vmax.f32 %v2334_v40, 0.0  ;;  %v2367_v30 = vmax.f32 %v2335_v4, 0.0 }
 0x1f9   : > { %2200 = vst.msk [vmem:[#allocation2 + $0x10] sm:$0xf] %vm2195_vm4, %v2167_v15  ;;  %v1788_v57 = vsel %vm1713_vm2, 0.0, %v1744_v7 }
 0x1fa   : > { %v2168_v38 = vpack.c.bf16 %v5015_v51, %v5015_v51  ;;  %v2397_v8 = vpack.c.bf16 %v2367_v30, %v2366_v29 }
 0x1fb   : > { %1850 = vrot.lane.b32.xlu1 %v1788_v57, %s4350_s28 }
 0x1fc   : > { %2201 = vst.msk [vmem:[#allocation2 + $0x14] sm:$0xf] %vm2195_vm4, %v2168_v38  ;;  %v1531_v19 = vpop.f32.mrf.mxu2 }
 0x1fd   : > { %v1823_v20 = vpop.permute.xlu0 %1822  ;;  %v5028_v12 = vadd.f32 %v1622_v13, %v1531_v19  ;;  %v1626_v52 = vpop.f32.mrf.mxu3 }
 0x1fe   : > { %v1912_v47 = vadd.f32 %v1823_v20, %v4796_v62  ;;  %v1627_v57 = vadd.f32 %v1626_v52, %v4993_v0  ;;  %v5064_v40 = vpop.f32.mrf.mxu1 }
 0x1ff   : > { %v1970_v1 = vrot.slane %v5028_v12, 1  ;;  %v1745_v37 = vrot.slane %v5028_v12, 7 }
 0x200   : > { %v5034_v54 = vadd.f32 %v2048_v31, %v1912_v47 }
 0x201   : > { %v2013_v14 = vsel %vm1938_vm3, %v1970_v1, 0.0  ;;  %v1971_v34 = vsel %vm1938_vm3, %v1969_v21, %v1970_v1  ;;  %v1746_v39 = vsel %vm1713_vm2, %v1744_v7, %v1745_v37  ;;  %v1829_v21 = vpop.permute.xlu2 %1828 }
 0x202   : > { %v2169_v62 = vpack.c.bf16 %v5034_v54, %v5034_v54  ;;  %2075 = vrot.lane.b32.xlu0 %v1971_v34, %s4351_s14  ;;  %1852 = vrot.lane.b32.xlu2 %v1746_v39, %s4350_s28 }
 0x203   : > { %2077 = vrot.lane.b32.xlu1 %v2013_v14, %s4351_s14  ;;  %v4272_v46 = vld [vmem:[#allocation2 + $0x10] sm:$0xff]   ;;  %2489 = vmatmul.bf16.gmra.mxu1 %v2397_v8 }
 0x204   : > { %2202 = vst.msk [vmem:[#allocation2 + $0x18] sm:$0xf] %vm2195_vm4, %v2169_v62  ;;  %v1534_v43 = vpop.f32.mrf.mxu2  ;;  %v4202_v33 = vunpack.c.l.bf16 %v4272_v46  ;;  %v4203_v18 = vunpack.c.h.bf16 %v4272_v46  ;;  %v1915_v62 = vadd.f32 %v1829_v21, %v4838_v53 }
 0x205   : > { %v1825_v49 = vpop.permute.xlu1 %1824  ;;  %v5048_v56 = vadd.f32 %v1625_v44, %v1534_v43  ;;  %v1629_v60 = vpop.f32.mrf.mxu3 }
 0x206   : > { %v1913_v58 = vadd.f32 %v1825_v49, %v4806_v16  ;;  %v2300_v36 = vmul.f32 %v4972_v50, %v4202_v33  ;;  %v2301_v55 = vmul.f32 %v4972_v50, %v4203_v18  ;;  %v2050_v61 = vpop.permute.xlu0 %2049  ;;  %v1630_v14 = vadd.f32 %v1629_v60, %v5017_v11 }
 0x207   : > { %v1747_v3 = vrot.slane %v5048_v56, 7  ;;  %v1972_v29 = vrot.slane %v5048_v56, 1 }
 0x208   : > { %v5054_v6 = vadd.f32 %v2050_v61, %v1913_v58  ;;  %v2336_v7 = vadd.f32 %v4981_v17, %v2300_v36  ;;  %v2337_v16 = vadd.f32 %v4981_v17, %v2301_v55  ;;  %v1440_v36 = vpop.f32.mrf.mxu1 }
 0x209   : > { %v1789_v23 = vsel %vm1713_vm2, 0.0, %v1747_v3 }
 0x20a   : > { %v2170_v15 = vpack.c.bf16 %v5054_v6, %v5054_v6  ;;  %1854 = vrot.lane.b32.xlu2 %v1789_v23, %s4350_s28  ;;  %v2368_v20 = vmax.f32 %v2336_v7, 0.0  ;;  %v2369_v47 = vmax.f32 %v2337_v16, 0.0 }
 0x20c   : > { %2203 = vst.msk [vmem:[#allocation2 + $0x1c] sm:$0xf] %vm2195_vm4, %v2170_v15  ;;  %v1536_v38 = vpop.f32.mrf.mxu2  ;;  %v2398_v37 = vpack.c.bf16 %v2369_v47, %v2368_v20 }
 0x20d   : > { %v1827_v4 = vpop.permute.xlu1 %1826  ;;  %v5066_v13 = vadd.f32 %v1627_v57, %v1536_v38  ;;  %v1631_v19 = vpop.f32.mrf.mxu3 }
 0x20e   : > { %v1914_v34 = vadd.f32 %v1827_v4, %v4825_v32  ;;  %v1632_v7 = vadd.f32 %v1631_v19, %v5044_v45  ;;  %v1831_v57 = vpop.permute.xlu2 %1830 }
 0x20f   : > { %v1973_v30 = vrot.slane %v5066_v13, 1  ;;  %v1748_v31 = vrot.slane %v5066_v13, 7 }
 0x210   : > { %v1443_v21 = vpop.f32.mrf.mxu1 }
 0x211   : > { %v2014_v0 = vsel %vm1938_vm3, %v1973_v30, 0.0  ;;  %v1974_v52 = vsel %vm1938_vm3, %v1972_v29, %v1973_v30  ;;  %v1749_v1 = vsel %vm1713_vm2, %v1747_v3, %v1748_v31 }
 0x212   : > { %2081 = vrot.lane.b32.xlu2 %v2014_v0, %s4351_s14  ;;  %2079 = vrot.lane.b32.xlu1 %v1974_v52, %s4351_s14 }
 0x213   : > { %1856 = vrot.lane.b32.xlu0 %v1749_v1, %s4350_s28  ;;  %v4273_v39 = vld [vmem:[#allocation2 + $0x18] sm:$0xff]   ;;  %2494 = vmatmul.bf16.gmra.mxu1 %v2398_v37 }
 0x214   : > { %v2052_v8 = vpop.permute.xlu0 %2051  ;;  %v1539_v44 = vpop.f32.mrf.mxu2  ;;  %v4206_v46 = vunpack.c.l.bf16 %v4273_v39  ;;  %v4207_v43 = vunpack.c.h.bf16 %v4273_v39 }
 0x215   : > { %v2054_v33 = vpop.permute.xlu1 %2053  ;;  %v5080_v18 = vadd.f32 %v2052_v8, %v1914_v34  ;;  %v5082_v49 = vadd.f32 %v1630_v14, %v1539_v44  ;;  %v1634_v11 = vpop.f32.mrf.mxu3  ;;  %v1916_v34 = vadd.f32 %v1831_v57, %v4859_v10 }
 0x216   : > { %v5084_v58 = vadd.f32 %v2054_v33, %v1915_v62  ;;  %v2302_v32 = vmul.f32 %v4972_v50, %v4206_v46  ;;  %v2303_v60 = vmul.f32 %v4972_v50, %v4207_v43  ;;  %v1635_v39 = vadd.f32 %v1634_v11, %v5064_v40  ;;  %v2058_v10 = vpop.permute.xlu2 %2057 }
 0x217   : > { %v2171_v53 = vpack.c.bf16 %v5080_v18, %v5080_v18  ;;  %v1750_v55 = vrot.slane %v5082_v49, 7  ;;  %v1975_v29 = vrot.slane %v5082_v49, 1 }
 0x218   : > { %v2172_v61 = vpack.c.bf16 %v5084_v58, %v5084_v58  ;;  %v2338_v23 = vadd.f32 %v4981_v17, %v2302_v32  ;;  %v2339_v15 = vadd.f32 %v4981_v17, %v2303_v60 }
 0x219   : > { %2204 = vst.msk [vmem:[#allocation2 + $0x20] sm:$0xf] %vm2195_vm4, %v2171_v53  ;;  %v1790_v3 = vsel %vm1713_vm2, 0.0, %v1750_v55 }
 0x21a   : > { %2205 = vst.msk [vmem:[#allocation2 + $0x24] sm:$0xf] %vm2195_vm4, %v2172_v61  ;;  %v2370_v20 = vmax.f32 %v2338_v23, 0.0  ;;  %v2371_v47 = vmax.f32 %v2339_v15, 0.0  ;;  %v1445_v15 = vpop.f32.mrf.mxu1 }
 0x21b   : > { %1858 = vrot.lane.b32.xlu0 %v1790_v3, %s4350_s28 }
 0x21c   : > { %v1541_v16 = vpop.f32.mrf.mxu2  ;;  %v2399_v1 = vpack.c.bf16 %v2371_v47, %v2370_v20 }
 0x21d   : > { %v5100_v38 = vadd.f32 %v1632_v7, %v1541_v16  ;;  %v1636_v4 = vpop.f32.mrf.mxu3 }
 0x21e   : > { %v1637_v7 = vadd.f32 %v1636_v4, %v1440_v36 }
 0x21f   : > { %v1976_v30 = vrot.slane %v5100_v38, 1  ;;  %v1751_v31 = vrot.slane %v5100_v38, 7 }
 0x221   : > { %v2015_v0 = vsel %vm1938_vm3, %v1976_v30, 0.0  ;;  %v1977_v45 = vsel %vm1938_vm3, %v1975_v29, %v1976_v30  ;;  %v1752_v19 = vsel %vm1713_vm2, %v1750_v55, %v1751_v31  ;;  %v4274_v52 = vld [vmem:[#allocation2 + $0x20] sm:$0xff]  }
 0x222   : > { %2083 = vrot.lane.b32.xlu2 %v1977_v45, %s4351_s14  ;;  %1860 = vrot.lane.b32.xlu1 %v1752_v19, %s4350_s28  ;;  %v4210_v37 = vunpack.c.l.bf16 %v4274_v52  ;;  %v4211_v14 = vunpack.c.h.bf16 %v4274_v52 }
 0x223   : > { %2085 = vrot.lane.b32.xlu0 %v2015_v0, %s4351_s14  ;;  %2499 = vmatmul.bf16.gmra.mxu1 %v2399_v1  ;;  %v2060_v0 = vpop.permute.xlu2 %2059 }
 0x224   : > { %v2056_v62 = vpop.permute.xlu1 %2055  ;;  %v1544_v8 = vpop.f32.mrf.mxu2  ;;  %v2304_v60 = vmul.f32 %v4972_v50, %v4210_v37  ;;  %v2305_v53 = vmul.f32 %v4972_v50, %v4211_v14 }
 0x225   : > { %v5113_v44 = vadd.f32 %v2056_v62, %v1916_v34  ;;  %v1833_v46 = vpop.permute.xlu0 %1832  ;;  %v5115_v43 = vadd.f32 %v1635_v39, %v1544_v8  ;;  %v1639_v32 = vpop.f32.mrf.mxu3 }
 0x226   : > { %v1917_v33 = vadd.f32 %v1833_v46, %v4868_v27  ;;  %v2340_v3 = vadd.f32 %v4981_v17, %v2304_v60  ;;  %v2341_v23 = vadd.f32 %v4981_v17, %v2305_v53  ;;  %v1640_v34 = vadd.f32 %v1639_v32, %v1443_v21  ;;  %v1448_v60 = vpop.f32.mrf.mxu1 }
 0x227   : > { %v2173_v40 = vpack.c.bf16 %v5113_v44, %v5113_v44  ;;  %v1753_v11 = vrot.slane %v5115_v43, 7  ;;  %v1978_v45 = vrot.slane %v5115_v43, 1 }
 0x228   : > { %v5123_v55 = vadd.f32 %v2058_v10, %v1917_v33  ;;  %v2372_v30 = vmax.f32 %v2340_v3, 0.0  ;;  %v2373_v31 = vmax.f32 %v2341_v23, 0.0 }
 0x229   : > { %2206 = vst.msk [vmem:[#allocation2 + $0x28] sm:$0xf] %vm2195_vm4, %v2173_v40  ;;  %v1791_v61 = vsel %vm1713_vm2, 0.0, %v1753_v11 }
 0x22a   : > { %v2174_v27 = vpack.c.bf16 %v5123_v55, %v5123_v55  ;;  %1862 = vrot.lane.b32.xlu1 %v1791_v61, %s4350_s28  ;;  %v2400_v14 = vpack.c.bf16 %v2373_v31, %v2372_v30 }
 0x22c   : > { %2207 = vst.msk [vmem:[#allocation2 + $0x2c] sm:$0xf] %vm2195_vm4, %v2174_v27  ;;  %v1546_v16 = vpop.f32.mrf.mxu2 }
 0x22d   : > { %v1835_v57 = vpop.permute.xlu0 %1834  ;;  %v5133_v20 = vadd.f32 %v1637_v7, %v1546_v16  ;;  %v1641_v29 = vpop.f32.mrf.mxu3 }
 0x22e   : > { %v1918_v47 = vadd.f32 %v1835_v57, %v4882_v41  ;;  %v1642_v16 = vadd.f32 %v1641_v29, %v1445_v15 }
 0x22f   : > { %v1979_v19 = vrot.slane %v5133_v20, 1  ;;  %v1754_v52 = vrot.slane %v5133_v20, 7 }
 0x230   : > { %v5139_v1 = vadd.f32 %v2060_v0, %v1918_v47 }
 0x231   : > { %v2016_v36 = vsel %vm1938_vm3, %v1979_v19, 0.0  ;;  %v1980_v4 = vsel %vm1938_vm3, %v1978_v45, %v1979_v19  ;;  %v1755_v37 = vsel %vm1713_vm2, %v1753_v11, %v1754_v52 }
 0x232   : > { %v2175_v41 = vpack.c.bf16 %v5139_v1, %v5139_v1  ;;  %2089 = vrot.lane.b32.xlu1 %v2016_v36, %s4351_s14  ;;  %2087 = vrot.lane.b32.xlu0 %v1980_v4, %s4351_s14  ;;  %v1450_v4 = vpop.f32.mrf.mxu1 }
 0x233   : > { %1864 = vrot.lane.b32.xlu2 %v1755_v37, %s4350_s28  ;;  %v4275_v39 = vld [vmem:[#allocation2 + $0x28] sm:$0xff]   ;;  %2504 = vmatmul.bf16.gmra.mxu1 %v2400_v14  ;;  %v1841_v37 = vpop.permute.xlu2 %1840 }
 0x234   : > { %2208 = vst.msk [vmem:[#allocation2 + $0x30] sm:$0xf] %vm2195_vm4, %v2175_v41  ;;  %v1837_v62 = vpop.permute.xlu1 %1836  ;;  %v1549_v8 = vpop.f32.mrf.mxu2  ;;  %v4214_v46 = vunpack.c.l.bf16 %v4275_v39  ;;  %v4215_v33 = vunpack.c.h.bf16 %v4275_v39 }
 0x235   : > { %v1919_v53 = vadd.f32 %v1837_v62, %v4891_v48  ;;  %v5151_v10 = vadd.f32 %v1640_v34, %v1549_v8  ;;  %v2062_v40 = vpop.permute.xlu0 %2061  ;;  %v1644_v11 = vpop.f32.mrf.mxu3  ;;  %v1921_v8 = vadd.f32 %v1841_v37, %v4912_v9 }
 0x236   : > { %v2306_v61 = vmul.f32 %v4972_v50, %v4214_v46  ;;  %v2307_v21 = vmul.f32 %v4972_v50, %v4215_v33  ;;  %v5170_v15 = vadd.f32 %v1644_v11, %v1448_v60 }
 0x237   : > { %v5155_v32 = vadd.f32 %v2062_v40, %v1919_v53  ;;  %v1756_v27 = vrot.slane %v5151_v10, 7  ;;  %v1981_v19 = vrot.slane %v5151_v10, 1 }
 0x238   : > { %v2342_v7 = vadd.f32 %v4981_v17, %v2306_v61  ;;  %v2343_v48 = vadd.f32 %v4981_v17, %v2307_v21  ;;  %v1759_v11 = vrot.slane %v5170_v15, 7 }
 0x239   : > { %v2176_v3 = vpack.c.bf16 %v5155_v32, %v5155_v32  ;;  %v1792_v23 = vsel %vm1713_vm2, 0.0, %v1756_v27 }
 0x23a   : > { %v2374_v0 = vmax.f32 %v2342_v7, 0.0  ;;  %v2375_v45 = vmax.f32 %v2343_v48, 0.0  ;;  %v1984_v48 = vrot.slane %v5170_v15, 1 }
 0x23b   : > { %2209 = vst.msk [vmem:[#allocation2 + $0x34] sm:$0xf] %vm2195_vm4, %v2176_v3  ;;  %1866 = vrot.lane.b32.xlu2 %v1792_v23, %s4350_s28 }
 0x23c   : > { %v1839_v57 = vpop.permute.xlu1 %1838  ;;  %v1551_v47 = vpop.f32.mrf.mxu2  ;;  %v2401_v39 = vpack.c.bf16 %v2375_v45, %v2374_v0 }
 0x23d   : > { %v5165_v30 = vadd.f32 %v1642_v16, %v1551_v47  ;;  %v1646_v31 = vpop.f32.mrf.mxu3  ;;  %v1920_v46 = vadd.f32 %v1839_v57, %v4905_v63  ;;  %v1793_v57 = vsel %vm1713_vm2, 0.0, %v1759_v11  ;;  %v1843_v45 = vpop.permute.xlu2 %1842 }
 0x23e   : > { %v5172_v29 = vadd.f32 %v1646_v31, %v1450_v4 }
 0x23f   : > { %v1982_v52 = vrot.slane %v5165_v30, 1  ;;  %v1757_v36 = vrot.slane %v5165_v30, 7 }
 0x240   : > { %v1985_v3 = vrot.slane %v5172_v29, 1 }
 0x241   : > { %v2017_v41 = vsel %vm1938_vm3, %v1982_v52, 0.0  ;;  %v1983_v14 = vsel %vm1938_vm3, %v1981_v19, %v1982_v52  ;;  %v1758_v34 = vsel %vm1713_vm2, %v1756_v27, %v1757_v36  ;;  %v1760_v27 = vrot.slane %v5172_v29, 7 }
 0x242   : > { %2091 = vrot.lane.b32.xlu1 %v1983_v14, %s4351_s14  ;;  %1868 = vrot.lane.b32.xlu0 %v1758_v34, %s4350_s28  ;;  %v4276_v62 = vld [vmem:[#allocation2 + $0x30] sm:$0xff]   ;;  %v1986_v47 = vsel %vm1938_vm3, %v1984_v48, %v1985_v3  ;;  %v2018_v36 = vsel %vm1938_vm3, %v1985_v3, 0.0  ;;  %v1922_v34 = vadd.f32 %v1843_v45, %v4928_v28 }
 0x243   : > { %2093 = vrot.lane.b32.xlu2 %v2017_v41, %s4351_s14  ;;  %v4218_v33 = vunpack.c.l.bf16 %v4276_v62  ;;  %v4219_v60 = vunpack.c.h.bf16 %v4276_v62  ;;  %2509 = vmatmul.bf16.gmra.mxu1 %v2401_v39  ;;  %v1761_v16 = vsel %vm1713_vm2, %v1759_v11, %v1760_v27 }
 0x244   : > { %v2066_v53 = vpop.permute.xlu1 %2065  ;;  %v2064_v40 = vpop.permute.xlu0 %2063 }
 0x245   : > { %v5183_v61 = vadd.f32 %v2066_v53, %v1921_v8  ;;  %v5185_v21 = vadd.f32 %v2064_v40, %v1920_v46  ;;  %v2308_v9 = vmul.f32 %v4972_v50, %v4218_v33  ;;  %v2309_v63 = vmul.f32 %v4972_v50, %v4219_v60  ;;  %v2070_v33 = vpop.permute.xlu2 %2069 }
 0x247   : > { %v2178_v23 = vpack.c.bf16 %v5183_v61, %v5183_v61  ;;  %v2177_v7 = vpack.c.bf16 %v5185_v21, %v5185_v21  ;;  %v2344_v31 = vadd.f32 %v4981_v17, %v2308_v9  ;;  %v2345_v0 = vadd.f32 %v4981_v17, %v2309_v63 }
 0x249   : > { %2211 = vst.msk [vmem:[#allocation2 + $0x3c] sm:$0xf] %vm2195_vm4, %v2178_v23  ;;  %v2376_v19 = vmax.f32 %v2344_v31, 0.0  ;;  %v2377_v52 = vmax.f32 %v2345_v0, 0.0 }
 0x24a   : > { %2210 = vst.msk [vmem:[#allocation2 + $0x38] sm:$0xf] %vm2195_vm4, %v2177_v7  ;;  %1872 = vrot.lane.b32.xlu1 %v1761_v16, %s4350_s28  ;;  %1870 = vrot.lane.b32.xlu0 %v1793_v57, %s4350_s28 }
 0x24b   : > { %2095 = vrot.lane.b32.xlu2 %v1986_v47, %s4351_s14  ;;  %v2402_v37 = vpack.c.bf16 %v2377_v52, %v2376_v19 }
 0x24d   : > { %v2072_v63 = vpop.permute.xlu2 %2071 }
 0x251   : > { %v4277_v4 = vld [vmem:[#allocation2 + $0x38] sm:$0xff]  }
 0x252   : > { %2097 = vrot.lane.b32.xlu0 %v2018_v36, %s4351_s14  ;;  %v4222_v41 = vunpack.c.l.bf16 %v4277_v4  ;;  %v4223_v14 = vunpack.c.h.bf16 %v4277_v4 }
 0x253   : > { %2514 = vmatmul.bf16.gmra.mxu1 %v2402_v37 }
 0x254   : > { %v2068_v39 = vpop.permute.xlu1 %2067  ;;  %v1845_v62 = vpop.permute.xlu0 %1844  ;;  %v2310_v60 = vmul.f32 %v4972_v50, %v4222_v41  ;;  %v2311_v53 = vmul.f32 %v4972_v50, %v4223_v14 }
 0x255   : > { %v5209_v8 = vadd.f32 %v2068_v39, %v1922_v34  ;;  %v1923_v46 = vadd.f32 %v1845_v62, %v4941_v22 }
 0x256   : > { %v2346_v27 = vadd.f32 %v4981_v17, %v2310_v60  ;;  %v2347_v3 = vadd.f32 %v4981_v17, %v2311_v53  ;;  %v5248_v60 = vld [vmem:[%s6053_s11] ss:$0 sm:$0xff] }
 0x257   : > { %v2179_v40 = vpack.c.bf16 %v5209_v8, %v5209_v8  ;;  %v5216_v11 = vadd.f32 %v2070_v33, %v1923_v46 }
 0x258   : > { %v2378_v23 = vmax.f32 %v2346_v27, 0.0  ;;  %v2379_v7 = vmax.f32 %v2347_v3, 0.0 }
 0x259   : > { %2212 = vst.msk [vmem:[#allocation2 + $0x40] sm:$0xf] %vm2195_vm4, %v2179_v40  ;;  %v2180_v28 = vpack.c.bf16 %v5216_v11, %v5216_v11 }
 0x25a   : > { %v2403_v57 = vpack.c.bf16 %v2379_v7, %v2378_v23 }
 0x25b   : > { %2213 = vst.msk [vmem:[#allocation2 + $0x44] sm:$0xf] %vm2195_vm4, %v2180_v28 }
 0x25c   : > { %v1847_v22 = vpop.permute.xlu0 %1846  ;;  %v1853_v46 = vpop.permute.xlu2 %1852 }
 0x25d   : > { %v1924_v9 = vadd.f32 %v1847_v22, %v4962_v2  ;;  %v1927_v3 = vadd.f32 %v1853_v46, %v5028_v12 }
 0x25f   : > { %v5225_v48 = vadd.f32 %v2072_v63, %v1924_v9 }
 0x261   : > { %v2181_v16 = vpack.c.bf16 %v5225_v48, %v5225_v48 }
 0x262   : > { %v4278_v47 = vld [vmem:[#allocation2 + $0x40] sm:$0xff]  }
 0x263   : > { %2214 = vst.msk [vmem:[#allocation2 + $0x48] sm:$0xf] %vm2195_vm4, %v2181_v16  ;;  %v4226_v31 = vunpack.c.l.bf16 %v4278_v47  ;;  %v4227_v0 = vunpack.c.h.bf16 %v4278_v47  ;;  %2519 = vmatmul.bf16.gmra.mxu1 %v2403_v57 }
 0x264   : > { %v2074_v36 = vpop.permute.xlu0 %2073 }
 0x265   : > { %v1849_v45 = vpop.permute.xlu1 %1848  ;;  %v2312_v2 = vmul.f32 %v4972_v50, %v4226_v31  ;;  %v2313_v52 = vmul.f32 %v4972_v50, %v4227_v0 }
 0x266   : > { %v1925_v19 = vadd.f32 %v1849_v45, %v4988_v24  ;;  %v5243_v24 = vld [vmem:[%s6052_s10] ss:$0 sm:$0xff] }
 0x267   : > { %v2348_v41 = vadd.f32 %v4981_v17, %v2312_v2  ;;  %v2349_v14 = vadd.f32 %v4981_v17, %v2313_v52 }
 0x268   : > { %v5233_v4 = vadd.f32 %v2074_v36, %v1925_v19 }
 0x269   : > { %v2380_v39 = vmax.f32 %v2348_v41, 0.0  ;;  %v2381_v62 = vmax.f32 %v2349_v14, 0.0 }
 0x26a   : > { %v2182_v37 = vpack.c.bf16 %v5233_v4, %v5233_v4 }
 0x26b   : > { %v2404_v40 = vpack.c.bf16 %v2381_v62, %v2380_v39 }
 0x26c   : > { %2215 = vst.msk [vmem:[#allocation2 + $0x4c] sm:$0xf] %vm2195_vm4, %v2182_v37  ;;  %v1855_v37 = vpop.permute.xlu2 %1854 }
 0x26d   : > { %v1851_v34 = vpop.permute.xlu1 %1850 }
 0x26e   : > { %v1926_v28 = vadd.f32 %v1851_v34, %v5007_v25 }
 0x270   : > { %v2485_v33 = vpop.f32.mrf.mxu1 }
 0x271   : > { %v2569_v53 = vmul.f32 %v5243_v24, %v2485_v33 }
 0x273   : > { %v4279_v27 = vld [vmem:[#allocation2 + $0x48] sm:$0xff]   ;;  %2524 = vmatmul.bf16.gmra.mxu1 %v2404_v40  ;;  %v2605_v23 = vadd.f32 %v5248_v60, %v2569_v53 }
 0x274   : > { %v2076_v22 = vpop.permute.xlu0 %2075  ;;  %v4230_v9 = vunpack.c.l.bf16 %v4279_v27  ;;  %v4231_v63 = vunpack.c.h.bf16 %v4279_v27 }
 0x275   : > { %v2078_v7 = vpop.permute.xlu1 %2077  ;;  %v5254_v16 = vadd.f32 %v2076_v22, %v1926_v28  ;;  %v2637_v0 = vmax.f32 %v2605_v23, 0.0 }
 0x276   : > { %v5256_v57 = vadd.f32 %v2078_v7, %v1927_v3  ;;  %v2314_v47 = vmul.f32 %v4972_v50, %v4230_v9  ;;  %v2315_v31 = vmul.f32 %v4972_v50, %v4231_v63  ;;  %v1928_v9 = vadd.f32 %v1855_v37, %v5048_v56 }
 0x277   : > { %v2183_v25 = vpack.c.bf16 %v5254_v16, %v5254_v16  ;;  %v2669_v41 = vpack.c.bf16 %v2637_v0, %v2637_v0 }
 0x278   : > { %v2184_v12 = vpack.c.bf16 %v5256_v57, %v5256_v57  ;;  %v2487_v45 = vpop.f32.mrf.mxu1  ;;  %v2350_v19 = vadd.f32 %v4981_v17, %v2314_v47  ;;  %v2351_v2 = vadd.f32 %v4981_v17, %v2315_v31 }
 0x279   : > { %2216 = vst.msk [vmem:[#allocation2 + $0x50] sm:$0xf] %vm2195_vm4, %v2183_v25  ;;  %v2570_v52 = vmul.f32 %v5243_v24, %v2487_v45  ;;  %v2736_v46 = vunpack.c.l.b16 %v2669_v41  ;;  %v2082_v45 = vpop.permute.xlu2 %2081 }
 0x27a   : > { %2217 = vst.msk [vmem:[#allocation2 + $0x54] sm:$0xf] %vm2195_vm4, %v2184_v12  ;;  %v2382_v14 = vmax.f32 %v2350_v19, 0.0  ;;  %v2383_v34 = vmax.f32 %v2351_v2, 0.0 }
 0x27b   : > { %v2606_v36 = vadd.f32 %v5248_v60, %v2570_v52 }
 0x27c   : > { %v2405_v53 = vpack.c.bf16 %v2383_v34, %v2382_v14 }
 0x27d   : > { %v2638_v39 = vmax.f32 %v2606_v36, 0.0 }
 0x27f   : > { %v2670_v62 = vpack.c.bf16 %v2638_v39, %v2638_v39 }
 0x280   : > { %v2490_v33 = vpop.f32.mrf.mxu1 }
 0x281   : > { %v4280_v40 = vld [vmem:[#allocation2 + $0x50] sm:$0xff]   ;;  %v2737_v28 = vunpack.c.l.b16 %v2670_v62  ;;  %v2571_v27 = vmul.f32 %v5243_v24, %v2490_v33 }
 0x282   : > { %v4234_v3 = vunpack.c.l.bf16 %v4280_v40  ;;  %v4235_v22 = vunpack.c.h.bf16 %v4280_v40  ;;  %v2084_v40 = vpop.permute.xlu2 %2083 }
 0x283   : > { %v2766_v63 = vpack.c.b16 %v2737_v28, %v2736_v46  ;;  %2529 = vmatmul.bf16.gmra.mxu1 %v2405_v53  ;;  %v2607_v7 = vadd.f32 %v5248_v60, %v2571_v27 }
 0x284   : > { %v2080_v23 = vpop.permute.xlu1 %2079  ;;  %v2316_v12 = vmul.f32 %v4972_v50, %v4234_v3  ;;  %v2317_v0 = vmul.f32 %v4972_v50, %v4235_v22 }
 0x285   : > { %v5273_v47 = vadd.f32 %v2080_v23, %v1928_v9  ;;  %v1857_v31 = vpop.permute.xlu0 %1856  ;;  %4046 = vmatmul.msk.bf16.vlgmr.msrb.gmra.mxu2 %vm1323_vm1, %v2766_v63  ;;  %4086 = vmatmul.msk.bf16.vlgmr.msrb.gmra.mxu0 %vm1323_vm1, %v2766_v63  ;;  %v2639_v2 = vmax.f32 %v2607_v7, 0.0 }
 0x286   : > { %v1929_v25 = vadd.f32 %v1857_v31, %v5066_v13  ;;  %v2352_v37 = vadd.f32 %v4981_v17, %v2316_v12  ;;  %v2353_v41 = vadd.f32 %v4981_v17, %v2317_v0 }
 0x287   : > { %6065 = vst [vmem:[#allocation3_spill] sm:$0xff] %v5273_v47  ;;  %v2185_v56 = vpack.c.bf16 %v5273_v47, %v5273_v47  ;;  %v2671_v34 = vpack.c.bf16 %v2639_v2, %v2639_v2 }
 0x288   : > { %v5282_v19 = vadd.f32 %v2082_v45, %v1929_v25  ;;  %v2492_v52 = vpop.f32.mrf.mxu1  ;;  %v2384_v33 = vmax.f32 %v2352_v37, 0.0  ;;  %v2385_v53 = vmax.f32 %v2353_v41, 0.0 }
 0x289   : > { %2218 = vst.msk [vmem:[#allocation2 + $0x58] sm:$0xf] %vm2195_vm4, %v2185_v56  ;;  %v2572_v36 = vmul.f32 %v5243_v24, %v2492_v52  ;;  %v2738_v3 = vunpack.c.l.b16 %v2671_v34 }
 0x28a   : > { %6066 = vst [vmem:[#allocation4_spill] sm:$0xff] %v5282_v19  ;;  %v2186_v13 = vpack.c.bf16 %v5282_v19, %v5282_v19  ;;  %v2406_v7 = vpack.c.bf16 %v2385_v53, %v2384_v33 }
 0x28b   : > { %v2608_v14 = vadd.f32 %v5248_v60, %v2572_v36 }
 0x28c   : > { %2219 = vst.msk [vmem:[#allocation2 + $0x5c] sm:$0xf] %vm2195_vm4, %v2186_v13 }
 0x28d   : > { %v1859_v39 = vpop.permute.xlu0 %1858  ;;  %v2640_v62 = vmax.f32 %v2608_v14, 0.0 }
 0x28e   : > { %v1930_v46 = vadd.f32 %v1859_v39, %v5082_v49 }
 0x28f   : > { %v2672_v28 = vpack.c.bf16 %v2640_v62, %v2640_v62 }
 0x290   : > { %v5293_v27 = vadd.f32 %v2084_v40, %v1930_v46  ;;  %v2495_v22 = vpop.f32.mrf.mxu1 }
 0x291   : > { %v2739_v9 = vunpack.c.l.b16 %v2672_v28  ;;  %v2573_v23 = vmul.f32 %v5243_v24, %v2495_v22 }
 0x292   : > { %v2187_v63 = vpack.c.bf16 %v5293_v27, %v5293_v27 }
 0x293   : > { %v4281_v31 = vld [vmem:[#allocation2 + $0x58] sm:$0xff]   ;;  %v2767_v25 = vpack.c.b16 %v2739_v9, %v2738_v3  ;;  %2534 = vmatmul.bf16.gmra.mxu1 %v2406_v7  ;;  %v2609_v56 = vadd.f32 %v5248_v60, %v2573_v23  ;;  %v1865_v3 = vpop.permute.xlu2 %1864 }
 0x294   : > { %2220 = vst.msk [vmem:[#allocation2 + $0x60] sm:$0xf] %vm2195_vm4, %v2187_v63  ;;  %v1861_v49 = vpop.permute.xlu1 %1860  ;;  %v4238_v12 = vunpack.c.l.bf16 %v4281_v31  ;;  %v4239_v0 = vunpack.c.h.bf16 %v4281_v31 }
 0x295   : > { %v1931_v45 = vadd.f32 %v1861_v49, %v5100_v38  ;;  %v2086_v2 = vpop.permute.xlu0 %2085  ;;  %4047 = vmatmul.msk.bf16.gmra.mxu2 %vm1323_vm1, %v2767_v25  ;;  %4067 = vmatmul.msk.bf16.vlgmr.msrb.gmra.mxu3 %vm1323_vm1, %v2767_v25  ;;  %v2641_v38 = vmax.f32 %v2609_v56, 0.0  ;;  %v1933_v49 = vadd.f32 %v1865_v3, %v5133_v20 }
 0x296   : > { %v2318_v52 = vmul.f32 %v4972_v50, %v4238_v12  ;;  %v2319_v13 = vmul.f32 %v4972_v50, %v4239_v0  ;;  %4087 = vmatmul.msk.bf16.gmra.mxu0 %vm1323_vm1, %v2767_v25 }
 0x297   : > { %v5305_v36 = vadd.f32 %v2086_v2, %v1931_v45  ;;  %v2673_v33 = vpack.c.bf16 %v2641_v38, %v2641_v38 }
 0x298   : > { %v2497_v41 = vpop.f32.mrf.mxu1  ;;  %v2354_v34 = vadd.f32 %v4981_v17, %v2318_v52  ;;  %v2355_v39 = vadd.f32 %v4981_v17, %v2319_v13 }
 0x299   : > { %6067 = vst [vmem:[#allocation5_spill] sm:$0xff] %v5305_v36  ;;  %v2188_v37 = vpack.c.bf16 %v5305_v36, %v5305_v36  ;;  %v2574_v14 = vmul.f32 %v5243_v24, %v2497_v41  ;;  %v2740_v63 = vunpack.c.l.b16 %v2673_v33 }
 0x29a   : > { %v2386_v40 = vmax.f32 %v2354_v34, 0.0  ;;  %v2387_v28 = vmax.f32 %v2355_v39, 0.0 }
 0x29b   : > { %2221 = vst.msk [vmem:[#allocation2 + $0x64] sm:$0xf] %vm2195_vm4, %v2188_v37  ;;  %v2610_v62 = vadd.f32 %v5248_v60, %v2574_v14  ;;  %v1867_v34 = vpop.permute.xlu2 %1866 }
 0x29c   : > { %v1863_v46 = vpop.permute.xlu1 %1862  ;;  %v2407_v31 = vpack.c.bf16 %v2387_v28, %v2386_v40 }
 0x29d   : > { %v2642_v53 = vmax.f32 %v2610_v62, 0.0  ;;  %v1932_v12 = vadd.f32 %v1863_v46, %v5115_v43 }
 0x29f   : > { %v2674_v22 = vpack.c.bf16 %v2642_v53, %v2642_v53 }
 0x2a0   : > { %v2500_v9 = vpop.f32.mrf.mxu1 }
 0x2a1   : > { %v2741_v23 = vunpack.c.l.b16 %v2674_v22  ;;  %v2575_v7 = vmul.f32 %v5243_v24, %v2500_v9 }
 0x2a2   : > { %v4282_v25 = vld [vmem:[#allocation2 + $0x60] sm:$0xff]  }
 0x2a3   : > { %v4242_v0 = vunpack.c.l.bf16 %v4282_v25  ;;  %v4243_v45 = vunpack.c.h.bf16 %v4282_v25  ;;  %v2768_v56 = vpack.c.b16 %v2741_v23, %v2740_v63  ;;  %v2611_v2 = vadd.f32 %v5248_v60, %v2575_v7  ;;  %2539 = vmatmul.bf16.gmra.mxu1 %v2407_v31 }
 0x2a4   : > { %v2090_v52 = vpop.permute.xlu1 %2089  ;;  %v2088_v13 = vpop.permute.xlu0 %2087 }
 0x2a5   : > { %v5319_v37 = vadd.f32 %v2090_v52, %v1933_v49  ;;  %v5321_v41 = vadd.f32 %v2088_v13, %v1932_v12  ;;  %v2320_v38 = vmul.f32 %v4972_v50, %v4242_v0  ;;  %v2321_v14 = vmul.f32 %v4972_v50, %v4243_v45  ;;  %4048 = vmatmul.msk.bf16.gmra.mxu2 %vm1323_vm1, %v2768_v56 }
 0x2a6   : > { %4068 = vmatmul.msk.bf16.gmra.mxu3 %vm1323_vm1, %v2768_v56  ;;  %4088 = vmatmul.msk.bf16.gmra.mxu0 %vm1323_vm1, %v2768_v56  ;;  %v2643_v39 = vmax.f32 %v2611_v2, 0.0  ;;  %v1934_v56 = vadd.f32 %v1867_v34, %v5151_v10  ;;  %v2094_v2 = vpop.permute.xlu2 %2093 }
 0x2a7   : > { %6068 = vst [vmem:[#allocation6_spill] sm:$0xff] %v5319_v37  ;;  %v2190_v43 = vpack.c.bf16 %v5319_v37, %v5319_v37  ;;  %v2189_v20 = vpack.c.bf16 %v5321_v41, %v5321_v41  ;;  %v2356_v46 = vadd.f32 %v4981_v17, %v2320_v38  ;;  %v2357_v33 = vadd.f32 %v4981_v17, %v2321_v14 }
 0x2a8   : > { %6069 = vst [vmem:[#allocation7_spill] sm:$0xff] %v5321_v41  ;;  %v2502_v62 = vpop.f32.mrf.mxu1  ;;  %v2675_v28 = vpack.c.bf16 %v2643_v39, %v2643_v39 }
 0x2a9   : > { %2223 = vst.msk [vmem:[#allocation2 + $0x6c] sm:$0xf] %vm2195_vm4, %v2190_v43  ;;  %v2576_v53 = vmul.f32 %v5243_v24, %v2502_v62  ;;  %v2388_v3 = vmax.f32 %v2356_v46, 0.0  ;;  %v2389_v22 = vmax.f32 %v2357_v33, 0.0 }
 0x2aa   : > { %2222 = vst.msk [vmem:[#allocation2 + $0x68] sm:$0xf] %vm2195_vm4, %v2189_v20  ;;  %v2742_v23 = vunpack.c.l.b16 %v2675_v28 }
 0x2ab   : > { %v2612_v40 = vadd.f32 %v5248_v60, %v2576_v53  ;;  %v2408_v31 = vpack.c.bf16 %v2389_v22, %v2388_v3 }
 0x2ad   : > { %v2644_v9 = vmax.f32 %v2612_v40, 0.0 }
 0x2af   : > { %v2676_v63 = vpack.c.bf16 %v2644_v9, %v2644_v9  ;;  %v2096_v9 = vpop.permute.xlu2 %2095 }
 0x2b0   : > { %v2505_v7 = vpop.f32.mrf.mxu1 }
 0x2b1   : > { %v4283_v25 = vld [vmem:[#allocation2 + $0x68] sm:$0xff]   ;;  %v2743_v49 = vunpack.c.l.b16 %v2676_v63  ;;  %v2577_v12 = vmul.f32 %v5243_v24, %v2505_v7 }
 0x2b2   : > { %v4246_v0 = vunpack.c.l.bf16 %v4283_v25  ;;  %v4247_v45 = vunpack.c.h.bf16 %v4283_v25 }
 0x2b3   : > { %v2769_v52 = vpack.c.b16 %v2743_v49, %v2742_v23  ;;  %2544 = vmatmul.bf16.gmra.mxu1 %v2408_v31  ;;  %v2613_v20 = vadd.f32 %v5248_v60, %v2577_v12 }
 0x2b4   : > { %v2092_v13 = vpop.permute.xlu1 %2091  ;;  %v1869_v38 = vpop.permute.xlu0 %1868  ;;  %v2322_v39 = vmul.f32 %v4972_v50, %v4246_v0  ;;  %v2323_v62 = vmul.f32 %v4972_v50, %v4247_v45 }
 0x2b5   : > { %v5340_v14 = vadd.f32 %v2092_v13, %v1934_v56  ;;  %v1935_v43 = vadd.f32 %v1869_v38, %v5165_v30  ;;  %4049 = vmatmul.msk.bf16.gmra.mxu2 %vm1323_vm1, %v2769_v52  ;;  %v2645_v33 = vmax.f32 %v2613_v20, 0.0 }
 0x2b6   : > { %4069 = vmatmul.msk.bf16.gmra.mxu3 %vm1323_vm1, %v2769_v52  ;;  %4089 = vmatmul.msk.bf16.gmra.mxu0 %vm1323_vm1, %v2769_v52  ;;  %v2358_v40 = vadd.f32 %v4981_v17, %v2322_v39  ;;  %v2359_v50 = vadd.f32 %v4981_v17, %v2323_v62 }
 0x2b7   : > { %6070 = vst [vmem:[#allocation8_spill] sm:$0xff] %v5340_v14  ;;  %v2191_v10 = vpack.c.bf16 %v5340_v14, %v5340_v14  ;;  %v5350_v34 = vadd.f32 %v2094_v2, %v1935_v43  ;;  %v2677_v63 = vpack.c.bf16 %v2645_v33, %v2645_v33 }
 0x2b8   : > { %v2507_v46 = vpop.f32.mrf.mxu1  ;;  %v2390_v7 = vmax.f32 %v2358_v40, 0.0  ;;  %v2391_v31 = vmax.f32 %v2359_v50, 0.0  ;;  %v4308_v50 = vld [vmem:[%s6050_s8] ss:$0 sm:$0xff] }
 0x2b9   : > { %6071 = vst [vmem:[#allocation9_spill] sm:$0xff] %v5350_v34  ;;  %v2192_v30 = vpack.c.bf16 %v5350_v34, %v5350_v34  ;;  %v2578_v53 = vmul.f32 %v5243_v24, %v2507_v46  ;;  %v2744_v45 = vunpack.c.l.b16 %v2677_v63 }
 0x2ba   : > { %2224 = vst.msk [vmem:[#allocation2 + $0x70] sm:$0xf] %vm2195_vm4, %v2191_v10  ;;  %v2409_v52 = vpack.c.bf16 %v2391_v31, %v2390_v7 }
 0x2bb   : > { %2225 = vst.msk [vmem:[#allocation2 + $0x74] sm:$0xf] %vm2195_vm4, %v2192_v30  ;;  %v2614_v28 = vadd.f32 %v5248_v60, %v2578_v53  ;;  %v4307_v30 = vld [vmem:[%s6049_s7] ss:$0 sm:$0xff] }
 0x2bc   : > { %v1871_v3 = vpop.permute.xlu0 %1870  ;;  %v1873_v12 = vpop.permute.xlu1 %1872 }
 0x2bd   : > { %v1936_v22 = vadd.f32 %v1871_v3, %v5170_v15  ;;  %v2646_v23 = vmax.f32 %v2614_v28, 0.0  ;;  %v1937_v15 = vadd.f32 %v1873_v12, %v5172_v29 }
 0x2bf   : > { %v5362_v25 = vadd.f32 %v2096_v9, %v1936_v22  ;;  %v2678_v49 = vpack.c.bf16 %v2646_v23, %v2646_v23 }
 0x2c0   : > { %v2510_v17 = vpop.f32.mrf.mxu1 }
 0x2c1   : > { %6072 = vst [vmem:[#allocation10_spill] sm:$0xff] %v5362_v25  ;;  %v2193_v0 = vpack.c.bf16 %v5362_v25, %v5362_v25  ;;  %v2745_v56 = vunpack.c.l.b16 %v2678_v49  ;;  %v2579_v2 = vmul.f32 %v5243_v24, %v2510_v17 }
 0x2c2   : > { %v4284_v13 = vld [vmem:[#allocation2 + $0x70] sm:$0xff]  }
 0x2c3   : > { %2226 = vst.msk [vmem:[#allocation2 + $0x78] sm:$0xf] %vm2195_vm4, %v2193_v0  ;;  %v4250_v38 = vunpack.c.l.bf16 %v4284_v13  ;;  %v4251_v43 = vunpack.c.h.bf16 %v4284_v13  ;;  %v2770_v20 = vpack.c.b16 %v2745_v56, %v2744_v45  ;;  %2549 = vmatmul.bf16.gmra.mxu1 %v2409_v52  ;;  %v2615_v62 = vadd.f32 %v5248_v60, %v2579_v2 }
 0x2c4   : > { %v2098_v39 = vpop.permute.xlu0 %2097 }
 0x2c5   : > { %v5370_v10 = vadd.f32 %v2098_v39, %v1937_v15  ;;  %v2324_v46 = vmul.f32 %v4307_v30, %v4250_v38  ;;  %v2325_v33 = vmul.f32 %v4307_v30, %v4251_v43  ;;  %4050 = vmatmul.msk.bf16.gmra.mxu2 %vm1323_vm1, %v2770_v20  ;;  %v2647_v53 = vmax.f32 %v2615_v62, 0.0 }
 0x2c6   : > { %4070 = vmatmul.msk.bf16.gmra.mxu3 %vm1323_vm1, %v2770_v20  ;;  %4090 = vmatmul.msk.bf16.gmra.mxu0 %vm1323_vm1, %v2770_v20 }
 0x2c7   : > { %6073 = vst [vmem:[#allocation11_spill] sm:$0xff] %v5370_v10  ;;  %v2194_v29 = vpack.c.bf16 %v5370_v10, %v5370_v10  ;;  %v2360_v28 = vadd.f32 %v4308_v50, %v2324_v46  ;;  %v2361_v3 = vadd.f32 %v4308_v50, %v2325_v33  ;;  %v2679_v63 = vpack.c.bf16 %v2647_v53, %v2647_v53 }
 0x2c8   : > { %v2512_v40 = vpop.f32.mrf.mxu1 }
 0x2c9   : > { %2227 = vst.msk [vmem:[#allocation2 + $0x7c] sm:$0xf] %vm2195_vm4, %v2194_v29  ;;  %v2580_v22 = vmul.f32 %v5243_v24, %v2512_v40  ;;  %v2392_v23 = vmax.f32 %v2360_v28, 0.0  ;;  %v2393_v7 = vmax.f32 %v2361_v3, 0.0  ;;  %v2746_v0 = vunpack.c.l.b16 %v2679_v63 }
 0x2cb   : > { %v2616_v9 = vadd.f32 %v5248_v60, %v2580_v22  ;;  %v2410_v45 = vpack.c.bf16 %v2393_v7, %v2392_v23 }
 0x2cd   : > { %v2648_v31 = vmax.f32 %v2616_v9, 0.0 }
 0x2cf   : > { %v2680_v49 = vpack.c.bf16 %v2648_v31, %v2648_v31 }
 0x2d0   : > { %v4285_v12 = vld [vmem:[#allocation2 + $0x78] sm:$0xff]   ;;  %v2515_v17 = vpop.f32.mrf.mxu1 }
 0x2d1   : > { %v2747_v56 = vunpack.c.l.b16 %v2680_v49  ;;  %v2581_v2 = vmul.f32 %v5243_v24, %v2515_v17  ;;  %v4254_v52 = vunpack.c.l.bf16 %v4285_v12  ;;  %v4255_v13 = vunpack.c.h.bf16 %v4285_v12 }
 0x2d3   : > { %v2771_v15 = vpack.c.b16 %v2747_v56, %v2746_v0  ;;  %2554 = vmatmul.bf16.gmra.mxu1 %v2410_v45  ;;  %v2617_v38 = vadd.f32 %v5248_v60, %v2581_v2  ;;  %v2326_v43 = vmul.f32 %v4307_v30, %v4254_v52  ;;  %v2327_v20 = vmul.f32 %v4307_v30, %v4255_v13 }
 0x2d5   : > { %4051 = vmatmul.msk.bf16.gmra.mxu2 %vm1323_vm1, %v2771_v15  ;;  %v2649_v62 = vmax.f32 %v2617_v38, 0.0  ;;  %v2362_v33 = vadd.f32 %v4308_v50, %v2326_v43  ;;  %v2363_v29 = vadd.f32 %v4308_v50, %v2327_v20 }
 0x2d6   : > { %4071 = vmatmul.msk.bf16.gmra.mxu3 %vm1323_vm1, %v2771_v15  ;;  %4091 = vmatmul.msk.bf16.gmra.mxu0 %vm1323_vm1, %v2771_v15 }
 0x2d7   : > { %v2681_v40 = vpack.c.bf16 %v2649_v62, %v2649_v62  ;;  %v2394_v3 = vmax.f32 %v2362_v33, 0.0  ;;  %v2395_v22 = vmax.f32 %v2363_v29, 0.0 }
 0x2d8   : > { %v2517_v39 = vpop.f32.mrf.mxu1 }
 0x2d9   : > { %v2582_v46 = vmul.f32 %v5243_v24, %v2517_v39  ;;  %v2748_v23 = vunpack.c.l.b16 %v2681_v40  ;;  %v2411_v31 = vpack.c.bf16 %v2395_v22, %v2394_v3 }
 0x2db   : > { %v2618_v53 = vadd.f32 %v5248_v60, %v2582_v46 }
 0x2dd   : > { %v2650_v28 = vmax.f32 %v2618_v53, 0.0 }
 0x2df   : > { %v2682_v9 = vpack.c.bf16 %v2650_v28, %v2650_v28 }
 0x2e0   : > { %v2520_v63 = vpop.f32.mrf.mxu1 }
 0x2e1   : > { %v2749_v7 = vunpack.c.l.b16 %v2682_v9  ;;  %v2583_v30 = vmul.f32 %v5243_v24, %v2520_v63 }
 0x2e3   : > { %v2772_v49 = vpack.c.b16 %v2749_v7, %v2748_v23  ;;  %2559 = vmatmul.bf16.gmra.mxu1 %v2411_v31  ;;  %v2619_v12 = vadd.f32 %v5248_v60, %v2583_v30 }
 0x2e5   : > { %4052 = vmatmul.msk.bf16.gmra.mxu2 %vm1323_vm1, %v2772_v49  ;;  %v2651_v0 = vmax.f32 %v2619_v12, 0.0 }
 0x2e6   : > { %4072 = vmatmul.msk.bf16.gmra.mxu3 %vm1323_vm1, %v2772_v49  ;;  %4092 = vmatmul.msk.bf16.gmra.mxu0 %vm1323_vm1, %v2772_v49 }
 0x2e7   : > { %v2683_v56 = vpack.c.bf16 %v2651_v0, %v2651_v0 }
 0x2e8   : > { %v2522_v50 = vpop.f32.mrf.mxu1 }
 0x2e9   : > { %v2584_v17 = vmul.f32 %v5243_v24, %v2522_v50  ;;  %v2750_v15 = vunpack.c.l.b16 %v2683_v56 }
 0x2eb   : > { %v2620_v45 = vadd.f32 %v5248_v60, %v2584_v17 }
 0x2ed   : > { %v2652_v2 = vmax.f32 %v2620_v45, 0.0 }
 0x2ef   : > { %v2684_v52 = vpack.c.bf16 %v2652_v2, %v2652_v2 }
 0x2f0   : > { %v2525_v13 = vpop.f32.mrf.mxu1 }
 0x2f1   : > { %v2751_v38 = vunpack.c.l.b16 %v2684_v52  ;;  %v2585_v43 = vmul.f32 %v5243_v24, %v2525_v13 }
 0x2f3   : > { %v2773_v20 = vpack.c.b16 %v2751_v38, %v2750_v15  ;;  %v2621_v39 = vadd.f32 %v5248_v60, %v2585_v43 }
 0x2f5   : > { %4053 = vmatmul.msk.bf16.gmra.mxu2 %vm1323_vm1, %v2773_v20  ;;  %v2653_v46 = vmax.f32 %v2621_v39, 0.0 }
 0x2f6   : > { %4073 = vmatmul.msk.bf16.gmra.mxu3 %vm1323_vm1, %v2773_v20  ;;  %4093 = vmatmul.msk.bf16.gmra.mxu0 %vm1323_vm1, %v2773_v20 }
 0x2f7   : > { %v2685_v53 = vpack.c.bf16 %v2653_v46, %v2653_v46 }
 0x2f8   : > { %v2527_v62 = vpop.f32.mrf.mxu1 }
 0x2f9   : > { %v2586_v33 = vmul.f32 %v5243_v24, %v2527_v62  ;;  %v2752_v22 = vunpack.c.l.b16 %v2685_v53 }
 0x2fb   : > { %v2622_v29 = vadd.f32 %v5248_v60, %v2586_v33 }
 0x2fd   : > { %v2654_v40 = vmax.f32 %v2622_v29, 0.0 }
 0x2ff   : > { %v2686_v28 = vpack.c.bf16 %v2654_v40, %v2654_v40 }
 0x300   : > { %v2530_v3 = vpop.f32.mrf.mxu1 }
 0x301   : > { %v2753_v9 = vunpack.c.l.b16 %v2686_v28  ;;  %v2587_v63 = vmul.f32 %v5243_v24, %v2530_v3 }
 0x302   : > { %v3032_v23 = vpop.f32.mrf.mxu0 }
 0x303   : > { %v2774_v7 = vpack.c.b16 %v2753_v9, %v2752_v22  ;;  %v2623_v30 = vadd.f32 %v5248_v60, %v2587_v63 }
 0x305   : > { %4054 = vmatmul.msk.bf16.gmra.mxu2 %vm1323_vm1, %v2774_v7  ;;  %v2655_v12 = vmax.f32 %v2623_v30, 0.0 }
 0x306   : > { %4074 = vmatmul.msk.bf16.gmra.mxu3 %vm1323_vm1, %v2774_v7  ;;  %4094 = vmatmul.msk.bf16.gmra.mxu0 %vm1323_vm1, %v2774_v7 }
 0x307   : > { %v2687_v45 = vpack.c.bf16 %v2655_v12, %v2655_v12 }
 0x308   : > { %v2532_v31 = vpop.f32.mrf.mxu1  ;;  %v2841_v49 = vpop.f32.mrf.mxu2 }
 0x309   : > { %v2588_v50 = vmul.f32 %v5243_v24, %v2532_v31  ;;  %v2754_v15 = vunpack.c.l.b16 %v2687_v45 }
 0x30a   : > { %v3034_v0 = vpop.f32.mrf.mxu0 }
 0x30b   : > { %v2624_v17 = vadd.f32 %v5248_v60, %v2588_v50 }
 0x30d   : > { %v2656_v56 = vmax.f32 %v2624_v17, 0.0 }
 0x30f   : > { %v2688_v2 = vpack.c.bf16 %v2656_v56, %v2656_v56 }
 0x310   : > { %v2535_v52 = vpop.f32.mrf.mxu1  ;;  %v2843_v13 = vpop.f32.mrf.mxu2 }
 0x311   : > { %v2755_v38 = vunpack.c.l.b16 %v2688_v2  ;;  %v2589_v43 = vmul.f32 %v5243_v24, %v2535_v52 }
 0x313   : > { %v2775_v20 = vpack.c.b16 %v2755_v38, %v2754_v15  ;;  %v3037_v39 = vpop.f32.mrf.mxu0  ;;  %v2625_v62 = vadd.f32 %v5248_v60, %v2589_v43 }
 0x315   : > { %4055 = vmatmul.msk.bf16.gmra.mxu2 %vm1323_vm1, %v2775_v20  ;;  %v2657_v29 = vmax.f32 %v2625_v62, 0.0 }
 0x316   : > { %4075 = vmatmul.msk.bf16.gmra.mxu3 %vm1323_vm1, %v2775_v20  ;;  %4095 = vmatmul.msk.bf16.gmra.mxu0 %vm1323_vm1, %v2775_v20 }
 0x317   : > { %v2689_v63 = vpack.c.bf16 %v2657_v29, %v2657_v29 }
 0x318   : > { %v2537_v46 = vpop.f32.mrf.mxu1  ;;  %v5419_v33 = vpop.f32.mrf.mxu2 }
 0x319   : > { %v2590_v53 = vmul.f32 %v5243_v24, %v2537_v46  ;;  %v2942_v40 = vpop.f32.mrf.mxu3  ;;  %v2756_v17 = vunpack.c.l.b16 %v2689_v63 }
 0x31a   : > { %v5422_v28 = vadd.f32 %v3032_v23, %v2942_v40 }
 0x31b   : > { %v2626_v3 = vadd.f32 %v5248_v60, %v2590_v53  ;;  %v3039_v22 = vpop.f32.mrf.mxu0  ;;  %v3038_v53 = vadd.f32 %v3037_v39, %v2841_v49 }
 0x31c   : > { %v3176_v9 = vrot.slane %v5422_v28, 7  ;;  %v3400_v38 = vrot.slane %v5422_v28, 1 }
 0x31d   : > { %v2658_v7 = vmax.f32 %v2626_v3, 0.0 }
 0x31e   : > { %v3240_v30 = vsel %vm1713_vm2, 0.0, %v3176_v9 }
 0x31f   : > { %v2690_v31 = vpack.c.bf16 %v2658_v7, %v2658_v7  ;;  %3272 = vrot.lane.b32.xlu1 %v3240_v30, %s4350_s28 }
 0x320   : > { %v2540_v12 = vpop.f32.mrf.mxu1  ;;  %v5428_v50 = vpop.f32.mrf.mxu2 }
 0x321   : > { %v2757_v45 = vunpack.c.l.b16 %v2690_v31  ;;  %v2591_v23 = vmul.f32 %v5243_v24, %v2540_v12  ;;  %v2944_v56 = vpop.f32.mrf.mxu3 }
 0x322   : > { %v5431_v2 = vadd.f32 %v3034_v0, %v2944_v56  ;;  %v3040_v56 = vadd.f32 %v3039_v22, %v2843_v13 }
 0x323   : > { %v2776_v52 = vpack.c.b16 %v2757_v45, %v2756_v17  ;;  %v3042_v15 = vpop.f32.mrf.mxu0  ;;  %v2627_v62 = vadd.f32 %v5248_v60, %v2591_v23 }
 0x324   : > { %v3177_v43 = vrot.slane %v5431_v2, 7  ;;  %v3401_v20 = vrot.slane %v5431_v2, 1 }
 0x325   : > { %4056 = vmatmul.msk.bf16.gmra.mxu2 %vm1323_vm1, %v2776_v52  ;;  %v2659_v63 = vmax.f32 %v2627_v62, 0.0 }
 0x326   : > { %4076 = vmatmul.msk.bf16.gmra.mxu3 %vm1323_vm1, %v2776_v52  ;;  %4096 = vmatmul.msk.bf16.gmra.mxu0 %vm1323_vm1, %v2776_v52  ;;  %v3178_v46 = vsel %vm1713_vm2, %v3176_v9, %v3177_v43  ;;  %v3464_v0 = vsel %vm1938_vm3, %v3401_v20, 0.0  ;;  %v3402_v29 = vsel %vm1938_vm3, %v3400_v38, %v3401_v20 }
 0x327   : > { %3274 = vrot.lane.b32.xlu2 %v3178_v46, %s4350_s28  ;;  %3498 = vrot.lane.b32.xlu1 %v3464_v0, %s4351_s14  ;;  %v2691_v45 = vpack.c.bf16 %v2659_v63, %v2659_v63 }
 0x328   : > { %3496 = vrot.lane.b32.xlu0 %v3402_v29, %s4351_s14  ;;  %v2542_v40 = vpop.f32.mrf.mxu1  ;;  %v5446_v3 = vpop.f32.mrf.mxu2 }
 0x329   : > { %v2592_v7 = vmul.f32 %v5243_v24, %v2542_v40  ;;  %v2947_v30 = vpop.f32.mrf.mxu3  ;;  %v2758_v43 = vunpack.c.l.b16 %v2691_v45  ;;  %v3043_v45 = vadd.f32 %v3042_v15, %v5419_v33 }
 0x32a   : > { %v5449_v31 = vadd.f32 %v3038_v53, %v2947_v30 }
 0x32b   : > { %v2628_v9 = vadd.f32 %v5248_v60, %v2592_v7  ;;  %v3044_v12 = vpop.f32.mrf.mxu0 }
 0x32c   : > { %v3179_v17 = vrot.slane %v5449_v31, 7  ;;  %v3403_v40 = vrot.slane %v5449_v31, 1 }
 0x32d   : > { %v2660_v23 = vmax.f32 %v2628_v9, 0.0 }
 0x32e   : > { %v3241_v49 = vsel %vm1713_vm2, 0.0, %v3179_v17 }
 0x32f   : > { %v2692_v39 = vpack.c.bf16 %v2660_v23, %v2660_v23 }
 0x330   : > { %3276 = vrot.lane.b32.xlu0 %v3241_v49, %s4350_s28  ;;  %v2545_v52 = vpop.f32.mrf.mxu1  ;;  %v5455_v38 = vpop.f32.mrf.mxu2 }
 0x331   : > { %v2759_v20 = vunpack.c.l.b16 %v2692_v39  ;;  %v2593_v62 = vmul.f32 %v5243_v24, %v2545_v52  ;;  %v2949_v46 = vpop.f32.mrf.mxu3 }
 0x332   : > { %v5458_v0 = vadd.f32 %v3040_v56, %v2949_v46 }
 0x333   : > { %v2777_v29 = vpack.c.b16 %v2759_v20, %v2758_v43  ;;  %v3047_v53 = vpop.f32.mrf.mxu0  ;;  %v2629_v22 = vadd.f32 %v5248_v60, %v2593_v62 }
 0x334   : > { %v3404_v63 = vrot.slane %v5458_v0, 1  ;;  %v3180_v13 = vrot.slane %v5458_v0, 7 }
 0x335   : > { %4057 = vmatmul.msk.bf16.gmra.mxu2 %vm1323_vm1, %v2777_v29  ;;  %v2661_v39 = vmax.f32 %v2629_v22, 0.0 }
 0x336   : > { %4077 = vmatmul.msk.bf16.gmra.mxu3 %vm1323_vm1, %v2777_v29  ;;  %4097 = vmatmul.msk.bf16.gmra.mxu0 %vm1323_vm1, %v2777_v29  ;;  %v3405_v7 = vsel %vm1938_vm3, %v3403_v40, %v3404_v63  ;;  %v3181_v30 = vsel %vm1713_vm2, %v3179_v17, %v3180_v13  ;;  %v3465_v9 = vsel %vm1938_vm3, %v3404_v63, 0.0  ;;  %v3045_v40 = vadd.f32 %v3044_v12, %v5428_v50 }
 0x337   : > { %3500 = vrot.lane.b32.xlu2 %v3405_v7, %s4351_s14  ;;  %3278 = vrot.lane.b32.xlu1 %v3181_v30, %s4350_s28  ;;  %v2693_v46 = vpack.c.bf16 %v2661_v39, %v2661_v39 }
 0x338   : > { %3502 = vrot.lane.b32.xlu0 %v3465_v9, %s4351_s14  ;;  %v2547_v23 = vpop.f32.mrf.mxu1  ;;  %v5474_v49 = vpop.f32.mrf.mxu2 }
 0x339   : > { %v2594_v56 = vmul.f32 %v5243_v24, %v2547_v23  ;;  %v2952_v52 = vpop.f32.mrf.mxu3  ;;  %v2760_v22 = vunpack.c.l.b16 %v2693_v46 }
 0x33a   : > { %v5477_v43 = vadd.f32 %v3043_v45, %v2952_v52 }
 0x33b   : > { %v2630_v17 = vadd.f32 %v5248_v60, %v2594_v56  ;;  %v3049_v20 = vpop.f32.mrf.mxu0 }
 0x33c   : > { %v3182_v62 = vrot.slane %v5477_v43, 7  ;;  %v3406_v56 = vrot.slane %v5477_v43, 1 }
 0x33d   : > { %v2662_v29 = vmax.f32 %v2630_v17, 0.0 }
 0x33e   : > { %v3242_v33 = vsel %vm1713_vm2, 0.0, %v3182_v62 }
 0x33f   : > { %v2694_v15 = vpack.c.bf16 %v2662_v29, %v2662_v29  ;;  %3280 = vrot.lane.b32.xlu2 %v3242_v33, %s4350_s28  ;;  %v3048_v33 = vadd.f32 %v3047_v53, %v5446_v3 }
 0x340   : > { %v2550_v63 = vpop.f32.mrf.mxu1  ;;  %v5484_v13 = vpop.f32.mrf.mxu2 }
 0x341   : > { %v2761_v7 = vunpack.c.l.b16 %v2694_v15  ;;  %v2595_v30 = vmul.f32 %v5243_v24, %v2550_v63  ;;  %v2954_v9 = vpop.f32.mrf.mxu3 }
 0x342   : > { %v5487_v45 = vadd.f32 %v3045_v40, %v2954_v9 }
 0x343   : > { %v2778_v23 = vpack.c.b16 %v2761_v7, %v2760_v22  ;;  %v3052_v39 = vpop.f32.mrf.mxu0  ;;  %v2631_v50 = vadd.f32 %v5248_v60, %v2595_v30 }
 0x344   : > { %v3407_v52 = vrot.slane %v5487_v45, 1  ;;  %v3183_v17 = vrot.slane %v5487_v45, 7 }
 0x345   : > { %4058 = vmatmul.msk.bf16.gmra.mxu2 %vm1323_vm1, %v2778_v23  ;;  %v2663_v63 = vmax.f32 %v2631_v50, 0.0 }
 0x346   : > { %4078 = vmatmul.msk.bf16.gmra.mxu3 %vm1323_vm1, %v2778_v23  ;;  %4098 = vmatmul.msk.bf16.gmra.mxu0 %vm1323_vm1, %v2778_v23  ;;  %v3466_v12 = vsel %vm1938_vm3, %v3407_v52, 0.0  ;;  %v3408_v46 = vsel %vm1938_vm3, %v3406_v56, %v3407_v52  ;;  %v3184_v29 = vsel %vm1713_vm2, %v3182_v62, %v3183_v17  ;;  %v3050_v17 = vadd.f32 %v3049_v20, %v5455_v38 }
 0x347   : > { %3506 = vrot.lane.b32.xlu2 %v3466_v12, %s4351_s14  ;;  %3504 = vrot.lane.b32.xlu1 %v3408_v46, %s4351_s14  ;;  %v2695_v56 = vpack.c.bf16 %v2663_v63, %v2663_v63 }
 0x348   : > { %3282 = vrot.lane.b32.xlu0 %v3184_v29, %s4350_s28  ;;  %v2552_v15 = vpop.f32.mrf.mxu1  ;;  %v5503_v40 = vpop.f32.mrf.mxu2 }
 0x349   : > { %v2596_v22 = vmul.f32 %v5243_v24, %v2552_v15  ;;  %v2957_v7 = vpop.f32.mrf.mxu3  ;;  %v2762_v46 = vunpack.c.l.b16 %v2695_v56 }
 0x34a   : > { %v5506_v30 = vadd.f32 %v3048_v33, %v2957_v7 }
 0x34b   : > { %v2632_v9 = vadd.f32 %v5248_v60, %v2596_v22  ;;  %v3054_v62 = vpop.f32.mrf.mxu0 }
 0x34c   : > { %v3185_v23 = vrot.slane %v5506_v30, 7 }
 0x34d   : > { %v2664_v52 = vmax.f32 %v2632_v9, 0.0  ;;  %v3409_v9 = vrot.slane %v5506_v30, 1 }
 0x34e   : > { %v3243_v3 = vsel %vm1713_vm2, 0.0, %v3185_v23 }
 0x34f   : > { %v2696_v53 = vpack.c.bf16 %v2664_v52, %v2664_v52  ;;  %3284 = vrot.lane.b32.xlu1 %v3243_v3, %s4350_s28 }
 0x350   : > { %v2555_v50 = vpop.f32.mrf.mxu1  ;;  %v5513_v12 = vpop.f32.mrf.mxu2 }
 0x351   : > { %v2763_v29 = vunpack.c.l.b16 %v2696_v53  ;;  %v2597_v33 = vmul.f32 %v5243_v24, %v2555_v50  ;;  %v2959_v15 = vpop.f32.mrf.mxu3 }
 0x352   : > { %v5516_v22 = vadd.f32 %v3050_v17, %v2959_v15  ;;  %v3053_v17 = vadd.f32 %v3052_v39, %v5474_v49 }
 0x353   : > { %v2779_v7 = vpack.c.b16 %v2763_v29, %v2762_v46  ;;  %v3057_v63 = vpop.f32.mrf.mxu0  ;;  %v2633_v38 = vadd.f32 %v5248_v60, %v2597_v33 }
 0x354   : > { %v3186_v52 = vrot.slane %v5516_v22, 7  ;;  %v3410_v3 = vrot.slane %v5516_v22, 1 }
 0x355   : > { %4059 = vmatmul.msk.bf16.gmra.mxu2 %vm1323_vm1, %v2779_v7  ;;  %v2665_v29 = vmax.f32 %v2633_v38, 0.0 }
 0x356   : > { %4079 = vmatmul.msk.bf16.gmra.mxu3 %vm1323_vm1, %v2779_v7  ;;  %4099 = vmatmul.msk.bf16.gmra.mxu0 %vm1323_vm1, %v2779_v7  ;;  %v3187_v20 = vsel %vm1713_vm2, %v3185_v23, %v3186_v52  ;;  %v3467_v56 = vsel %vm1938_vm3, %v3410_v3, 0.0  ;;  %v3411_v53 = vsel %vm1938_vm3, %v3409_v9, %v3410_v3 }
 0x357   : > { %3286 = vrot.lane.b32.xlu2 %v3187_v20, %s4350_s28  ;;  %3510 = vrot.lane.b32.xlu1 %v3467_v56, %s4351_s14  ;;  %v2697_v3 = vpack.c.bf16 %v2665_v29, %v2665_v29  ;;  %v3055_v56 = vadd.f32 %v3054_v62, %v5484_v13 }
 0x358   : > { %3508 = vrot.lane.b32.xlu0 %v3411_v53, %s4351_s14  ;;  %v2557_v50 = vpop.f32.mrf.mxu1  ;;  %v5532_v46 = vpop.f32.mrf.mxu2 }
 0x359   : > { %v2598_v33 = vmul.f32 %v5243_v24, %v2557_v50  ;;  %v2962_v15 = vpop.f32.mrf.mxu3  ;;  %v2764_v50 = vunpack.c.l.b16 %v2697_v3 }
 0x35a   : > { %v5535_v23 = vadd.f32 %v3053_v17, %v2962_v15 }
 0x35b   : > { %v2634_v7 = vadd.f32 %v5248_v60, %v2598_v33  ;;  %v3059_v9 = vpop.f32.mrf.mxu0 }
 0x35c   : > { %v3188_v52 = vrot.slane %v5535_v23, 7 }
 0x35d   : > { %v2666_v20 = vmax.f32 %v2634_v7, 0.0  ;;  %v3412_v7 = vrot.slane %v5535_v23, 1 }
 0x35e   : > { %v3244_v49 = vsel %vm1713_vm2, 0.0, %v3188_v52 }
 0x35f   : > { %v2698_v39 = vpack.c.bf16 %v2666_v20, %v2666_v20 }
 0x360   : > { %3288 = vrot.lane.b32.xlu0 %v3244_v49, %s4350_s28  ;;  %v2560_v38 = vpop.f32.mrf.mxu1  ;;  %v5542_v53 = vpop.f32.mrf.mxu2 }
 0x361   : > { %v2765_v17 = vunpack.c.l.b16 %v2698_v39  ;;  %v2599_v15 = vmul.f32 %v5243_v24, %v2560_v38  ;;  %v2964_v33 = vpop.f32.mrf.mxu3  ;;  %v3058_v39 = vadd.f32 %v3057_v63, %v5503_v40 }
 0x362   : > { %v5545_v10 = vadd.f32 %v3055_v56, %v2964_v33 }
 0x363   : > { %v2780_v34 = vpack.c.b16 %v2765_v17, %v2764_v50  ;;  %v3062_v29 = vpop.f32.mrf.mxu0  ;;  %v2635_v62 = vadd.f32 %v5248_v60, %v2599_v15  ;;  %v4309_v17 = vld [vmem:[%s6052_s10] ss:$0 sm:$0xff] }
 0x364   : > { %v3189_v20 = vrot.slane %v5545_v10, 7  ;;  %v3413_v13 = vrot.slane %v5545_v10, 1 }
 0x365   : > { %4060 = vmatmul.msk.bf16.gmra.mxu2 %vm1323_vm1, %v2780_v34  ;;  %v2667_v50 = vmax.f32 %v2635_v62, 0.0  ;;  %v3060_v62 = vadd.f32 %v3059_v9, %v5513_v12 }
 0x366   : > { %4080 = vmatmul.msk.bf16.gmra.mxu3 %vm1323_vm1, %v2780_v34  ;;  %v3414_v3 = vsel %vm1938_vm3, %v3412_v7, %v3413_v13  ;;  %v3190_v24 = vsel %vm1713_vm2, %v3188_v52, %v3189_v20  ;;  %v3468_v49 = vsel %vm1938_vm3, %v3413_v13, 0.0 }
 0x367   : > { %3512 = vrot.lane.b32.xlu2 %v3414_v3, %s4351_s14  ;;  %3290 = vrot.lane.b32.xlu1 %v3190_v24, %s4350_s28  ;;  %v2699_v3 = vpack.c.bf16 %v2667_v50, %v2667_v50 }
 0x368   : > { %3514 = vrot.lane.b32.xlu0 %v3468_v49, %s4351_s14  ;;  %v2562_v56 = vpop.f32.mrf.mxu1  ;;  %v2871_v38 = vpop.f32.mrf.mxu2 }
 0x369   : > { %v2600_v15 = vmul.f32 %v4309_v17, %v2562_v56  ;;  %v2967_v33 = vpop.f32.mrf.mxu3  ;;  %v2921_v14 = vunpack.c.l.b16 %v2699_v3 }
 0x36a   : > { %v5563_v52 = vadd.f32 %v3058_v39, %v2967_v33 }
 0x36b   : > { %v2636_v7 = vadd.f32 %v5248_v60, %v2600_v15  ;;  %v3064_v20 = vpop.f32.mrf.mxu0 }
 0x36c   : > { %v3191_v13 = vrot.slane %v5563_v52, 7  ;;  %v3415_v15 = vrot.slane %v5563_v52, 1 }
 0x36d   : > { %v2668_v40 = vmax.f32 %v2636_v7, 0.0 }
 0x36e   : > { %v3245_v63 = vsel %vm1713_vm2, 0.0, %v3191_v13 }
 0x36f   : > { %v2700_v24 = vpack.c.bf16 %v2668_v40, %v2668_v40  ;;  %3292 = vrot.lane.b32.xlu2 %v3245_v63, %s4350_s28 }
 0x370   : > { %v2873_v49 = vpop.f32.mrf.mxu2 }
 0x371   : > { %v2922_v56 = vunpack.c.l.b16 %v2700_v24  ;;  %v2969_v17 = vpop.f32.mrf.mxu3 }
 0x372   : > { %v5570_v39 = vadd.f32 %v3060_v62, %v2969_v17 }
 0x373   : > { %v2923_v33 = vpack.c.b16 %v2922_v56, %v2921_v14  ;;  %v3067_v60 = vpop.f32.mrf.mxu0  ;;  %v3063_v14 = vadd.f32 %v3062_v29, %v5532_v46 }
 0x374   : > { %v3192_v50 = vrot.slane %v5570_v39, 7  ;;  %v3416_v7 = vrot.slane %v5570_v39, 1 }
 0x375   : > { %4100 = vmatmul.msk.bf16.vlgmr.msra.gmra.mxu2 %vm1323_vm1, %v2780_v34 }
 0x376   : > { %4081 = vmatmul.msk.bf16.gmra.mxu3 %vm1323_vm1, %v2923_v33  ;;  %v3469_v12 = vsel %vm1938_vm3, %v3416_v7, 0.0  ;;  %v3417_v9 = vsel %vm1938_vm3, %v3415_v15, %v3416_v7  ;;  %v3193_v3 = vsel %vm1713_vm2, %v3191_v13, %v3192_v50  ;;  %v3065_v13 = vadd.f32 %v3064_v20, %v5542_v53 }
 0x377   : > { %3518 = vrot.lane.b32.xlu2 %v3469_v12, %s4351_s14  ;;  %3516 = vrot.lane.b32.xlu1 %v3417_v9, %s4351_s14  ;;  %v3068_v53 = vadd.f32 %v3067_v60, %v2871_v38 }
 0x378   : > { %3294 = vrot.lane.b32.xlu0 %v3193_v3, %s4350_s28  ;;  %v2876_v40 = vpop.f32.mrf.mxu2 }
 0x379   : > { %v2972_v63 = vpop.f32.mrf.mxu3 }
 0x37a   : > { %v5584_v24 = vadd.f32 %v3063_v14, %v2972_v63 }
 0x37b   : > { %v3069_v62 = vpop.f32.mrf.mxu0 }
 0x37c   : > { %v3194_v34 = vrot.slane %v5584_v24, 7  ;;  %v3418_v29 = vrot.slane %v5584_v24, 1 }
 0x37e   : > { %v3246_v56 = vsel %vm1713_vm2, 0.0, %v3194_v34 }
 0x37f   : > { %3296 = vrot.lane.b32.xlu1 %v3246_v56, %s4350_s28 }
 0x380   : > { %v2878_v17 = vpop.f32.mrf.mxu2 }
 0x381   : > { %v2974_v15 = vpop.f32.mrf.mxu3 }
 0x382   : > { %v5590_v50 = vadd.f32 %v3065_v13, %v2974_v15  ;;  %v3070_v15 = vadd.f32 %v3069_v62, %v2873_v49 }
 0x383   : > { %v3072_v46 = vpop.f32.mrf.mxu0 }
 0x384   : > { %v3195_v7 = vrot.slane %v5590_v50, 7  ;;  %v3419_v12 = vrot.slane %v5590_v50, 1  ;;  %v3073_v36 = vadd.f32 %v3072_v46, %v2876_v40 }
 0x385   : > { %4101 = vmatmul.msk.bf16.gmra.mxu2 %vm1323_vm1, %v2923_v33 }
 0x386   : > { %v3196_v9 = vsel %vm1713_vm2, %v3194_v34, %v3195_v7  ;;  %v3470_v3 = vsel %vm1938_vm3, %v3419_v12, 0.0  ;;  %v3420_v14 = vsel %vm1938_vm3, %v3418_v29, %v3419_v12 }
 0x387   : > { %3298 = vrot.lane.b32.xlu2 %v3196_v9, %s4350_s28  ;;  %3522 = vrot.lane.b32.xlu1 %v3470_v3, %s4351_s14 }
 0x388   : > { %3520 = vrot.lane.b32.xlu0 %v3420_v14, %s4351_s14  ;;  %v2881_v20 = vpop.f32.mrf.mxu2 }
 0x389   : > { %v2977_v63 = vpop.f32.mrf.mxu3 }
 0x38a   : > { %v5602_v56 = vadd.f32 %v3068_v53, %v2977_v63 }
 0x38b   : > { %v3074_v13 = vpop.f32.mrf.mxu0 }
 0x38c   : > { %v3197_v33 = vrot.slane %v5602_v56, 7  ;;  %v3421_v38 = vrot.slane %v5602_v56, 1 }
 0x38e   : > { %v3247_v34 = vsel %vm1713_vm2, 0.0, %v3197_v33 }
 0x390   : > { %3300 = vrot.lane.b32.xlu0 %v3247_v34, %s4350_s28  ;;  %v2883_v29 = vpop.f32.mrf.mxu2  ;;  %v3275_v34 = vpop.permute.xlu2 %3274 }
 0x391   : > { %v2979_v7 = vpop.f32.mrf.mxu3  ;;  %v3273_v9 = vpop.permute.xlu1 %3272 }
 0x392   : > { %v5607_v12 = vadd.f32 %v3070_v15, %v2979_v7  ;;  %v3368_v25 = vadd.f32 %v3273_v9, %v5422_v28 }
 0x393   : > { %v3077_v14 = vpop.f32.mrf.mxu0 }
 0x394   : > { %v3198_v60 = vrot.slane %v5607_v12, 7  ;;  %v3422_v3 = vrot.slane %v5607_v12, 1 }
 0x396   : > { %v3423_v53 = vsel %vm1938_vm3, %v3421_v38, %v3422_v3  ;;  %v3199_v63 = vsel %vm1713_vm2, %v3197_v33, %v3198_v60  ;;  %v3471_v49 = vsel %vm1938_vm3, %v3422_v3, 0.0  ;;  %v3369_v38 = vadd.f32 %v3275_v34, %v5431_v2 }
 0x397   : > { %3524 = vrot.lane.b32.xlu2 %v3423_v53, %s4351_s14  ;;  %3302 = vrot.lane.b32.xlu1 %v3199_v63, %s4350_s28  ;;  %v3075_v63 = vadd.f32 %v3074_v13, %v2878_v17 }
 0x398   : > { %3526 = vrot.lane.b32.xlu0 %v3471_v49, %s4351_s14  ;;  %v5618_v62 = vpop.f32.mrf.mxu2  ;;  %v3501_v13 = vpop.permute.xlu2 %3500 }
 0x399   : > { %v2982_v15 = vpop.f32.mrf.mxu3  ;;  %v3499_v41 = vpop.permute.xlu1 %3498 }
 0x39a   : > { %v3497_v7 = vpop.permute.xlu0 %3496  ;;  %v5622_v60 = vadd.f32 %v3073_v36, %v2982_v15  ;;  %v3593_v3 = vadd.f32 %v3499_v41, %v3369_v38  ;;  %v3078_v15 = vadd.f32 %v3077_v14, %v2881_v20 }
 0x39b   : > { %v3592_v33 = vadd.f32 %v3497_v7, %v3368_v25  ;;  %v3079_v53 = vpop.f32.mrf.mxu0 }
 0x39c   : > { %v3200_v19 = vrot.slane %v5622_v60, 7  ;;  %v3424_v28 = vrot.slane %v5622_v60, 1 }
 0x39e   : > { %v3248_v17 = vsel %vm1713_vm2, 0.0, %v3200_v19 }
 0x39f   : > { %3656 = vrot.lane.b32.xlu2 %v3592_v33, %s4350_s28 }
 0x3a0   : > { %3658 = vrot.lane.b32.xlu0 %v3593_v3, %s4350_s28  ;;  %v2888_v49 = vpop.f32.mrf.mxu2  ;;  %v3080_v3 = vadd.f32 %v3079_v53, %v2883_v29  ;;  %v3281_v20 = vpop.permute.xlu2 %3280 }
 0x3a1   : > { %v2984_v37 = vpop.f32.mrf.mxu3 }
 0x3a2   : > { %v5627_v47 = vadd.f32 %v3075_v63, %v2984_v37  ;;  %v3277_v25 = vpop.permute.xlu0 %3276 }
 0x3a3   : > { %v3082_v46 = vpop.f32.mrf.mxu0  ;;  %v3370_v9 = vadd.f32 %v3277_v25, %v5449_v31 }
 0x3a4   : > { %v3201_v2 = vrot.slane %v5627_v47, 7  ;;  %v3425_v36 = vrot.slane %v5627_v47, 1 }
 0x3a5   : > { %v3594_v7 = vadd.f32 %v3501_v13, %v3370_v9 }
 0x3a6   : > { %v3426_v41 = vsel %vm1938_vm3, %v3424_v28, %v3425_v36  ;;  %v3202_v40 = vsel %vm1713_vm2, %v3200_v19, %v3201_v2  ;;  %v3472_v33 = vsel %vm1938_vm3, %v3425_v36, 0.0 }
 0x3a7   : > { %3528 = vrot.lane.b32.xlu1 %v3426_v41, %s4351_s14  ;;  %3304 = vrot.lane.b32.xlu2 %v3248_v17, %s4350_s28 }
 0x3a8   : > { %3306 = vrot.lane.b32.xlu0 %v3202_v40, %s4350_s28  ;;  %v5638_v37 = vpop.f32.mrf.mxu2 }
 0x3a9   : > { %v2987_v34 = vpop.f32.mrf.mxu3  ;;  %v3279_v19 = vpop.permute.xlu1 %3278 }
 0x3aa   : > { %v5641_v38 = vadd.f32 %v3078_v15, %v2987_v34  ;;  %v3371_v2 = vadd.f32 %v3279_v19, %v5458_v0  ;;  %v3503_v25 = vpop.permute.xlu0 %3502  ;;  %v3372_v34 = vadd.f32 %v3281_v20, %v5477_v43  ;;  %v3507_v19 = vpop.permute.xlu2 %3506 }
 0x3ab   : > { %v3084_v41 = vpop.f32.mrf.mxu0 }
 0x3ac   : > { %v3203_v31 = vrot.slane %v5641_v38, 7  ;;  %v3427_v14 = vrot.slane %v5641_v38, 1  ;;  %v3595_v17 = vadd.f32 %v3503_v25, %v3371_v2 }
 0x3ae   : > { %v3249_v29 = vsel %vm1713_vm2, 0.0, %v3203_v31 }
 0x3af   : > { %3530 = vrot.lane.b32.xlu2 %v3472_v33, %s4351_s14  ;;  %3660 = vrot.lane.b32.xlu1 %v3594_v7, %s4350_s28  ;;  %v3083_v7 = vadd.f32 %v3082_v46, %v5618_v62 }
 0x3b0   : > { %v2893_v63 = vpop.f32.mrf.mxu2 }
 0x3b1   : > { %v2989_v28 = vpop.f32.mrf.mxu3 }
 0x3b2   : > { %v5647_v40 = vadd.f32 %v3080_v3, %v2989_v28 }
 0x3b3   : > { %v3087_v33 = vpop.f32.mrf.mxu0 }
 0x3b4   : > { %v3428_v36 = vrot.slane %v5647_v40, 1  ;;  %v3204_v15 = vrot.slane %v5647_v40, 7 }
 0x3b6   : > { %v3429_v13 = vsel %vm1938_vm3, %v3427_v14, %v3428_v36  ;;  %v3473_v14 = vsel %vm1938_vm3, %v3428_v36, 0.0  ;;  %v3205_v25 = vsel %vm1713_vm2, %v3203_v31, %v3204_v15 }
 0x3b7   : > { %3532 = vrot.lane.b32.xlu0 %v3429_v13, %s4351_s14  ;;  %3308 = vrot.lane.b32.xlu1 %v3249_v29, %s4350_s28 }
 0x3b8   : > { %3662 = vrot.lane.b32.xlu2 %v3595_v17, %s4350_s28  ;;  %v5657_v0 = vpop.f32.mrf.mxu2  ;;  %v3085_v17 = vadd.f32 %v3084_v41, %v2888_v49 }
 0x3b9   : > { %v2992_v53 = vpop.f32.mrf.mxu3  ;;  %v3505_v9 = vpop.permute.xlu1 %3504 }
 0x3ba   : > { %v3596_v3 = vadd.f32 %v3505_v9, %v3372_v34  ;;  %v5662_v28 = vadd.f32 %v3083_v7, %v2992_v53  ;;  %v3283_v2 = vpop.permute.xlu0 %3282  ;;  %v3287_v53 = vpop.permute.xlu2 %3286 }
 0x3bb   : > { %v3373_v62 = vadd.f32 %v3283_v2, %v5487_v45  ;;  %v3089_v34 = vpop.f32.mrf.mxu0  ;;  %v3088_v2 = vadd.f32 %v3087_v33, %v5638_v37 }
 0x3bc   : > { %v3206_v13 = vrot.slane %v5662_v28, 7  ;;  %v3430_v29 = vrot.slane %v5662_v28, 1 }
 0x3bd   : > { %v3597_v9 = vadd.f32 %v3507_v19, %v3373_v62 }
 0x3be   : > { %v3250_v31 = vsel %vm1713_vm2, 0.0, %v3206_v13 }
 0x3bf   : > { %3664 = vrot.lane.b32.xlu0 %v3596_v3, %s4350_s28  ;;  %3534 = vrot.lane.b32.xlu1 %v3473_v14, %s4351_s14 }
 0x3c0   : > { %3310 = vrot.lane.b32.xlu2 %v3205_v25, %s4350_s28  ;;  %v2898_v43 = vpop.f32.mrf.mxu2 }
 0x3c1   : > { %v2994_v46 = vpop.f32.mrf.mxu3  ;;  %v3285_v45 = vpop.permute.xlu1 %3284 }
 0x3c2   : > { %v5670_v20 = vadd.f32 %v3085_v17, %v2994_v46  ;;  %v3374_v19 = vadd.f32 %v3285_v45, %v5506_v30  ;;  %v3513_v14 = vpop.permute.xlu2 %3512 }
 0x3c4   : > { %v3431_v36 = vrot.slane %v5670_v20, 1  ;;  %v3207_v7 = vrot.slane %v5670_v20, 7 }
 0x3c6   : > { %v3432_v49 = vsel %vm1938_vm3, %v3430_v29, %v3431_v36  ;;  %v3474_v17 = vsel %vm1938_vm3, %v3431_v36, 0.0  ;;  %v3208_v62 = vsel %vm1713_vm2, %v3206_v13, %v3207_v7  ;;  %v3090_v29 = vadd.f32 %v3089_v34, %v2893_v63 }
 0x3c7   : > { %3312 = vrot.lane.b32.xlu0 %v3250_v31, %s4350_s28  ;;  %3666 = vrot.lane.b32.xlu1 %v3597_v9, %s4350_s28  ;;  %v3092_v9 = vpop.f32.mrf.mxu0  ;;  %v3375_v36 = vadd.f32 %v3287_v53, %v5516_v22 }
 0x3c8   : > { %3536 = vrot.lane.b32.xlu2 %v3432_v49, %s4351_s14  ;;  %v5680_v41 = vpop.f32.mrf.mxu2 }
 0x3c9   : > { %v2997_v15 = vpop.f32.mrf.mxu3  ;;  %v3511_v37 = vpop.permute.xlu1 %3510 }
 0x3ca   : > { %v3509_v3 = vpop.permute.xlu0 %3508  ;;  %v5687_v46 = vadd.f32 %v3088_v2, %v2997_v15  ;;  %v3599_v15 = vadd.f32 %v3511_v37, %v3375_v36  ;;  %v3293_v34 = vpop.permute.xlu2 %3292 }
 0x3cb   : > { %v3598_v25 = vadd.f32 %v3509_v3, %v3374_v19 }
 0x3cc   : > { %v3209_v13 = vrot.slane %v5687_v46, 7  ;;  %v3433_v49 = vrot.slane %v5687_v46, 1 }
 0x3ce   : > { %v3251_v3 = vsel %vm1713_vm2, 0.0, %v3209_v13 }
 0x3cf   : > { %3538 = vrot.lane.b32.xlu0 %v3474_v17, %s4351_s14  ;;  %3314 = vrot.lane.b32.xlu1 %v3208_v62, %s4350_s28  ;;  %v3094_v2 = vpop.f32.mrf.mxu0  ;;  %v3093_v17 = vadd.f32 %v3092_v9, %v5657_v0 }
 0x3d0   : > { %3668 = vrot.lane.b32.xlu2 %v3598_v25, %s4350_s28  ;;  %v5692_v31 = vpop.f32.mrf.mxu2 }
 0x3d1   : > { %v2999_v30 = vpop.f32.mrf.mxu3 }
 0x3d2   : > { %v5694_v33 = vadd.f32 %v3090_v29, %v2999_v30  ;;  %v3289_v7 = vpop.permute.xlu0 %3288 }
 0x3d3   : > { %v3376_v53 = vadd.f32 %v3289_v7, %v5535_v23 }
 0x3d4   : > { %v3434_v45 = vrot.slane %v5694_v33, 1  ;;  %v3210_v25 = vrot.slane %v5694_v33, 7 }
 0x3d5   : > { %v3600_v62 = vadd.f32 %v3513_v14, %v3376_v53 }
 0x3d6   : > { %v3435_v63 = vsel %vm1938_vm3, %v3433_v49, %v3434_v45  ;;  %v3211_v30 = vsel %vm1713_vm2, %v3209_v13, %v3210_v25  ;;  %v3475_v36 = vsel %vm1938_vm3, %v3434_v45, 0.0  ;;  %v3095_v49 = vadd.f32 %v3094_v2, %v2898_v43 }
 0x3d7   : > { %3670 = vrot.lane.b32.xlu0 %v3599_v15, %s4350_s28  ;;  %3540 = vrot.lane.b32.xlu1 %v3435_v63, %s4351_s14  ;;  %v3519_v15 = vpop.permute.xlu2 %3518  ;;  %v3097_v13 = vpop.f32.mrf.mxu0 }
 0x3d8   : > { %3316 = vrot.lane.b32.xlu2 %v3251_v3, %s4350_s28  ;;  %v5705_v22 = vpop.f32.mrf.mxu2 }
 0x3d9   : > { %v3002_v19 = vpop.f32.mrf.mxu3  ;;  %v3291_v37 = vpop.permute.xlu1 %3290 }
 0x3da   : > { %v5710_v29 = vadd.f32 %v3093_v17, %v3002_v19  ;;  %v3377_v0 = vadd.f32 %v3291_v37, %v5545_v10  ;;  %v3515_v3 = vpop.permute.xlu0 %3514  ;;  %v3098_v37 = vadd.f32 %v3097_v13, %v5680_v41 }
 0x3dc   : > { %v3212_v9 = vrot.slane %v5710_v29, 7  ;;  %v3436_v63 = vrot.slane %v5710_v29, 1  ;;  %v3601_v53 = vadd.f32 %v3515_v3, %v3377_v0 }
 0x3de   : > { %v3252_v19 = vsel %vm1713_vm2, 0.0, %v3212_v9 }
 0x3df   : > { %3318 = vrot.lane.b32.xlu0 %v3211_v30, %s4350_s28  ;;  %3672 = vrot.lane.b32.xlu1 %v3600_v62, %s4350_s28  ;;  %v3378_v62 = vadd.f32 %v3293_v34, %v5563_v52 }
 0x3e0   : > { %3542 = vrot.lane.b32.xlu2 %v3475_v36, %s4351_s14  ;;  %v5717_v23 = vpop.f32.mrf.mxu2 }
 0x3e1   : > { %v3004_v7 = vpop.f32.mrf.mxu3  ;;  %v3299_v2 = vpop.permute.xlu2 %3298 }
 0x3e2   : > { %v5720_v14 = vadd.f32 %v3095_v49, %v3004_v7  ;;  %v3099_v49 = vpop.f32.mrf.mxu0 }
 0x3e3   : > { %v3100_v34 = vadd.f32 %v3099_v49, %v5692_v31 }
 0x3e4   : > { %v3437_v45 = vrot.slane %v5720_v14, 1  ;;  %v3213_v30 = vrot.slane %v5720_v14, 7 }
 0x3e6   : > { %v3438_v43 = vsel %vm1938_vm3, %v3436_v63, %v3437_v45  ;;  %v3476_v63 = vsel %vm1938_vm3, %v3437_v45, 0.0  ;;  %v3214_v3 = vsel %vm1713_vm2, %v3212_v9, %v3213_v30 }
 0x3e7   : > { %3544 = vrot.lane.b32.xlu0 %v3438_v43, %s4351_s14  ;;  %3320 = vrot.lane.b32.xlu1 %v3252_v19, %s4350_s28 }
 0x3e8   : > { %3674 = vrot.lane.b32.xlu2 %v3601_v53, %s4350_s28  ;;  %v5730_v10 = vpop.f32.mrf.mxu2 }
 0x3e9   : > { %v3007_v25 = vpop.f32.mrf.mxu3  ;;  %v3517_v17 = vpop.permute.xlu1 %3516 }
 0x3ea   : > { %v3602_v36 = vadd.f32 %v3517_v17, %v3378_v62  ;;  %v5735_v7 = vadd.f32 %v3098_v37, %v3007_v25  ;;  %v3295_v0 = vpop.permute.xlu0 %3294 }
 0x3eb   : > { %v3379_v41 = vadd.f32 %v3295_v0, %v5570_v39 }
 0x3ec   : > { %v3215_v45 = vrot.slane %v5735_v7, 7  ;;  %v3439_v19 = vrot.slane %v5735_v7, 1 }
 0x3ed   : > { %v3603_v9 = vadd.f32 %v3519_v15, %v3379_v41  ;;  %v4310_v15 = vld [vmem:[%s4447_s19] sm:$0xff] }
 0x3ee   : > { %v3253_v17 = vsel %vm1713_vm2, 0.0, %v3215_v45  ;;  %v3752_v30 = vsel %vm586_vm0, %v4310_v15, %v4926_v26 }
 0x3ef   : > { %3676 = vrot.lane.b32.xlu0 %v3602_v36, %s4350_s28  ;;  %3546 = vrot.lane.b32.xlu1 %v3476_v63, %s4351_s14 }
 0x3f0   : > { %3322 = vrot.lane.b32.xlu2 %v3214_v3, %s4350_s28  ;;  %v5742_v52 = vpop.f32.mrf.mxu2 }
 0x3f1   : > { %v5746_v13 = vpop.permute.xlu2 %3524  ;;  %v3009_v53 = vpop.f32.mrf.mxu3 }
 0x3f2   : > { %v5749_v43 = vadd.f32 %v3100_v34, %v3009_v53  ;;  %v3297_v62 = vpop.permute.xlu1 %3296 }
 0x3f3   : > { %v3380_v34 = vadd.f32 %v3297_v62, %v5584_v24  ;;  %v3381_v62 = vadd.f32 %v3299_v2, %v5590_v50 }
 0x3f4   : > { %v3440_v25 = vrot.slane %v5749_v43, 1  ;;  %v3216_v36 = vrot.slane %v5749_v43, 7 }
 0x3f6   : > { %v3441_v39 = vsel %vm1938_vm3, %v3439_v19, %v3440_v25  ;;  %v3477_v53 = vsel %vm1938_vm3, %v3440_v25, 0.0  ;;  %v3217_v19 = vsel %vm1713_vm2, %v3215_v45, %v3216_v36 }
 0x3f7   : > { %3324 = vrot.lane.b32.xlu0 %v3253_v17, %s4350_s28  ;;  %3678 = vrot.lane.b32.xlu1 %v3603_v9, %s4350_s28 }
 0x3f8   : > { %3548 = vrot.lane.b32.xlu2 %v3441_v39, %s4351_s14  ;;  %v3102_v31 = vpop.f32.mrf.mxu2 }
 0x3f9   : > { %v3657_v37 = vpop.permute.xlu2 %3656  ;;  %v3012_v49 = vpop.f32.mrf.mxu3  ;;  %v3103_v3 = vadd.f32 %v3102_v31, %v5705_v22 }
 0x3fa   : > { %v3785_v0 = vsel %vm3784_vm5, %v3752_v30, %v3657_v37  ;;  %v3521_v63 = vpop.permute.xlu0 %3520  ;;  %v3523_v17 = vpop.permute.xlu1 %3522 }
 0x3fb   : > { %3818 = vst.msk [vmem:[%s5763_s30] sm:$0xff] %vm3817_vm6, %v3785_v0  ;;  %v3604_v41 = vadd.f32 %v3521_v63, %v3380_v34  ;;  %v5776_v9 = vadd.f32 %v3103_v3, %v3012_v49  ;;  %v3605_v15 = vadd.f32 %v3523_v17, %v3381_v62 }
 0x3fd   : > { %v3218_v45 = vrot.slane %v5776_v9, 7  ;;  %v3442_v30 = vrot.slane %v5776_v9, 1 }
 0x3ff   : > { %3550 = vrot.lane.b32.xlu0 %v3477_v53, %s4351_s14  ;;  %3326 = vrot.lane.b32.xlu1 %v3217_v19, %s4350_s28  ;;  %v3254_v36 = vsel %vm1713_vm2, 0.0, %v3218_v45 }
 0x400   : > { %3680 = vrot.lane.b32.xlu2 %v3604_v41, %s4350_s28  ;;  %v3104_v26 = vpop.f32.mrf.mxu2 }
 0x401   : > { %v3105_v22 = vadd.f32 %v3104_v26, %v5717_v23  ;;  %v3305_v39 = vpop.permute.xlu2 %3304  ;;  %v3014_v31 = vpop.f32.mrf.mxu3 }
 0x402   : > { %v3301_v24 = vpop.permute.xlu0 %3300 }
 0x403   : > { %v5783_v25 = vadd.f32 %v3105_v22, %v3014_v31  ;;  %v4311_v22 = vld [vmem:[%s4447_s19 + $0x18] sm:$0xff] }
 0x404   : > { %v3755_v31 = vsel %vm586_vm0, %v4311_v22, %v4960_v35 }
 0x405   : > { %v3443_v37 = vrot.slane %v5783_v25, 1  ;;  %v3219_v63 = vrot.slane %v5783_v25, 7 }
 0x407   : > { %3682 = vrot.lane.b32.xlu0 %v3605_v15, %s4350_s28  ;;  %v3444_v23 = vsel %vm1938_vm3, %v3442_v30, %v3443_v37  ;;  %v3220_v34 = vsel %vm1713_vm2, %v3218_v45, %v3219_v63  ;;  %v3478_v41 = vsel %vm1938_vm3, %v3443_v37, 0.0  ;;  %v4312_v45 = vld [vmem:[%s4447_s19 + $0x8] sm:$0xff] }
 0x408   : > { %3328 = vrot.lane.b32.xlu2 %v3254_v36, %s4350_s28  ;;  %v3107_v49 = vpop.f32.mrf.mxu2  ;;  %3552 = vrot.lane.b32.xlu1 %v3444_v23, %s4351_s14  ;;  %v3753_v15 = vsel %vm586_vm0, %v4312_v45, %v4939_v42 }
 0x409   : > { %v5794_v50 = vadd.f32 %v3107_v49, %v5730_v10  ;;  %v3531_v2 = vpop.permute.xlu2 %3530  ;;  %v3303_v19 = vpop.permute.xlu1 %3302 }
 0x40a   : > { %v3527_v0 = vpop.permute.xlu0 %3526 }
 0x40b   : > { %v3221_v3 = vrot.slane %v5794_v50, 7  ;;  %v3445_v17 = vrot.slane %v5794_v50, 1 }
 0x40d   : > { %v3255_v53 = vsel %vm1713_vm2, 0.0, %v3221_v3 }
 0x40f   : > { %3330 = vrot.lane.b32.xlu0 %v3220_v34, %s4350_s28  ;;  %v3382_v34 = vadd.f32 %v3301_v24, %v5602_v56 }
 0x410   : > { %3554 = vrot.lane.b32.xlu2 %v3478_v41, %s4351_s14  ;;  %v3109_v10 = vpop.f32.mrf.mxu2  ;;  %3332 = vrot.lane.b32.xlu1 %v3255_v53, %s4350_s28  ;;  %v3383_v41 = vadd.f32 %v3303_v19, %v5607_v12 }
 0x411   : > { %v5805_v26 = vadd.f32 %v3109_v10, %v5742_v52  ;;  %v3384_v10 = vadd.f32 %v3305_v39, %v5622_v60 }
 0x412   : > { %v3663_v62 = vpop.permute.xlu2 %3662  ;;  %v3659_v30 = vpop.permute.xlu0 %3658  ;;  %v3607_v22 = vadd.f32 %v3527_v0, %v3383_v41 }
 0x413   : > { %v3222_v37 = vrot.slane %v5805_v26, 7  ;;  %v3446_v36 = vrot.slane %v5805_v26, 1  ;;  %v3788_v23 = vsel %vm3784_vm5, %v3755_v31, %v3663_v62  ;;  %v3786_v52 = vsel %vm3784_vm5, %v3753_v15, %v3659_v30  ;;  %v4313_v62 = vld [vmem:[%s4447_s19 + $0x10] sm:$0xff] }
 0x414   : > { %3821 = vst.msk [vmem:[%s5763_s30 + $0x18] sm:$0xff] %vm3817_vm6, %v3788_v23  ;;  %v3754_v56 = vsel %vm586_vm0, %v4313_v62, %v4964_v5  ;;  %v4314_v15 = vld [vmem:[%s4447_s19 + $0x30] sm:$0xff]  ;;  %v4315_v23 = vld [vmem:[%s4447_s19 + $0x20] sm:$0xff] }
 0x415   : > { %3819 = vst.msk [vmem:[%s5763_s30 + $0x8] sm:$0xff] %vm3817_vm6, %v3786_v52  ;;  %v3447_v35 = vsel %vm1938_vm3, %v3445_v17, %v3446_v36  ;;  %v3223_v49 = vsel %vm1713_vm2, %v3221_v3, %v3222_v37  ;;  %v3479_v42 = vsel %vm1938_vm3, %v3446_v36, 0.0  ;;  %v3606_v3 = vadd.f32 %v5746_v13, %v3382_v34 }
 0x416   : > { %v3758_v5 = vsel %vm586_vm0, %v4314_v15, %v5034_v54 }
 0x417   : > { %3556 = vrot.lane.b32.xlu0 %v3447_v35, %s4351_s14 }
 0x418   : > { %3334 = vrot.lane.b32.xlu2 %v3223_v49, %s4350_s28  ;;  %3558 = vrot.lane.b32.xlu1 %v3479_v42, %s4351_s14  ;;  %v4316_v42 = vld [vmem:[%s4447_s19 + $0x28] sm:$0xff] }
 0x419   : > { %v3529_v63 = vpop.permute.xlu1 %3528 }
 0x41a   : > { %v3311_v53 = vpop.permute.xlu2 %3310  ;;  %v3608_v17 = vadd.f32 %v3529_v63, %v3384_v10  ;;  %v3307_v31 = vpop.permute.xlu0 %3306 }
 0x41b   : > { %v3385_v60 = vadd.f32 %v3307_v31, %v5627_v47 }
 0x41d   : > { %v3609_v24 = vadd.f32 %v3531_v2, %v3385_v60  ;;  %v3387_v2 = vadd.f32 %v3311_v53, %v5647_v40  ;;  %v3757_v40 = vsel %vm586_vm0, %v4316_v42, %v5015_v51  ;;  %v4317_v51 = vld [vmem:[%s4447_s19 + $0x48] sm:$0xff] }
 0x41e   : > { %v3761_v31 = vsel %vm586_vm0, %v4317_v51, %v5084_v58 }
 0x41f   : > { %3688 = vrot.lane.b32.xlu0 %v3608_v17, %s4350_s28 }
 0x420   : > { %3686 = vrot.lane.b32.xlu2 %v3607_v22, %s4350_s28  ;;  %3684 = vrot.lane.b32.xlu1 %v3606_v3, %s4350_s28 }
 0x421   : > { %v3661_v12 = vpop.permute.xlu1 %3660 }
 0x422   : > { %v3787_v39 = vsel %vm3784_vm5, %v3754_v56, %v3661_v12  ;;  %v3537_v13 = vpop.permute.xlu2 %3536 }
 0x423   : > { %3820 = vst.msk [vmem:[%s5763_s30 + $0x10] sm:$0xff] %vm3817_vm6, %v3787_v39  ;;  %v4318_v39 = vld [vmem:[%s4447_s19 + $0x38] sm:$0xff] }
 0x428   : > { %3690 = vrot.lane.b32.xlu1 %v3609_v24, %s4350_s28 }
 0x429   : > { %v3309_v0 = vpop.permute.xlu1 %3308  ;;  %v3533_v19 = vpop.permute.xlu0 %3532 }
 0x42a   : > { %v3386_v45 = vadd.f32 %v3309_v0, %v5641_v38  ;;  %v3669_v47 = vpop.permute.xlu2 %3668  ;;  %v3756_v38 = vsel %vm586_vm0, %v4315_v23, %v5005_v59 }
 0x42b   : > { %v3791_v30 = vsel %vm3784_vm5, %v3758_v5, %v3669_v47 }
 0x42c   : > { %3824 = vst.msk [vmem:[%s5763_s30 + $0x30] sm:$0xff] %vm3817_vm6, %v3791_v30  ;;  %v3610_v37 = vadd.f32 %v3533_v19, %v3386_v45  ;;  %v4319_v19 = vld [vmem:[%s4447_s19 + $0x40] sm:$0xff] }
 0x42e   : > { %3692 = vrot.lane.b32.xlu2 %v3610_v37, %s4350_s28 }
 0x431   : > { %v3535_v36 = vpop.permute.xlu1 %3534  ;;  %v3665_v52 = vpop.permute.xlu0 %3664 }
 0x432   : > { %v3611_v35 = vadd.f32 %v3535_v36, %v3387_v2  ;;  %v3317_v54 = vpop.permute.xlu2 %3316  ;;  %v3789_v49 = vsel %vm3784_vm5, %v3756_v38, %v3665_v52 }
 0x433   : > { %3822 = vst.msk [vmem:[%s5763_s30 + $0x20] sm:$0xff] %vm3817_vm6, %v3789_v49  ;;  %v3390_v12 = vadd.f32 %v3317_v54, %v5687_v46  ;;  %v3760_v46 = vsel %vm586_vm0, %v4319_v19, %v5080_v18  ;;  %v4320_v18 = vld [vmem:[%s4447_s19 + $0x60] sm:$0xff]  ;;  %v4321_v49 = vld [vmem:[%s4447_s19 + $0x50] sm:$0xff] }
 0x434   : > { %3694 = vrot.lane.b32.xlu0 %v3611_v35, %s4350_s28  ;;  %v3764_v23 = vsel %vm586_vm0, %v4320_v18, %v5139_v1  ;;  %v4325_v19 = vld [vmem:[%s4447_s19 + $0x90] sm:$0xff] }
 0x439   : > { %v3667_v63 = vpop.permute.xlu1 %3666  ;;  %v3313_v34 = vpop.permute.xlu0 %3312 }
 0x43a   : > { %v3790_v41 = vsel %vm3784_vm5, %v3757_v40, %v3667_v63  ;;  %v3543_v59 = vpop.permute.xlu2 %3542  ;;  %v3388_v53 = vadd.f32 %v3313_v34, %v5662_v28  ;;  %v4322_v34 = vld [vmem:[%s4447_s19 + $0x58] sm:$0xff] }
 0x43b   : > { %3823 = vst.msk [vmem:[%s5763_s30 + $0x28] sm:$0xff] %vm3817_vm6, %v3790_v41  ;;  %v3763_v41 = vsel %vm586_vm0, %v4322_v34, %v5123_v55 }
 0x43c   : > { %v3612_v10 = vadd.f32 %v3537_v13, %v3388_v53 }
 0x43e   : > { %3696 = vrot.lane.b32.xlu1 %v3612_v10, %s4350_s28 }
 0x441   : > { %v3315_v17 = vpop.permute.xlu1 %3314  ;;  %v3539_v3 = vpop.permute.xlu0 %3538 }
 0x442   : > { %v3389_v22 = vadd.f32 %v3315_v17, %v5670_v20  ;;  %v3675_v62 = vpop.permute.xlu2 %3674  ;;  %v3759_v20 = vsel %vm586_vm0, %v4318_v39, %v5054_v6 }
 0x443   : > { %v3794_v56 = vsel %vm3784_vm5, %v3761_v31, %v3675_v62 }
 0x444   : > { %3827 = vst.msk [vmem:[%s5763_s30 + $0x48] sm:$0xff] %vm3817_vm6, %v3794_v56  ;;  %v3613_v28 = vadd.f32 %v3539_v3, %v3389_v22  ;;  %v4323_v56 = vld [vmem:[%s4447_s19 + $0x68] sm:$0xff] }
 0x446   : > { %3698 = vrot.lane.b32.xlu2 %v3613_v28, %s4350_s28 }
 0x449   : > { %v3541_v60 = vpop.permute.xlu1 %3540  ;;  %v3671_v13 = vpop.permute.xlu0 %3670 }
 0x44a   : > { %v3614_v24 = vadd.f32 %v3541_v60, %v3390_v12  ;;  %v3323_v58 = vpop.permute.xlu2 %3322  ;;  %v3792_v0 = vsel %vm3784_vm5, %v3759_v20, %v3671_v13  ;;  %v4324_v12 = vld [vmem:[%s4447_s19 + $0x78] sm:$0xff] }
 0x44b   : > { %3825 = vst.msk [vmem:[%s5763_s30 + $0x38] sm:$0xff] %vm3817_vm6, %v3792_v0  ;;  %v3393_v35 = vadd.f32 %v3323_v58, %v5720_v14  ;;  %v3767_v60 = vsel %vm586_vm0, %v4324_v12, %v5183_v61  ;;  %v4336_v12 = vld [vmem:[%s4447_s19 + $0xc8] sm:$0xff] }
 0x44c   : > { %3700 = vrot.lane.b32.xlu0 %v3614_v24, %s4350_s28 }
 0x451   : > { %v3673_v45 = vpop.permute.xlu1 %3672  ;;  %v3319_v15 = vpop.permute.xlu0 %3318 }
 0x452   : > { %v3793_v5 = vsel %vm3784_vm5, %v3760_v46, %v3673_v45  ;;  %v3549_v6 = vpop.permute.xlu2 %3548  ;;  %v3391_v47 = vadd.f32 %v3319_v15, %v5694_v33  ;;  %v3770_v46 = vsel %vm586_vm0, %v4325_v19, %v5225_v48  ;;  %v4326_v48 = vld [vmem:[%s4447_s19 + $0x80] sm:$0xff] }
 0x453   : > { %3826 = vst.msk [vmem:[%s5763_s30 + $0x40] sm:$0xff] %vm3817_vm6, %v3793_v5 }
 0x454   : > { %v3615_v30 = vadd.f32 %v3543_v59, %v3391_v47 }
 0x456   : > { %3702 = vrot.lane.b32.xlu1 %v3615_v30, %s4350_s28 }
 0x459   : > { %v3321_v37 = vpop.permute.xlu1 %3320  ;;  %v3545_v2 = vpop.permute.xlu0 %3544 }
 0x45a   : > { %v3392_v36 = vadd.f32 %v3321_v37, %v5710_v29  ;;  %v3681_v38 = vpop.permute.xlu2 %3680  ;;  %v3762_v29 = vsel %vm586_vm0, %v4321_v49, %v5113_v44 }
 0x45b   : > { %v3797_v52 = vsel %vm3784_vm5, %v3764_v23, %v3681_v38  ;;  %v4328_v38 = vld [vmem:[%s4447_s19 + $0x88] sm:$0xff] }
 0x45c   : > { %3830 = vst.msk [vmem:[%s5763_s30 + $0x60] sm:$0xff] %vm3817_vm6, %v3797_v52  ;;  %v3616_v33 = vadd.f32 %v3545_v2, %v3392_v36  ;;  %v4327_v2 = vld [vmem:[%s4447_s19 + $0x70] sm:$0xff] }
 0x45d   : > { %v3766_v36 = vsel %vm586_vm0, %v4327_v2, %v5185_v21  ;;  %v4329_v21 = vld [vmem:[%s4447_s19 + $0xa8] sm:$0xff]  ;;  %v4341_v2 = vld [vmem:[%s4447_s19 + $0xf8] sm:$0xff] }
 0x45e   : > { %3704 = vrot.lane.b32.xlu2 %v3616_v33, %s4350_s28 }
 0x461   : > { %v3547_v54 = vpop.permute.xlu1 %3546  ;;  %v3677_v42 = vpop.permute.xlu0 %3676 }
 0x462   : > { %v3617_v40 = vadd.f32 %v3547_v54, %v3393_v35  ;;  %v3329_v1 = vpop.permute.xlu2 %3328  ;;  %v3795_v63 = vsel %vm3784_vm5, %v3762_v29, %v3677_v42  ;;  %v3773_v35 = vsel %vm586_vm0, %v4329_v21, %v5256_v57  ;;  %v4330_v29 = vld [vmem:[%s4447_s19 + $0x98] sm:$0xff] }
 0x463   : > { %3828 = vst.msk [vmem:[%s5763_s30 + $0x50] sm:$0xff] %vm3817_vm6, %v3795_v63  ;;  %v3396_v62 = vadd.f32 %v3329_v1, %v5776_v9  ;;  %v4331_v1 = vld [vmem:[%s4447_s19 + $0xa0] sm:$0xff] }
 0x464   : > { %3706 = vrot.lane.b32.xlu0 %v3617_v40, %s4350_s28  ;;  %v3772_v57 = vsel %vm586_vm0, %v4331_v1, %v5254_v16  ;;  %v6074_v16 = vld [vmem:[#allocation3_spill] sm:$0xff] }
 0x469   : > { %v3679_v14 = vpop.permute.xlu1 %3678  ;;  %v3325_v59 = vpop.permute.xlu0 %3324 }
 0x46a   : > { %v3796_v53 = vsel %vm3784_vm5, %v3763_v41, %v3679_v14  ;;  %v3555_v44 = vpop.permute.xlu2 %3554  ;;  %v3394_v10 = vadd.f32 %v3325_v59, %v5735_v7  ;;  %v3765_v7 = vsel %vm586_vm0, %v4323_v56, %v5155_v32  ;;  %v4332_v41 = vld [vmem:[%s4447_s19 + $0xc0] sm:$0xff] }
 0x46b   : > { %3829 = vst.msk [vmem:[%s5763_s30 + $0x58] sm:$0xff] %vm3817_vm6, %v3796_v53  ;;  %v4333_v53 = vld [vmem:[%s4447_s19 + $0xb0] sm:$0xff] }
 0x46c   : > { %v3618_v17 = vadd.f32 %v3549_v6, %v3394_v10 }
 0x46e   : > { %3708 = vrot.lane.b32.xlu1 %v3618_v17, %s4350_s28 }
 0x471   : > { %v3327_v3 = vpop.permute.xlu1 %3326  ;;  %v3551_v22 = vpop.permute.xlu0 %3550 }
 0x472   : > { %v3395_v51 = vadd.f32 %v3327_v3, %v5749_v43  ;;  %v3335_v55 = vpop.permute.xlu2 %3334  ;;  %v4334_v3 = vld [vmem:[%s4447_s19 + $0xb8] sm:$0xff] }
 0x473   : > { %v3399_v15 = vadd.f32 %v3335_v55, %v5805_v26 }
 0x474   : > { %v3619_v31 = vadd.f32 %v3551_v22, %v3395_v51 }
 0x476   : > { %3710 = vrot.lane.b32.xlu2 %v3619_v31, %s4350_s28  ;;  %v4335_v31 = vld [vmem:[%s4447_s19 + $0xd8] sm:$0xff] }
 0x479   : > { %v3683_v28 = vpop.permute.xlu0 %3682 }
 0x47a   : > { %v3687_v39 = vpop.permute.xlu2 %3686  ;;  %v3798_v43 = vsel %vm3784_vm5, %v3765_v7, %v3683_v28  ;;  %v3553_v20 = vpop.permute.xlu1 %3552 }
 0x47b   : > { %v3800_v13 = vsel %vm3784_vm5, %v3767_v60, %v3687_v39  ;;  %3831 = vst.msk [vmem:[%s5763_s30 + $0x68] sm:$0xff] %vm3817_vm6, %v3798_v43  ;;  %v3620_v9 = vadd.f32 %v3553_v20, %v3396_v62  ;;  %v6076_v62 = vld [vmem:[#allocation6_spill] sm:$0xff]  ;;  %v6077_v60 = vld [vmem:[#allocation5_spill] sm:$0xff] }
 0x47c   : > { %3833 = vst.msk [vmem:[%s5763_s30 + $0x78] sm:$0xff] %vm3817_vm6, %v3800_v13  ;;  %v3779_v56 = vsel %vm586_vm0, %v4335_v31, %v6076_v62  ;;  %v3777_v39 = vsel %vm586_vm0, %v4336_v12, %v6077_v60  ;;  %v4337_v13 = vld [vmem:[%s4447_s19 + $0xd0] sm:$0xff] }
 0x47d   : > { %3712 = vrot.lane.b32.xlu0 %v3620_v9, %s4350_s28  ;;  %v6078_v9 = vld [vmem:[#allocation7_spill] sm:$0xff] }
 0x481   : > { %v3331_v32 = vpop.permute.xlu0 %3330 }
 0x482   : > { %v3397_v24 = vadd.f32 %v3331_v32, %v5783_v25  ;;  %v3333_v58 = vpop.permute.xlu1 %3332  ;;  %v3778_v32 = vsel %vm586_vm0, %v4337_v13, %v6078_v9 }
 0x483   : > { %v3398_v0 = vadd.f32 %v3333_v58, %v5794_v50  ;;  %v3768_v50 = vsel %vm586_vm0, %v4326_v48, %v5209_v8  ;;  %v3769_v8 = vsel %vm586_vm0, %v4328_v38, %v5216_v11  ;;  %v3771_v11 = vsel %vm586_vm0, %v4330_v29, %v5233_v4  ;;  %v6081_v48 = vld [vmem:[#allocation9_spill] sm:$0xff] }
 0x484   : > { %v3621_v61 = vadd.f32 %v3555_v44, %v3397_v24  ;;  %v3776_v4 = vsel %vm586_vm0, %v4332_v41, %v5293_v27  ;;  %v3774_v44 = vsel %vm586_vm0, %v4333_v53, %v6074_v16  ;;  %v6075_v27 = vld [vmem:[#allocation4_spill] sm:$0xff] }
 0x485   : > { %v3775_v22 = vsel %vm586_vm0, %v4334_v3, %v6075_v27 }
 0x486   : > { %3714 = vrot.lane.b32.xlu1 %v3621_v61, %s4350_s28  ;;  %v4338_v61 = vld [vmem:[%s4447_s19 + $0xf0] sm:$0xff] }
 0x488   : > { %v3693_v45 = vpop.permute.xlu2 %3692 }
 0x489   : > { %v3803_v5 = vsel %vm3784_vm5, %v3770_v46, %v3693_v45  ;;  %v3557_v6 = vpop.permute.xlu0 %3556 }
 0x48a   : > { %3836 = vst.msk [vmem:[%s5763_s30 + $0x90] sm:$0xff] %vm3817_vm6, %v3803_v5  ;;  %v3622_v25 = vadd.f32 %v3557_v6, %v3398_v0  ;;  %v3559_v47 = vpop.permute.xlu1 %3558  ;;  %v6079_v0 = vld [vmem:[#allocation10_spill] sm:$0xff]  ;;  %v6080_v5 = vld [vmem:[#allocation8_spill] sm:$0xff] }
 0x48b   : > { %v3623_v30 = vadd.f32 %v3559_v47, %v3399_v15  ;;  %v3782_v19 = vsel %vm586_vm0, %v4338_v61, %v6079_v0  ;;  %v4339_v15 = vld [vmem:[%s4447_s19 + $0xe0] sm:$0xff] }
 0x48c   : > { %3716 = vrot.lane.b32.xlu2 %v3622_v25, %s4350_s28  ;;  %v3780_v6 = vsel %vm586_vm0, %v4339_v15, %v6080_v5 }
 0x48d   : > { %3718 = vrot.lane.b32.xlu0 %v3623_v30, %s4350_s28  ;;  %v4340_v30 = vld [vmem:[%s4447_s19 + $0xe8] sm:$0xff] }
 0x491   : > { %v3689_v26 = vpop.permute.xlu0 %3688 }
 0x492   : > { %v3801_v37 = vsel %vm3784_vm5, %v3768_v50, %v3689_v26  ;;  %v3685_v18 = vpop.permute.xlu1 %3684  ;;  %v3781_v50 = vsel %vm586_vm0, %v4340_v30, %v6081_v48 }
 0x493   : > { %3834 = vst.msk [vmem:[%s5763_s30 + $0x80] sm:$0xff] %vm3817_vm6, %v3801_v37  ;;  %v3799_v23 = vsel %vm3784_vm5, %v3766_v36, %v3685_v18  ;;  %v6082_v36 = vld [vmem:[#allocation11_spill] sm:$0xff] }
 0x494   : > { %3832 = vst.msk [vmem:[%s5763_s30 + $0x70] sm:$0xff] %vm3817_vm6, %v3799_v23  ;;  %v3783_v18 = vsel %vm586_vm0, %v4341_v2, %v6082_v36 }
 0x49a   : > { %v3691_v52 = vpop.permute.xlu1 %3690 }
 0x49b   : > { %v3802_v33 = vsel %vm3784_vm5, %v3769_v8, %v3691_v52 }
 0x49c   : > { %3835 = vst.msk [vmem:[%s5763_s30 + $0x88] sm:$0xff] %vm3817_vm6, %v3802_v33 }
 0x4a0   : > { %v3699_v54 = vpop.permute.xlu2 %3698 }
 0x4a1   : > { %v3806_v49 = vsel %vm3784_vm5, %v3773_v35, %v3699_v54 }
 0x4a2   : > { %3839 = vst.msk [vmem:[%s5763_s30 + $0xa8] sm:$0xff] %vm3817_vm6, %v3806_v49 }
 0x4a6   : > { %v3695_v42 = vpop.permute.xlu0 %3694 }
 0x4a7   : > { %v3804_v40 = vsel %vm3784_vm5, %v3771_v11, %v3695_v42 }
 0x4a8   : > { %3837 = vst.msk [vmem:[%s5763_s30 + $0x98] sm:$0xff] %vm3817_vm6, %v3804_v40 }
 0x4b0   : > { %v3697_v63 = vpop.permute.xlu1 %3696 }
 0x4b1   : > { %v3805_v34 = vsel %vm3784_vm5, %v3772_v57, %v3697_v63 }
 0x4b2   : > { %3838 = vst.msk [vmem:[%s5763_s30 + $0xa0] sm:$0xff] %vm3817_vm6, %v3805_v34 }
 0x4b8   : > { %v3705_v14 = vpop.permute.xlu2 %3704 }
 0x4b9   : > { %v3809_v59 = vsel %vm3784_vm5, %v3776_v4, %v3705_v14 }
 0x4ba   : > { %3842 = vst.msk [vmem:[%s5763_s30 + $0xc0] sm:$0xff] %vm3817_vm6, %v3809_v59 }
 0x4be   : > { %v3701_v10 = vpop.permute.xlu0 %3700 }
 0x4bf   : > { %v3807_v17 = vsel %vm3784_vm5, %v3774_v44, %v3701_v10 }
 0x4c0   : > { %3840 = vst.msk [vmem:[%s5763_s30 + $0xb0] sm:$0xff] %vm3817_vm6, %v3807_v17 }
 0x4c8   : > { %v3703_v51 = vpop.permute.xlu1 %3702 }
 0x4c9   : > { %v3808_v55 = vsel %vm3784_vm5, %v3775_v22, %v3703_v51 }
 0x4ca   : > { %3841 = vst.msk [vmem:[%s5763_s30 + $0xb8] sm:$0xff] %vm3817_vm6, %v3808_v55 }
 0x4d0   : > { %v3711_v7 = vpop.permute.xlu2 %3710 }
 0x4d1   : > { %v3812_v28 = vsel %vm3784_vm5, %v3779_v56, %v3711_v7 }
 0x4d2   : > { %3845 = vst.msk [vmem:[%s5763_s30 + $0xd8] sm:$0xff] %vm3817_vm6, %v3812_v28 }
 0x4d6   : > { %v3707_v43 = vpop.permute.xlu0 %3706 }
 0x4d7   : > { %v3810_v20 = vsel %vm3784_vm5, %v3777_v39, %v3707_v43 }
 0x4d8   : > { %3843 = vst.msk [vmem:[%s5763_s30 + $0xc8] sm:$0xff] %vm3817_vm6, %v3810_v20 }
 0x4e0   : > { %v3709_v24 = vpop.permute.xlu1 %3708 }
 0x4e1   : > { %v3811_v58 = vsel %vm3784_vm5, %v3778_v32, %v3709_v24 }
 0x4e2   : > { %3844 = vst.msk [vmem:[%s5763_s30 + $0xd0] sm:$0xff] %vm3817_vm6, %v3811_v58 }
 0x4e6   : > { %v3717_v46 = vpop.permute.xlu2 %3716 }
 0x4e7   : > { %v3815_v45 = vsel %vm3784_vm5, %v3782_v19, %v3717_v46 }
 0x4e8   : > { %3848 = vst.msk [vmem:[%s5763_s30 + $0xf0] sm:$0xff] %vm3817_vm6, %v3815_v45 }
 0x4ef   : > { %v3713_v25 = vpop.permute.xlu0 %3712 }
 0x4f0   : > { %v3813_v47 = vsel %vm3784_vm5, %v3780_v6, %v3713_v25 }
 0x4f1   : > { %3846 = vst.msk [vmem:[%s5763_s30 + $0xe0] sm:$0xff] %vm3817_vm6, %v3813_v47 }
 0x4f8   : > { %v3715_v26 = vpop.permute.xlu1 %3714 }
 0x4f9   : > { %v3814_v37 = vsel %vm3784_vm5, %v3781_v50, %v3715_v26 }
 0x4fa   : > { %3847 = vst.msk [vmem:[%s5763_s30 + $0xe8] sm:$0xff] %vm3817_vm6, %v3814_v37 }
 0x4ff   : > { %v3719_v23 = vpop.permute.xlu0 %3718 }
 0x500   : > { %v3816_v38 = vsel %vm3784_vm5, %v3783_v18, %v3719_v23 }
 0x501   : > { %3849 = vst.msk [vmem:[%s5763_s30 + $0xf8] sm:$0xff] %vm3817_vm6, %v3816_v38 }
 0x502 PF: > { %s23_s25 = sadd.s32 1, %s4348_s25  }
 0x503   : > { %p20_p4 = scmp.ge.s32.totalorder %s23_s25, 4  }
 0x505   :  { %22 = sbr.rel (!%p20_p4) target bundleno = 1 (0x1), region = 106 }

</bundles_post_ra>
